<compile_context>
chip_gen: v7x
topology: tpu7x:2x2x1
jax: 0.10.0
libtpu: 0.0.40
codegen_flags: <defaults>
</compile_context>

<pallas_src>
import functools

import numpy as np
import jax
import jax.numpy as jnp
from jax import lax
from jax.experimental import pallas as pl
from jax.experimental.pallas import tpu as pltpu

_EPS = 1e-5


# ----------------------------------------------------------------------------
# JAX glue: stride-phase flattened layout (1x copy, replaces 9x im2col)
# ----------------------------------------------------------------------------
def _phase_flatten(x, s):
    """NHWC -> (s*s, N, R, C) bf16 flattened stride-phase slabs.

    slab[ph*s+pw][n, i*Wq + j, :] = x_pad[n, i*s+ph, j*s+pw, :]
    so conv tap (kh, kw) for output (ho, wo) reads row
    (ho + kh//s)*Wq + (wo + kw//s) of phase (kh % s, kw % s): every tap is a
    *contiguous* static row-window -> plain 2-D MXU matmuls in the kernel.
    """
    N, H, W, C = x.shape
    xp = jnp.pad(x.astype(jnp.bfloat16), ((0, 0), (1, 1), (1, 1), (0, 0)))
    Hp, Wp = H + 2, W + 2
    Hq, Wq = -(-Hp // s), -(-Wp // s)
    xp = jnp.pad(xp, ((0, 0), (0, Hq * s - Hp), (0, Wq * s - Wp), (0, 0)))
    phases = xp.reshape(N, Hq, s, Wq, s, C).transpose(2, 4, 0, 1, 3, 5)
    flat = phases.reshape(s * s, N, Hq * Wq, C)
    Ho = (H + 2 - 3) // s + 1
    dmax = 2 // s
    R = max(dmax * Wq + dmax + Ho * Wq, Hq * Wq)
    if R > Hq * Wq:
        flat = jnp.pad(flat, ((0, 0), (0, 0), (0, R - Hq * Wq), (0, 0)))
    return flat, Wq, R


def _interior_mask(Ho, Wo, Wq, R):
    """(R,1) f32 mask of rows holding real data in a padded flattened image."""
    r = np.arange(R)
    row, col = r // Wq, r % Wq
    valid = (row >= 1) & (row <= Ho) & (col >= 1) & (col <= Wo)
    return jnp.asarray(valid.astype(np.float32).reshape(R, 1))


# ----------------------------------------------------------------------------
# Pallas kernel: 3x3 conv as 9 shifted matmuls (+ fused prev-BN prologue,
# + fused 1x1 shortcut conv) + per-image BN partial statistics
# ----------------------------------------------------------------------------
def _conv_kernel(*refs, stride, Ho, Wo, Wq, M2, apply_bn_in, fuse_shortcut):
    it = iter(refs)
    x_ref = next(it)
    w_ref = next(it)
    if apply_bn_in:
        scale_ref, shift_ref, mask_ref = next(it), next(it), next(it)
    if fuse_shortcut:
        wsc_ref = next(it)
    y_ref, s_ref, q_ref = next(it), next(it), next(it)
    if fuse_shortcut:
        ysc_ref, ssc_ref, qsc_ref = next(it), next(it), next(it)
    acc_ref = next(it)
    if apply_bn_in:
        a_ref = next(it)

    if apply_bn_in:
        # Fused previous-layer BN + ReLU prologue: normalize the raw (pre-BN)
        # padded slab once in f32, re-zero the conv-padding border, cast to
        # bf16 for the MXU.  (Only used for conv2; conv2 is always stride 1.)
        xin = x_ref[0, 0].astype(jnp.float32)                    # (R, C)
        act = jnp.maximum(xin * scale_ref[...] + shift_ref[...], 0.0)
        a_ref[...] = (act * mask_ref[...]).astype(jnp.bfloat16)

    def lhs(ph, off):
        if apply_bn_in:
            return a_ref[off:off + M2, :]
        return x_ref[ph, 0, off:off + M2, :]

    def compact_and_stats(src, out_ref, sum_ref, sq_ref):
        # Copy the Ho valid row-runs (length Wo, spacing Wq) into the dense
        # (Ho*Wo, C) output block, then compute per-channel partial sums for
        # the two-pass BatchNorm from the clean copy (no iota masking).
        for i in range(Ho):
            out_ref[0, i * Wo:(i + 1) * Wo, :] = src[i * Wq:i * Wq + Wo, :]
        clean = out_ref[0]
        sum_ref[0] = jnp.sum(clean, axis=0, keepdims=True)
        sq_ref[0] = jnp.sum(clean * clean, axis=0, keepdims=True)

    # 9-tap K reduction in an f32 VMEM accumulator (bf16 operands on the MXU).
    acc_ref[...] = jnp.zeros_like(acc_ref)
    for t in range(9):
        kh, kw = t // 3, t % 3
        ph = (kh % stride) * stride + (kw % stride)
        off = (kh // stride) * Wq + (kw // stride)
        xs = lhs(ph, off)                                        # (M2, Cin) bf16
        acc_ref[...] += jnp.dot(xs, w_ref[t],
                                preferred_element_type=jnp.float32)
        if fuse_shortcut and kh == 1 and kw == 1:
            # 1x1 shortcut conv reuses the centre-tap window: no extra input
            # HBM traffic, no separate pallas_call, no K padding.
            ysc = jnp.dot(xs, wsc_ref[...],
                          preferred_element_type=jnp.float32)
            compact_and_stats(ysc, ysc_ref, ssc_ref, qsc_ref)

    compact_and_stats(acc_ref[...], y_ref, s_ref, q_ref)


def _conv_pass(xf, w_taps, *, stride, Ho, Wo, Wq,
               bn_scale=None, bn_shift=None, pad_mask=None, wsc=None):
    """One image per grid step; returns pre-BN conv output (dense (N,M,C)
    layout) plus per-image per-channel sum / sum-of-squares partials."""
    s2, N, R, C = xf.shape
    assert s2 == stride * stride
    P = w_taps.shape[2]
    M, M2 = Ho * Wo, Ho * Wq
    apply_bn_in = bn_scale is not None
    fuse_sc = wsc is not None

    inputs = [xf, w_taps]
    in_specs = [
        pl.BlockSpec((s2, 1, R, C), lambda n: (0, n, 0, 0)),     # image slab
        pl.BlockSpec((9, C, P), lambda n: (0, 0, 0)),            # resident wts
    ]
    if apply_bn_in:
        inputs += [bn_scale, bn_shift, pad_mask]
        in_specs += [pl.BlockSpec((1, C), lambda n: (0, 0)),
                     pl.BlockSpec((1, C), lambda n: (0, 0)),
                     pl.BlockSpec((R, 1), lambda n: (0, 0))]
    if fuse_sc:
        EP = wsc.shape[1]
        inputs += [wsc]
        in_specs += [pl.BlockSpec((C, EP), lambda n: (0, 0))]

    out_shape = [jax.ShapeDtypeStruct((N, M, P), jnp.float32),
                 jax.ShapeDtypeStruct((N, 1, P), jnp.float32),
                 jax.ShapeDtypeStruct((N, 1, P), jnp.float32)]
    out_specs = [pl.BlockSpec((1, M, P), lambda n: (n, 0, 0)),
                 pl.BlockSpec((1, 1, P), lambda n: (n, 0, 0)),
                 pl.BlockSpec((1, 1, P), lambda n: (n, 0, 0))]
    if fuse_sc:
        out_shape += [jax.ShapeDtypeStruct((N, M, EP), jnp.float32),
                      jax.ShapeDtypeStruct((N, 1, EP), jnp.float32),
                      jax.ShapeDtypeStruct((N, 1, EP), jnp.float32)]
        out_specs += [pl.BlockSpec((1, M, EP), lambda n: (n, 0, 0)),
                      pl.BlockSpec((1, 1, EP), lambda n: (n, 0, 0)),
                      pl.BlockSpec((1, 1, EP), lambda n: (n, 0, 0))]

    scratch = [pltpu.VMEM((M2, P), jnp.float32)]                 # f32 accum
    if apply_bn_in:
        scratch.append(pltpu.VMEM((R, C), jnp.bfloat16))         # bn'd slab

    kernel = functools.partial(
        _conv_kernel, stride=stride, Ho=Ho, Wo=Wo, Wq=Wq, M2=M2,
        apply_bn_in=apply_bn_in, fuse_shortcut=fuse_sc)

    return pl.pallas_call(
        kernel,
        out_shape=out_shape,
        grid=(N,),
        in_specs=in_specs,
        out_specs=out_specs,
        scratch_shapes=scratch,
        compiler_params=pltpu.CompilerParams(
            dimension_semantics=("parallel",)),                  # megacore/v7x
    )(*inputs)


# ----------------------------------------------------------------------------
# Pallas kernel: fused bn2-apply + shortcut-bn-apply + residual add + ReLU
# ----------------------------------------------------------------------------
def _bn_add_relu_kernel(y_ref, r_ref, a_ref, b_ref, c_ref, d_ref, o_ref):
    o_ref[0] = jnp.maximum(
        y_ref[0] * a_ref[...] + b_ref[...] +
        r_ref[0] * c_ref[...] + d_ref[...], 0.0)


def _bn_add_relu_pass(y, res, scale_y, shift_y, scale_r, shift_r):
    N, M, P = y.shape
    E = res.shape[2]
    return pl.pallas_call(
        _bn_add_relu_kernel,
        out_shape=jax.ShapeDtypeStruct((N, M, P), jnp.float32),
        grid=(N,),
        in_specs=[pl.BlockSpec((1, M, P), lambda n: (n, 0, 0)),
                  pl.BlockSpec((1, M, E), lambda n: (n, 0, 0)),
                  pl.BlockSpec((1, P), lambda n: (0, 0)),
                  pl.BlockSpec((1, P), lambda n: (0, 0)),
                  pl.BlockSpec((1, E), lambda n: (0, 0)),
                  pl.BlockSpec((1, E), lambda n: (0, 0))],
        out_specs=pl.BlockSpec((1, M, P), lambda n: (n, 0, 0)),
        compiler_params=pltpu.CompilerParams(
            dimension_semantics=("parallel",)),
    )(y, res, scale_y, shift_y, scale_r, shift_r)


# ----------------------------------------------------------------------------
# Tiny JAX reduction: finalize global train-mode BN stats -> scale/shift
# ----------------------------------------------------------------------------
def _finalize_bn(psum, psq, gamma, beta, count):
    tot = jnp.sum(psum, axis=0)                                   # (1, C)
    totq = jnp.sum(psq, axis=0)
    mean = tot / count
    var = jnp.maximum(totq / count - mean * mean, 0.0)            # biased var
    scale = gamma.reshape(1, -1).astype(jnp.float32) * lax.rsqrt(var + _EPS)
    shift = beta.reshape(1, -1).astype(jnp.float32) - mean * scale
    return scale, shift


# ----------------------------------------------------------------------------
# BasicBlock forward (NCHW in / NCHW out, like PyTorch)
# ----------------------------------------------------------------------------
def basic_block_forward(x_nchw, params, *, stride, expansion):
    x = jnp.transpose(x_nchw, (0, 2, 3, 1)).astype(jnp.float32)   # NHWC f32
    N, H, W, Cin = x.shape
    planes = params["w1"].shape[0]
    Ho = (H + 2 - 3) // stride + 1
    Wo = (W + 2 - 3) // stride + 1
    count = N * Ho * Wo
    has_sc = (stride != 1) or (Cin != expansion * planes)

    # ---- pass 1: conv1 (3x3, stride) [+ fused 1x1 shortcut] + BN partials
    x1f, Wq1, _ = _phase_flatten(x, stride)
    w1 = jnp.transpose(params["w1"], (2, 3, 1, 0)).reshape(9, Cin, planes)
    w1 = w1.astype(jnp.bfloat16)
    if has_sc:
        wsc = params["wsc"][:, :, 0, 0].T.astype(jnp.bfloat16)    # (Cin, EP)
        y1, s1, q1, ysc, ssc, qsc = _conv_pass(
            x1f, w1, stride=stride, Ho=Ho, Wo=Wo, Wq=Wq1, wsc=wsc)
    else:
        y1, s1, q1 = _conv_pass(x1f, w1, stride=stride, Ho=Ho, Wo=Wo, Wq=Wq1)
    scale1, shift1 = _finalize_bn(s1, q1, params["g1"], params["b1"], count)

    # ---- pass 2: conv2 (3x3, stride 1); bn1+relu fused into its prologue.
    # Raw pre-BN y1 is repacked (1x data movement, no math) into the padded
    # flattened layout; the kernel normalizes it in VMEM.
    Wq2 = Wo + 2
    R2 = 2 * Wq2 + 2 + Ho * Wq2
    y1pad = jnp.pad(y1.reshape(N, Ho, Wo, planes),
                    ((0, 0), (1, 1), (1, 1), (0, 0)))
    x2f = y1pad.reshape(N, (Ho + 2) * Wq2, planes)
    x2f = jnp.pad(x2f, ((0, 0), (0, R2 - (Ho + 2) * Wq2), (0, 0)))[None]
    mask2 = _interior_mask(Ho, Wo, Wq2, R2)
    w2 = jnp.transpose(params["w2"], (2, 3, 1, 0)).reshape(9, planes, planes)
    w2 = w2.astype(jnp.bfloat16)
    y2, s2, q2 = _conv_pass(
        x2f, w2, stride=1, Ho=Ho, Wo=Wo, Wq=Wq2,
        bn_scale=scale1, bn_shift=shift1, pad_mask=mask2)
    scale2, shift2 = _finalize_bn(s2, q2, params["g2"], params["b2"], count)

    # ---- shortcut branch normalization parameters
    if has_sc:
        scale_s, shift_s = _finalize_bn(ssc, qsc, params["gsc"],
                                        params["bsc"], count)
        short = ysc
    else:
        short = x.reshape(N, H * W, Cin)        # identity (Ho==H, Wo==W here)
        scale_s = jnp.ones((1, Cin), jnp.float32)
        shift_s = jnp.zeros((1, Cin), jnp.float32)

    # ---- pass 3: bn2 + shortcut-bn + residual add + ReLU (one fused kernel)
    out = _bn_add_relu_pass(y2, short, scale2, shift2, scale_s, shift_s)
    out = out.reshape(N, Ho, Wo, planes)
    return jnp.transpose(out, (0, 3, 1, 2))                       # -> NCHW


# ----------------------------------------------------------------------------
# Pure-JAX reference (lax conv, f32) for the correctness check
# ----------------------------------------------------------------------------
def _bn_train(y, g, b):
    mean = jnp.mean(y, axis=(0, 1, 2), keepdims=True)
    var = jnp.mean((y - mean) ** 2, axis=(0, 1, 2), keepdims=True)
    return (y - mean) * lax.rsqrt(var + _EPS) * g + b


def reference_forward(x_nchw, params, *, stride, expansion):
    x = jnp.transpose(x_nchw, (0, 2, 3, 1)).astype(jnp.float32)
    dn = ("NHWC", "OIHW", "NHWC")
    c1 = lax.conv_general_dilated(x, params["w1"], (stride, stride),
                                  ((1, 1), (1, 1)), dimension_numbers=dn)
    o1 = jax.nn.relu(_bn_train(c1, params["g1"], params["b1"]))
    c2 = lax.conv_general_dilated(o1, params["w2"], (1, 1),
                                  ((1, 1), (1, 1)), dimension_numbers=dn)
    o2 = _bn_train(c2, params["g2"], params["b2"])
    Cin = x.shape[-1]
    planes = params["w1"].shape[0]
    if stride != 1 or Cin != expansion * planes:
        cs = lax.conv_general_dilated(x, params["wsc"], (stride, stride),
                                      "VALID", dimension_numbers=dn)
        sc = _bn_train(cs, params["gsc"], params["bsc"])
    else:
        sc = x
    out = jax.nn.relu(o2 + sc)
    return jnp.transpose(out, (0, 3, 1, 2))


# ----------------------------------------------------------------------------
# Self-test
# ----------------------------------------------------------------------------
if __name__ == "__main__":
    def _bf16_round(a):
        # Pre-round conv operands so the f32 reference and the bf16-MXU kernel
        # see identical inputs; remaining diff is accumulation order + the
        # bf16 cast of the BN1-applied activation inside conv2's prologue.
        return a.astype(jnp.bfloat16).astype(jnp.float32)

    def _make_params(key, in_planes, planes, expansion, stride):
        k = jax.random.split(key, 8)
        p = {
            "w1": _bf16_round(0.1 * jax.random.normal(
                k[0], (planes, in_planes, 3, 3), jnp.float32)),
            "g1": 1.0 + 0.1 * jax.random.normal(k[1], (planes,), jnp.float32),
            "b1": 0.1 * jax.random.normal(k[2], (planes,), jnp.float32),
            "w2": _bf16_round(0.1 * jax.random.normal(
                k[3], (planes, planes, 3, 3), jnp.float32)),
            "g2": 1.0 + 0.1 * jax.random.normal(k[4], (planes,), jnp.float32),
            "b2": 0.1 * jax.random.normal(k[5], (planes,), jnp.float32),
        }
        if stride != 1 or in_planes != expansion * planes:
            ep = expansion * planes
            p["wsc"] = _bf16_round(0.1 * jax.random.normal(
                k[6], (ep, in_planes, 1, 1), jnp.float32))
            p["gsc"] = jnp.ones((ep,), jnp.float32)
            p["bsc"] = jnp.zeros((ep,), jnp.float32)
        return p

    configs = [
        # downsampling block: stride-2 conv1 + fused 1x1 shortcut conv + BN
        dict(N=2, in_planes=4, H=16, W=16, planes=8, expansion=1, stride=2),
        # identity-shortcut block: stride 1, in_planes == planes
        dict(N=2, in_planes=8, H=16, W=16, planes=8, expansion=1, stride=1),
    ]

    key = jax.random.PRNGKey(0)
    for cfg in configs:
        key, kp, kx = jax.random.split(key, 3)
        params = _make_params(kp, cfg["in_planes"], cfg["planes"],
                              cfg["expansion"], cfg["stride"])
        x = _bf16_round(jax.random.normal(
            kx, (cfg["N"], cfg["in_planes"], cfg["H"], cfg["W"]), jnp.float32))

        fwd = jax.jit(functools.partial(basic_block_forward,
                                        stride=cfg["stride"],
                                        expansion=cfg["expansion"]))
        out = jax.block_until_ready(fwd(x, params))
        ref = reference_forward(x, params, stride=cfg["stride"],
                                expansion=cfg["expansion"])
        np.testing.assert_allclose(np.asarray(out), np.asarray(ref),
                                   rtol=1e-2, atol=1e-2)

    print("KERNEL_OK")
</pallas_src>

<mosaic_0001>
module attributes {stable_mosaic.version = 11 : i64} {
  func.func @_conv_kernel(%arg0: i32, %arg1: memref<4x1x82x4xbf16, #tpu.memory_space<vmem>>, %arg2: memref<9x4x8xbf16, #tpu.memory_space<vmem>>, %arg3: memref<4x8xbf16, #tpu.memory_space<vmem>>, %arg4: memref<1x64x8xf32, #tpu.memory_space<vmem>>, %arg5: memref<1x1x8xf32, #tpu.memory_space<vmem>>, %arg6: memref<1x1x8xf32, #tpu.memory_space<vmem>>, %arg7: memref<1x64x8xf32, #tpu.memory_space<vmem>>, %arg8: memref<1x1x8xf32, #tpu.memory_space<vmem>>, %arg9: memref<1x1x8xf32, #tpu.memory_space<vmem>>, %arg10: memref<72x8xf32, #tpu.memory_space<vmem>>) attributes {dimension_semantics = [#tpu.dimension_semantics<parallel>], iteration_bounds = array<i64: 2>, scalar_prefetch = 0 : i64, scratch_operands = 1 : i64, tpu.core_type = #tpu.core_type<tc>, window_params = [{transform_indices = @transform_0, window_bounds = array<i64: 4, 1, 82, 4>}, {pipeline_mode = #tpu.pipeline_mode<synchronous>, transform_indices = @transform_1, window_bounds = array<i64: 9, 4, 8>}, {pipeline_mode = #tpu.pipeline_mode<synchronous>, transform_indices = @transform_2, window_bounds = array<i64: 4, 8>}, {transform_indices = @transform_3, window_bounds = array<i64: 1, 64, 8>}, {transform_indices = @transform_4, window_bounds = array<i64: 1, 1, 8>}, {transform_indices = @transform_5, window_bounds = array<i64: 1, 1, 8>}, {transform_indices = @transform_6, window_bounds = array<i64: 1, 64, 8>}, {transform_indices = @transform_7, window_bounds = array<i64: 1, 1, 8>}, {transform_indices = @transform_8, window_bounds = array<i64: 1, 1, 8>}]} {
    %cst = arith.constant 0.000000e+00 : f32
    %0 = vector.broadcast %cst : f32 to vector<72x8xf32>
    %c0 = arith.constant 0 : index
    %c0_0 = arith.constant 0 : index
    %1 = vector.load %arg10[%c0, %c0_0] : memref<72x8xf32, #tpu.memory_space<vmem>>, vector<72x8xf32>
    tpu.vector_store %arg10[%c0, %c0_0], %0 {strides = array<i32>} : memref<72x8xf32, #tpu.memory_space<vmem>>, vector<72x8xf32>,
    %c0_1 = arith.constant 0 : index
    %c0_2 = arith.constant 0 : index
    %c0_3 = arith.constant 0 : index
    %c0_4 = arith.constant 0 : index
    %2 = vector.load %arg1[%c0_1, %c0_2, %c0_3, %c0_4] : memref<4x1x82x4xbf16, #tpu.memory_space<vmem>>, vector<1x1x72x4xbf16>
    %3 = vector.shape_cast %2 : vector<1x1x72x4xbf16> to vector<72x4xbf16>
    %c0_5 = arith.constant 0 : index
    %c0_6 = arith.constant 0 : index
    %4 = vector.load %arg10[%c0_5, %c0_6] : memref<72x8xf32, #tpu.memory_space<vmem>>, vector<72x8xf32>
    %c0_7 = arith.constant 0 : index
    %c0_8 = arith.constant 0 : index
    %c0_9 = arith.constant 0 : index
    %5 = vector.load %arg2[%c0_7, %c0_8, %c0_9] : memref<9x4x8xbf16, #tpu.memory_space<vmem>>, vector<1x4x8xbf16>
    %6 = vector.shape_cast %5 : vector<1x4x8xbf16> to vector<4x8xbf16>
    %cst_10 = arith.constant dense<0.000000e+00> : vector<72x8xf32>
    %7 = tpu.matmul %3, %6, %cst_10 {dimension_numbers = #tpu.dot_dimension_numbers<[1], [0], [0], [1], [0, 0, 1, 1], [], []>} : vector<72x4xbf16>, vector<4x8xbf16>, vector<72x8xf32> -> vector<72x8xf32>
    %8 = arith.addf %4, %7 : vector<72x8xf32>
    %c0_11 = arith.constant 0 : index
    %c0_12 = arith.constant 0 : index
    %9 = vector.load %arg10[%c0_11, %c0_12] : memref<72x8xf32, #tpu.memory_space<vmem>>, vector<72x8xf32>
    tpu.vector_store %arg10[%c0_11, %c0_12], %8 {strides = array<i32>} : memref<72x8xf32, #tpu.memory_space<vmem>>, vector<72x8xf32>,
    %c1 = arith.constant 1 : index
    %c0_13 = arith.constant 0 : index
    %c0_14 = arith.constant 0 : index
    %c0_15 = arith.constant 0 : index
    %10 = vector.load %arg1[%c1, %c0_13, %c0_14, %c0_15] : memref<4x1x82x4xbf16, #tpu.memory_space<vmem>>, vector<1x1x72x4xbf16>
    %11 = vector.shape_cast %10 : vector<1x1x72x4xbf16> to vector<72x4xbf16>
    %c0_16 = arith.constant 0 : index
    %c0_17 = arith.constant 0 : index
    %12 = vector.load %arg10[%c0_16, %c0_17] : memref<72x8xf32, #tpu.memory_space<vmem>>, vector<72x8xf32>
    %c1_18 = arith.constant 1 : index
    %c0_19 = arith.constant 0 : index
    %c0_20 = arith.constant 0 : index
    %13 = vector.load %arg2[%c1_18, %c0_19, %c0_20] : memref<9x4x8xbf16, #tpu.memory_space<vmem>>, vector<1x4x8xbf16>
    %14 = vector.shape_cast %13 : vector<1x4x8xbf16> to vector<4x8xbf16>
    %cst_21 = arith.constant dense<0.000000e+00> : vector<72x8xf32>
    %15 = tpu.matmul %11, %14, %cst_21 {dimension_numbers = #tpu.dot_dimension_numbers<[1], [0], [0], [1], [0, 0, 1, 1], [], []>} : vector<72x4xbf16>, vector<4x8xbf16>, vector<72x8xf32> -> vector<72x8xf32>
    %16 = arith.addf %12, %15 : vector<72x8xf32>
    %c0_22 = arith.constant 0 : index
    %c0_23 = arith.constant 0 : index
    %17 = vector.load %arg10[%c0_22, %c0_23] : memref<72x8xf32, #tpu.memory_space<vmem>>, vector<72x8xf32>
    tpu.vector_store %arg10[%c0_22, %c0_23], %16 {strides = array<i32>} : memref<72x8xf32, #tpu.memory_space<vmem>>, vector<72x8xf32>,
    %c0_24 = arith.constant 0 : index
    %c0_25 = arith.constant 0 : index
    %c1_26 = arith.constant 1 : index
    %c0_27 = arith.constant 0 : index
    %18 = vector.load %arg1[%c0_24, %c0_25, %c1_26, %c0_27] : memref<4x1x82x4xbf16, #tpu.memory_space<vmem>>, vector<1x1x72x4xbf16>
    %19 = vector.shape_cast %18 : vector<1x1x72x4xbf16> to vector<72x4xbf16>
    %c0_28 = arith.constant 0 : index
    %c0_29 = arith.constant 0 : index
    %20 = vector.load %arg10[%c0_28, %c0_29] : memref<72x8xf32, #tpu.memory_space<vmem>>, vector<72x8xf32>
    %c2 = arith.constant 2 : index
    %c0_30 = arith.constant 0 : index
    %c0_31 = arith.constant 0 : index
    %21 = vector.load %arg2[%c2, %c0_30, %c0_31] : memref<9x4x8xbf16, #tpu.memory_space<vmem>>, vector<1x4x8xbf16>
    %22 = vector.shape_cast %21 : vector<1x4x8xbf16> to vector<4x8xbf16>
    %cst_32 = arith.constant dense<0.000000e+00> : vector<72x8xf32>
    %23 = tpu.matmul %19, %22, %cst_32 {dimension_numbers = #tpu.dot_dimension_numbers<[1], [0], [0], [1], [0, 0, 1, 1], [], []>} : vector<72x4xbf16>, vector<4x8xbf16>, vector<72x8xf32> -> vector<72x8xf32>
    %24 = arith.addf %20, %23 : vector<72x8xf32>
    %c0_33 = arith.constant 0 : index
    %c0_34 = arith.constant 0 : index
    %25 = vector.load %arg10[%c0_33, %c0_34] : memref<72x8xf32, #tpu.memory_space<vmem>>, vector<72x8xf32>
    tpu.vector_store %arg10[%c0_33, %c0_34], %24 {strides = array<i32>} : memref<72x8xf32, #tpu.memory_space<vmem>>, vector<72x8xf32>,
    %c2_35 = arith.constant 2 : index
    %c0_36 = arith.constant 0 : index
    %c0_37 = arith.constant 0 : index
    %c0_38 = arith.constant 0 : index
    %26 = vector.load %arg1[%c2_35, %c0_36, %c0_37, %c0_38] : memref<4x1x82x4xbf16, #tpu.memory_space<vmem>>, vector<1x1x72x4xbf16>
    %27 = vector.shape_cast %26 : vector<1x1x72x4xbf16> to vector<72x4xbf16>
    %c0_39 = arith.constant 0 : index
    %c0_40 = arith.constant 0 : index
    %28 = vector.load %arg10[%c0_39, %c0_40] : memref<72x8xf32, #tpu.memory_space<vmem>>, vector<72x8xf32>
    %c3 = arith.constant 3 : index
    %c0_41 = arith.constant 0 : index
    %c0_42 = arith.constant 0 : index
    %29 = vector.load %arg2[%c3, %c0_41, %c0_42] : memref<9x4x8xbf16, #tpu.memory_space<vmem>>, vector<1x4x8xbf16>
    %30 = vector.shape_cast %29 : vector<1x4x8xbf16> to vector<4x8xbf16>
    %cst_43 = arith.constant dense<0.000000e+00> : vector<72x8xf32>
    %31 = tpu.matmul %27, %30, %cst_43 {dimension_numbers = #tpu.dot_dimension_numbers<[1], [0], [0], [1], [0, 0, 1, 1], [], []>} : vector<72x4xbf16>, vector<4x8xbf16>, vector<72x8xf32> -> vector<72x8xf32>
    %32 = arith.addf %28, %31 : vector<72x8xf32>
    %c0_44 = arith.constant 0 : index
    %c0_45 = arith.constant 0 : index
    %33 = vector.load %arg10[%c0_44, %c0_45] : memref<72x8xf32, #tpu.memory_space<vmem>>, vector<72x8xf32>
    tpu.vector_store %arg10[%c0_44, %c0_45], %32 {strides = array<i32>} : memref<72x8xf32, #tpu.memory_space<vmem>>, vector<72x8xf32>,
    %c3_46 = arith.constant 3 : index
    %c0_47 = arith.constant 0 : index
    %c0_48 = arith.constant 0 : index
    %c0_49 = arith.constant 0 : index
    %34 = vector.load %arg1[%c3_46, %c0_47, %c0_48, %c0_49] : memref<4x1x82x4xbf16, #tpu.memory_space<vmem>>, vector<1x1x72x4xbf16>
    %35 = vector.shape_cast %34 : vector<1x1x72x4xbf16> to vector<72x4xbf16>
    %c0_50 = arith.constant 0 : index
    %c0_51 = arith.constant 0 : index
    %36 = vector.load %arg10[%c0_50, %c0_51] : memref<72x8xf32, #tpu.memory_space<vmem>>, vector<72x8xf32>
    %c4 = arith.constant 4 : index
    %c0_52 = arith.constant 0 : index
    %c0_53 = arith.constant 0 : index
    %37 = vector.load %arg2[%c4, %c0_52, %c0_53] : memref<9x4x8xbf16, #tpu.memory_space<vmem>>, vector<1x4x8xbf16>
    %38 = vector.shape_cast %37 : vector<1x4x8xbf16> to vector<4x8xbf16>
    %cst_54 = arith.constant dense<0.000000e+00> : vector<72x8xf32>
    %39 = tpu.matmul %35, %38, %cst_54 {dimension_numbers = #tpu.dot_dimension_numbers<[1], [0], [0], [1], [0, 0, 1, 1], [], []>} : vector<72x4xbf16>, vector<4x8xbf16>, vector<72x8xf32> -> vector<72x8xf32>
    %40 = arith.addf %36, %39 : vector<72x8xf32>
    %c0_55 = arith.constant 0 : index
    %c0_56 = arith.constant 0 : index
    %41 = vector.load %arg10[%c0_55, %c0_56] : memref<72x8xf32, #tpu.memory_space<vmem>>, vector<72x8xf32>
    tpu.vector_store %arg10[%c0_55, %c0_56], %40 {strides = array<i32>} : memref<72x8xf32, #tpu.memory_space<vmem>>, vector<72x8xf32>,
    %c0_57 = arith.constant 0 : index
    %c0_58 = arith.constant 0 : index
    %42 = vector.load %arg3[%c0_57, %c0_58] : memref<4x8xbf16, #tpu.memory_space<vmem>>, vector<4x8xbf16>
    %cst_59 = arith.constant dense<0.000000e+00> : vector<72x8xf32>
    %43 = tpu.matmul %35, %42, %cst_59 {dimension_numbers = #tpu.dot_dimension_numbers<[1], [0], [0], [1], [0, 0, 1, 1], [], []>} : vector<72x4xbf16>, vector<4x8xbf16>, vector<72x8xf32> -> vector<72x8xf32>
    %44 = vector.extract_strided_slice %43 {offsets = [0, 0], sizes = [8, 8], strides = [1, 1]} : vector<72x8xf32> to vector<8x8xf32>
    %c0_60 = arith.constant 0 : index
    %c0_61 = arith.constant 0 : index
    %c0_62 = arith.constant 0 : index
    %45 = vector.load %arg7[%c0_60, %c0_61, %c0_62] : memref<1x64x8xf32, #tpu.memory_space<vmem>>, vector<1x8x8xf32>
    %46 = vector.shape_cast %45 : vector<1x8x8xf32> to vector<8x8xf32>
    %47 = vector.shape_cast %44 : vector<8x8xf32> to vector<1x8x8xf32>
    tpu.vector_store %arg7[%c0_60, %c0_61, %c0_62], %47 {strides = array<i32>} : memref<1x64x8xf32, #tpu.memory_space<vmem>>, vector<1x8x8xf32>,
    %48 = vector.extract_strided_slice %43 {offsets = [9, 0], sizes = [8, 8], strides = [1, 1]} : vector<72x8xf32> to vector<8x8xf32>
    %c0_63 = arith.constant 0 : index
    %c8 = arith.constant 8 : index
    %c0_64 = arith.constant 0 : index
    %49 = vector.load %arg7[%c0_63, %c8, %c0_64] : memref<1x64x8xf32, #tpu.memory_space<vmem>>, vector<1x8x8xf32>
    %50 = vector.shape_cast %49 : vector<1x8x8xf32> to vector<8x8xf32>
    %51 = vector.shape_cast %48 : vector<8x8xf32> to vector<1x8x8xf32>
    tpu.vector_store %arg7[%c0_63, %c8, %c0_64], %51 {strides = array<i32>} : memref<1x64x8xf32, #tpu.memory_space<vmem>>, vector<1x8x8xf32>,
    %52 = vector.extract_strided_slice %43 {offsets = [18, 0], sizes = [8, 8], strides = [1, 1]} : vector<72x8xf32> to vector<8x8xf32>
    %c0_65 = arith.constant 0 : index
    %c16 = arith.constant 16 : index
    %c0_66 = arith.constant 0 : index
    %53 = vector.load %arg7[%c0_65, %c16, %c0_66] : memref<1x64x8xf32, #tpu.memory_space<vmem>>, vector<1x8x8xf32>
    %54 = vector.shape_cast %53 : vector<1x8x8xf32> to vector<8x8xf32>
    %55 = vector.shape_cast %52 : vector<8x8xf32> to vector<1x8x8xf32>
    tpu.vector_store %arg7[%c0_65, %c16, %c0_66], %55 {strides = array<i32>} : memref<1x64x8xf32, #tpu.memory_space<vmem>>, vector<1x8x8xf32>,
    %56 = vector.extract_strided_slice %43 {offsets = [27, 0], sizes = [8, 8], strides = [1, 1]} : vector<72x8xf32> to vector<8x8xf32>
    %c0_67 = arith.constant 0 : index
    %c24 = arith.constant 24 : index
    %c0_68 = arith.constant 0 : index
    %57 = vector.load %arg7[%c0_67, %c24, %c0_68] : memref<1x64x8xf32, #tpu.memory_space<vmem>>, vector<1x8x8xf32>
    %58 = vector.shape_cast %57 : vector<1x8x8xf32> to vector<8x8xf32>
    %59 = vector.shape_cast %56 : vector<8x8xf32> to vector<1x8x8xf32>
    tpu.vector_store %arg7[%c0_67, %c24, %c0_68], %59 {strides = array<i32>} : memref<1x64x8xf32, #tpu.memory_space<vmem>>, vector<1x8x8xf32>,
    %60 = vector.extract_strided_slice %43 {offsets = [36, 0], sizes = [8, 8], strides = [1, 1]} : vector<72x8xf32> to vector<8x8xf32>
    %c0_69 = arith.constant 0 : index
    %c32 = arith.constant 32 : index
    %c0_70 = arith.constant 0 : index
    %61 = vector.load %arg7[%c0_69, %c32, %c0_70] : memref<1x64x8xf32, #tpu.memory_space<vmem>>, vector<1x8x8xf32>
    %62 = vector.shape_cast %61 : vector<1x8x8xf32> to vector<8x8xf32>
    %63 = vector.shape_cast %60 : vector<8x8xf32> to vector<1x8x8xf32>
    tpu.vector_store %arg7[%c0_69, %c32, %c0_70], %63 {strides = array<i32>} : memref<1x64x8xf32, #tpu.memory_space<vmem>>, vector<1x8x8xf32>,
    %64 = vector.extract_strided_slice %43 {offsets = [45, 0], sizes = [8, 8], strides = [1, 1]} : vector<72x8xf32> to vector<8x8xf32>
    %c0_71 = arith.constant 0 : index
    %c40 = arith.constant 40 : index
    %c0_72 = arith.constant 0 : index
    %65 = vector.load %arg7[%c0_71, %c40, %c0_72] : memref<1x64x8xf32, #tpu.memory_space<vmem>>, vector<1x8x8xf32>
    %66 = vector.shape_cast %65 : vector<1x8x8xf32> to vector<8x8xf32>
    %67 = vector.shape_cast %64 : vector<8x8xf32> to vector<1x8x8xf32>
    tpu.vector_store %arg7[%c0_71, %c40, %c0_72], %67 {strides = array<i32>} : memref<1x64x8xf32, #tpu.memory_space<vmem>>, vector<1x8x8xf32>,
    %68 = vector.extract_strided_slice %43 {offsets = [54, 0], sizes = [8, 8], strides = [1, 1]} : vector<72x8xf32> to vector<8x8xf32>
    %c0_73 = arith.constant 0 : index
    %c48 = arith.constant 48 : index
    %c0_74 = arith.constant 0 : index
    %69 = vector.load %arg7[%c0_73, %c48, %c0_74] : memref<1x64x8xf32, #tpu.memory_space<vmem>>, vector<1x8x8xf32>
    %70 = vector.shape_cast %69 : vector<1x8x8xf32> to vector<8x8xf32>
    %71 = vector.shape_cast %68 : vector<8x8xf32> to vector<1x8x8xf32>
    tpu.vector_store %arg7[%c0_73, %c48, %c0_74], %71 {strides = array<i32>} : memref<1x64x8xf32, #tpu.memory_space<vmem>>, vector<1x8x8xf32>,
    %72 = vector.extract_strided_slice %43 {offsets = [63, 0], sizes = [8, 8], strides = [1, 1]} : vector<72x8xf32> to vector<8x8xf32>
    %c0_75 = arith.constant 0 : index
    %c56 = arith.constant 56 : index
    %c0_76 = arith.constant 0 : index
    %73 = vector.load %arg7[%c0_75, %c56, %c0_76] : memref<1x64x8xf32, #tpu.memory_space<vmem>>, vector<1x8x8xf32>
    %74 = vector.shape_cast %73 : vector<1x8x8xf32> to vector<8x8xf32>
    %75 = vector.shape_cast %72 : vector<8x8xf32> to vector<1x8x8xf32>
    tpu.vector_store %arg7[%c0_75, %c56, %c0_76], %75 {strides = array<i32>} : memref<1x64x8xf32, #tpu.memory_space<vmem>>, vector<1x8x8xf32>,
    %c0_77 = arith.constant 0 : index
    %c0_78 = arith.constant 0 : index
    %c0_79 = arith.constant 0 : index
    %76 = vector.load %arg7[%c0_77, %c0_78, %c0_79] : memref<1x64x8xf32, #tpu.memory_space<vmem>>, vector<1x64x8xf32>
    %77 = vector.shape_cast %76 : vector<1x64x8xf32> to vector<64x8xf32>
    %cst_80 = arith.constant dense<0.000000e+00> : vector<8xf32>
    %78 = vector.multi_reduction <add>, %77, %cst_80 [0] : vector<64x8xf32> to vector<8xf32>
    %79 = vector.shape_cast %78 : vector<8xf32> to vector<1x8xf32>
    %c0_81 = arith.constant 0 : index
    %c0_82 = arith.constant 0 : index
    %c0_83 = arith.constant 0 : index
    %80 = vector.load %arg8[%c0_81, %c0_82, %c0_83] : memref<1x1x8xf32, #tpu.memory_space<vmem>>, vector<1x1x8xf32>
    %81 = vector.shape_cast %80 : vector<1x1x8xf32> to vector<1x8xf32>
    %82 = vector.shape_cast %79 : vector<1x8xf32> to vector<1x1x8xf32>
    tpu.vector_store %arg8[%c0_81, %c0_82, %c0_83], %82 {strides = array<i32>} : memref<1x1x8xf32, #tpu.memory_space<vmem>>, vector<1x1x8xf32>,
    %83 = arith.mulf %77, %77 : vector<64x8xf32>
    %cst_84 = arith.constant dense<0.000000e+00> : vector<8xf32>
    %84 = vector.multi_reduction <add>, %83, %cst_84 [0] : vector<64x8xf32> to vector<8xf32>
    %85 = vector.shape_cast %84 : vector<8xf32> to vector<1x8xf32>
    %c0_85 = arith.constant 0 : index
    %c0_86 = arith.constant 0 : index
    %c0_87 = arith.constant 0 : index
    %86 = vector.load %arg9[%c0_85, %c0_86, %c0_87] : memref<1x1x8xf32, #tpu.memory_space<vmem>>, vector<1x1x8xf32>
    %87 = vector.shape_cast %86 : vector<1x1x8xf32> to vector<1x8xf32>
    %88 = vector.shape_cast %85 : vector<1x8xf32> to vector<1x1x8xf32>
    tpu.vector_store %arg9[%c0_85, %c0_86, %c0_87], %88 {strides = array<i32>} : memref<1x1x8xf32, #tpu.memory_space<vmem>>, vector<1x1x8xf32>,
    %c2_88 = arith.constant 2 : index
    %c0_89 = arith.constant 0 : index
    %c1_90 = arith.constant 1 : index
    %c0_91 = arith.constant 0 : index
    %89 = vector.load %arg1[%c2_88, %c0_89, %c1_90, %c0_91] : memref<4x1x82x4xbf16, #tpu.memory_space<vmem>>, vector<1x1x72x4xbf16>
    %90 = vector.shape_cast %89 : vector<1x1x72x4xbf16> to vector<72x4xbf16>
    %c0_92 = arith.constant 0 : index
    %c0_93 = arith.constant 0 : index
    %91 = vector.load %arg10[%c0_92, %c0_93] : memref<72x8xf32, #tpu.memory_space<vmem>>, vector<72x8xf32>
    %c5 = arith.constant 5 : index
    %c0_94 = arith.constant 0 : index
    %c0_95 = arith.constant 0 : index
    %92 = vector.load %arg2[%c5, %c0_94, %c0_95] : memref<9x4x8xbf16, #tpu.memory_space<vmem>>, vector<1x4x8xbf16>
    %93 = vector.shape_cast %92 : vector<1x4x8xbf16> to vector<4x8xbf16>
    %cst_96 = arith.constant dense<0.000000e+00> : vector<72x8xf32>
    %94 = tpu.matmul %90, %93, %cst_96 {dimension_numbers = #tpu.dot_dimension_numbers<[1], [0], [0], [1], [0, 0, 1, 1], [], []>} : vector<72x4xbf16>, vector<4x8xbf16>, vector<72x8xf32> -> vector<72x8xf32>
    %95 = arith.addf %91, %94 : vector<72x8xf32>
    %c0_97 = arith.constant 0 : index
    %c0_98 = arith.constant 0 : index
    %96 = vector.load %arg10[%c0_97, %c0_98] : memref<72x8xf32, #tpu.memory_space<vmem>>, vector<72x8xf32>
    tpu.vector_store %arg10[%c0_97, %c0_98], %95 {strides = array<i32>} : memref<72x8xf32, #tpu.memory_space<vmem>>, vector<72x8xf32>,
    %c0_99 = arith.constant 0 : index
    %c0_100 = arith.constant 0 : index
    %c9 = arith.constant 9 : index
    %c0_101 = arith.constant 0 : index
    %97 = vector.load %arg1[%c0_99, %c0_100, %c9, %c0_101] : memref<4x1x82x4xbf16, #tpu.memory_space<vmem>>, vector<1x1x72x4xbf16>
    %98 = vector.shape_cast %97 : vector<1x1x72x4xbf16> to vector<72x4xbf16>
    %c0_102 = arith.constant 0 : index
    %c0_103 = arith.constant 0 : index
    %99 = vector.load %arg10[%c0_102, %c0_103] : memref<72x8xf32, #tpu.memory_space<vmem>>, vector<72x8xf32>
    %c6 = arith.constant 6 : index
    %c0_104 = arith.constant 0 : index
    %c0_105 = arith.constant 0 : index
    %100 = vector.load %arg2[%c6, %c0_104, %c0_105] : memref<9x4x8xbf16, #tpu.memory_space<vmem>>, vector<1x4x8xbf16>
    %101 = vector.shape_cast %100 : vector<1x4x8xbf16> to vector<4x8xbf16>
    %cst_106 = arith.constant dense<0.000000e+00> : vector<72x8xf32>
    %102 = tpu.matmul %98, %101, %cst_106 {dimension_numbers = #tpu.dot_dimension_numbers<[1], [0], [0], [1], [0, 0, 1, 1], [], []>} : vector<72x4xbf16>, vector<4x8xbf16>, vector<72x8xf32> -> vector<72x8xf32>
    %103 = arith.addf %99, %102 : vector<72x8xf32>
    %c0_107 = arith.constant 0 : index
    %c0_108 = arith.constant 0 : index
    %104 = vector.load %arg10[%c0_107, %c0_108] : memref<72x8xf32, #tpu.memory_space<vmem>>, vector<72x8xf32>
    tpu.vector_store %arg10[%c0_107, %c0_108], %103 {strides = array<i32>} : memref<72x8xf32, #tpu.memory_space<vmem>>, vector<72x8xf32>,
    %c1_109 = arith.constant 1 : index
    %c0_110 = arith.constant 0 : index
    %c9_111 = arith.constant 9 : index
    %c0_112 = arith.constant 0 : index
    %105 = vector.load %arg1[%c1_109, %c0_110, %c9_111, %c0_112] : memref<4x1x82x4xbf16, #tpu.memory_space<vmem>>, vector<1x1x72x4xbf16>
    %106 = vector.shape_cast %105 : vector<1x1x72x4xbf16> to vector<72x4xbf16>
    %c0_113 = arith.constant 0 : index
    %c0_114 = arith.constant 0 : index
    %107 = vector.load %arg10[%c0_113, %c0_114] : memref<72x8xf32, #tpu.memory_space<vmem>>, vector<72x8xf32>
    %c7 = arith.constant 7 : index
    %c0_115 = arith.constant 0 : index
    %c0_116 = arith.constant 0 : index
    %108 = vector.load %arg2[%c7, %c0_115, %c0_116] : memref<9x4x8xbf16, #tpu.memory_space<vmem>>, vector<1x4x8xbf16>
    %109 = vector.shape_cast %108 : vector<1x4x8xbf16> to vector<4x8xbf16>
    %cst_117 = arith.constant dense<0.000000e+00> : vector<72x8xf32>
    %110 = tpu.matmul %106, %109, %cst_117 {dimension_numbers = #tpu.dot_dimension_numbers<[1], [0], [0], [1], [0, 0, 1, 1], [], []>} : vector<72x4xbf16>, vector<4x8xbf16>, vector<72x8xf32> -> vector<72x8xf32>
    %111 = arith.addf %107, %110 : vector<72x8xf32>
    %c0_118 = arith.constant 0 : index
    %c0_119 = arith.constant 0 : index
    %112 = vector.load %arg10[%c0_118, %c0_119] : memref<72x8xf32, #tpu.memory_space<vmem>>, vector<72x8xf32>
    tpu.vector_store %arg10[%c0_118, %c0_119], %111 {strides = array<i32>} : memref<72x8xf32, #tpu.memory_space<vmem>>, vector<72x8xf32>,
    %c0_120 = arith.constant 0 : index
    %c0_121 = arith.constant 0 : index
    %c10 = arith.constant 10 : index
    %c0_122 = arith.constant 0 : index
    %113 = vector.load %arg1[%c0_120, %c0_121, %c10, %c0_122] : memref<4x1x82x4xbf16, #tpu.memory_space<vmem>>, vector<1x1x72x4xbf16>
    %114 = vector.shape_cast %113 : vector<1x1x72x4xbf16> to vector<72x4xbf16>
    %c0_123 = arith.constant 0 : index
    %c0_124 = arith.constant 0 : index
    %115 = vector.load %arg10[%c0_123, %c0_124] : memref<72x8xf32, #tpu.memory_space<vmem>>, vector<72x8xf32>
    %c8_125 = arith.constant 8 : index
    %c0_126 = arith.constant 0 : index
    %c0_127 = arith.constant 0 : index
    %116 = vector.load %arg2[%c8_125, %c0_126, %c0_127] : memref<9x4x8xbf16, #tpu.memory_space<vmem>>, vector<1x4x8xbf16>
    %117 = vector.shape_cast %116 : vector<1x4x8xbf16> to vector<4x8xbf16>
    %cst_128 = arith.constant dense<0.000000e+00> : vector<72x8xf32>
    %118 = tpu.matmul %114, %117, %cst_128 {dimension_numbers = #tpu.dot_dimension_numbers<[1], [0], [0], [1], [0, 0, 1, 1], [], []>} : vector<72x4xbf16>, vector<4x8xbf16>, vector<72x8xf32> -> vector<72x8xf32>
    %119 = arith.addf %115, %118 : vector<72x8xf32>
    %c0_129 = arith.constant 0 : index
    %c0_130 = arith.constant 0 : index
    %120 = vector.load %arg10[%c0_129, %c0_130] : memref<72x8xf32, #tpu.memory_space<vmem>>, vector<72x8xf32>
    tpu.vector_store %arg10[%c0_129, %c0_130], %119 {strides = array<i32>} : memref<72x8xf32, #tpu.memory_space<vmem>>, vector<72x8xf32>,
    %c0_131 = arith.constant 0 : index
    %c0_132 = arith.constant 0 : index
    %121 = vector.load %arg10[%c0_131, %c0_132] : memref<72x8xf32, #tpu.memory_space<vmem>>, vector<72x8xf32>
    %122 = vector.extract_strided_slice %121 {offsets = [0, 0], sizes = [8, 8], strides = [1, 1]} : vector<72x8xf32> to vector<8x8xf32>
    %c0_133 = arith.constant 0 : index
    %c0_134 = arith.constant 0 : index
    %c0_135 = arith.constant 0 : index
    %123 = vector.load %arg4[%c0_133, %c0_134, %c0_135] : memref<1x64x8xf32, #tpu.memory_space<vmem>>, vector<1x8x8xf32>
    %124 = vector.shape_cast %123 : vector<1x8x8xf32> to vector<8x8xf32>
    %125 = vector.shape_cast %122 : vector<8x8xf32> to vector<1x8x8xf32>
    tpu.vector_store %arg4[%c0_133, %c0_134, %c0_135], %125 {strides = array<i32>} : memref<1x64x8xf32, #tpu.memory_space<vmem>>, vector<1x8x8xf32>,
    %126 = vector.extract_strided_slice %121 {offsets = [9, 0], sizes = [8, 8], strides = [1, 1]} : vector<72x8xf32> to vector<8x8xf32>
    %c0_136 = arith.constant 0 : index
    %c8_137 = arith.constant 8 : index
    %c0_138 = arith.constant 0 : index
    %127 = vector.load %arg4[%c0_136, %c8_137, %c0_138] : memref<1x64x8xf32, #tpu.memory_space<vmem>>, vector<1x8x8xf32>
    %128 = vector.shape_cast %127 : vector<1x8x8xf32> to vector<8x8xf32>
    %129 = vector.shape_cast %126 : vector<8x8xf32> to vector<1x8x8xf32>
    tpu.vector_store %arg4[%c0_136, %c8_137, %c0_138], %129 {strides = array<i32>} : memref<1x64x8xf32, #tpu.memory_space<vmem>>, vector<1x8x8xf32>,
    %130 = vector.extract_strided_slice %121 {offsets = [18, 0], sizes = [8, 8], strides = [1, 1]} : vector<72x8xf32> to vector<8x8xf32>
    %c0_139 = arith.constant 0 : index
    %c16_140 = arith.constant 16 : index
    %c0_141 = arith.constant 0 : index
    %131 = vector.load %arg4[%c0_139, %c16_140, %c0_141] : memref<1x64x8xf32, #tpu.memory_space<vmem>>, vector<1x8x8xf32>
    %132 = vector.shape_cast %131 : vector<1x8x8xf32> to vector<8x8xf32>
    %133 = vector.shape_cast %130 : vector<8x8xf32> to vector<1x8x8xf32>
    tpu.vector_store %arg4[%c0_139, %c16_140, %c0_141], %133 {strides = array<i32>} : memref<1x64x8xf32, #tpu.memory_space<vmem>>, vector<1x8x8xf32>,
    %134 = vector.extract_strided_slice %121 {offsets = [27, 0], sizes = [8, 8], strides = [1, 1]} : vector<72x8xf32> to vector<8x8xf32>
    %c0_142 = arith.constant 0 : index
    %c24_143 = arith.constant 24 : index
    %c0_144 = arith.constant 0 : index
    %135 = vector.load %arg4[%c0_142, %c24_143, %c0_144] : memref<1x64x8xf32, #tpu.memory_space<vmem>>, vector<1x8x8xf32>
    %136 = vector.shape_cast %135 : vector<1x8x8xf32> to vector<8x8xf32>
    %137 = vector.shape_cast %134 : vector<8x8xf32> to vector<1x8x8xf32>
    tpu.vector_store %arg4[%c0_142, %c24_143, %c0_144], %137 {strides = array<i32>} : memref<1x64x8xf32, #tpu.memory_space<vmem>>, vector<1x8x8xf32>,
    %138 = vector.extract_strided_slice %121 {offsets = [36, 0], sizes = [8, 8], strides = [1, 1]} : vector<72x8xf32> to vector<8x8xf32>
    %c0_145 = arith.constant 0 : index
    %c32_146 = arith.constant 32 : index
    %c0_147 = arith.constant 0 : index
    %139 = vector.load %arg4[%c0_145, %c32_146, %c0_147] : memref<1x64x8xf32, #tpu.memory_space<vmem>>, vector<1x8x8xf32>
    %140 = vector.shape_cast %139 : vector<1x8x8xf32> to vector<8x8xf32>
    %141 = vector.shape_cast %138 : vector<8x8xf32> to vector<1x8x8xf32>
    tpu.vector_store %arg4[%c0_145, %c32_146, %c0_147], %141 {strides = array<i32>} : memref<1x64x8xf32, #tpu.memory_space<vmem>>, vector<1x8x8xf32>,
    %142 = vector.extract_strided_slice %121 {offsets = [45, 0], sizes = [8, 8], strides = [1, 1]} : vector<72x8xf32> to vector<8x8xf32>
    %c0_148 = arith.constant 0 : index
    %c40_149 = arith.constant 40 : index
    %c0_150 = arith.constant 0 : index
    %143 = vector.load %arg4[%c0_148, %c40_149, %c0_150] : memref<1x64x8xf32, #tpu.memory_space<vmem>>, vector<1x8x8xf32>
    %144 = vector.shape_cast %143 : vector<1x8x8xf32> to vector<8x8xf32>
    %145 = vector.shape_cast %142 : vector<8x8xf32> to vector<1x8x8xf32>
    tpu.vector_store %arg4[%c0_148, %c40_149, %c0_150], %145 {strides = array<i32>} : memref<1x64x8xf32, #tpu.memory_space<vmem>>, vector<1x8x8xf32>,
    %146 = vector.extract_strided_slice %121 {offsets = [54, 0], sizes = [8, 8], strides = [1, 1]} : vector<72x8xf32> to vector<8x8xf32>
    %c0_151 = arith.constant 0 : index
    %c48_152 = arith.constant 48 : index
    %c0_153 = arith.constant 0 : index
    %147 = vector.load %arg4[%c0_151, %c48_152, %c0_153] : memref<1x64x8xf32, #tpu.memory_space<vmem>>, vector<1x8x8xf32>
    %148 = vector.shape_cast %147 : vector<1x8x8xf32> to vector<8x8xf32>
    %149 = vector.shape_cast %146 : vector<8x8xf32> to vector<1x8x8xf32>
    tpu.vector_store %arg4[%c0_151, %c48_152, %c0_153], %149 {strides = array<i32>} : memref<1x64x8xf32, #tpu.memory_space<vmem>>, vector<1x8x8xf32>,
    %150 = vector.extract_strided_slice %121 {offsets = [63, 0], sizes = [8, 8], strides = [1, 1]} : vector<72x8xf32> to vector<8x8xf32>
    %c0_154 = arith.constant 0 : index
    %c56_155 = arith.constant 56 : index
    %c0_156 = arith.constant 0 : index
    %151 = vector.load %arg4[%c0_154, %c56_155, %c0_156] : memref<1x64x8xf32, #tpu.memory_space<vmem>>, vector<1x8x8xf32>
    %152 = vector.shape_cast %151 : vector<1x8x8xf32> to vector<8x8xf32>
    %153 = vector.shape_cast %150 : vector<8x8xf32> to vector<1x8x8xf32>
    tpu.vector_store %arg4[%c0_154, %c56_155, %c0_156], %153 {strides = array<i32>} : memref<1x64x8xf32, #tpu.memory_space<vmem>>, vector<1x8x8xf32>,
    %c0_157 = arith.constant 0 : index
    %c0_158 = arith.constant 0 : index
    %c0_159 = arith.constant 0 : index
    %154 = vector.load %arg4[%c0_157, %c0_158, %c0_159] : memref<1x64x8xf32, #tpu.memory_space<vmem>>, vector<1x64x8xf32>
    %155 = vector.shape_cast %154 : vector<1x64x8xf32> to vector<64x8xf32>
    %cst_160 = arith.constant dense<0.000000e+00> : vector<8xf32>
    %156 = vector.multi_reduction <add>, %155, %cst_160 [0] : vector<64x8xf32> to vector<8xf32>
    %157 = vector.shape_cast %156 : vector<8xf32> to vector<1x8xf32>
    %c0_161 = arith.constant 0 : index
    %c0_162 = arith.constant 0 : index
    %c0_163 = arith.constant 0 : index
    %158 = vector.load %arg5[%c0_161, %c0_162, %c0_163] : memref<1x1x8xf32, #tpu.memory_space<vmem>>, vector<1x1x8xf32>
    %159 = vector.shape_cast %158 : vector<1x1x8xf32> to vector<1x8xf32>
    %160 = vector.shape_cast %157 : vector<1x8xf32> to vector<1x1x8xf32>
    tpu.vector_store %arg5[%c0_161, %c0_162, %c0_163], %160 {strides = array<i32>} : memref<1x1x8xf32, #tpu.memory_space<vmem>>, vector<1x1x8xf32>,
    %161 = arith.mulf %155, %155 : vector<64x8xf32>
    %cst_164 = arith.constant dense<0.000000e+00> : vector<8xf32>
    %162 = vector.multi_reduction <add>, %161, %cst_164 [0] : vector<64x8xf32> to vector<8xf32>
    %163 = vector.shape_cast %162 : vector<8xf32> to vector<1x8xf32>
    %c0_165 = arith.constant 0 : index
    %c0_166 = arith.constant 0 : index
    %c0_167 = arith.constant 0 : index
    %164 = vector.load %arg6[%c0_165, %c0_166, %c0_167] : memref<1x1x8xf32, #tpu.memory_space<vmem>>, vector<1x1x8xf32>
    %165 = vector.shape_cast %164 : vector<1x1x8xf32> to vector<1x8xf32>
    %166 = vector.shape_cast %163 : vector<1x8xf32> to vector<1x1x8xf32>
    tpu.vector_store %arg6[%c0_165, %c0_166, %c0_167], %166 {strides = array<i32>} : memref<1x1x8xf32, #tpu.memory_space<vmem>>, vector<1x1x8xf32>,
    return
  }
  func.func @transform_0(%arg0: i32) -> (i32, i32, i32, i32) {
    %c0_i32 = arith.constant 0 : i32
    %c0_i32_0 = arith.constant 0 : i32
    %c0_i32_1 = arith.constant 0 : i32
    %c0_i32_2 = arith.constant 0 : i32
    return %c0_i32, %arg0, %c0_i32_0, %c0_i32_1 : i32, i32, i32, i32
  }
  func.func @transform_1(%arg0: i32) -> (i32, i32, i32) {
    %c0_i32 = arith.constant 0 : i32
    %c0_i32_0 = arith.constant 0 : i32
    %c0_i32_1 = arith.constant 0 : i32
    %c0_i32_2 = arith.constant 0 : i32
    return %c0_i32, %c0_i32_0, %c0_i32_1 : i32, i32, i32
  }
  func.func @transform_2(%arg0: i32) -> (i32, i32) {
    %c0_i32 = arith.constant 0 : i32
    %c0_i32_0 = arith.constant 0 : i32
    %c0_i32_1 = arith.constant 0 : i32
    return %c0_i32, %c0_i32_0 : i32, i32
  }
  func.func @transform_3(%arg0: i32) -> (i32, i32, i32) {
    %c0_i32 = arith.constant 0 : i32
    %c0_i32_0 = arith.constant 0 : i32
    %c0_i32_1 = arith.constant 0 : i32
    return %arg0, %c0_i32, %c0_i32_0 : i32, i32, i32
  }
  func.func @transform_4(%arg0: i32) -> (i32, i32, i32) {
    %c0_i32 = arith.constant 0 : i32
    %c0_i32_0 = arith.constant 0 : i32
    %c0_i32_1 = arith.constant 0 : i32
    return %arg0, %c0_i32, %c0_i32_0 : i32, i32, i32
  }
  func.func @transform_5(%arg0: i32) -> (i32, i32, i32) {
    %c0_i32 = arith.constant 0 : i32
    %c0_i32_0 = arith.constant 0 : i32
    %c0_i32_1 = arith.constant 0 : i32
    return %arg0, %c0_i32, %c0_i32_0 : i32, i32, i32
  }
  func.func @transform_6(%arg0: i32) -> (i32, i32, i32) {
    %c0_i32 = arith.constant 0 : i32
    %c0_i32_0 = arith.constant 0 : i32
    %c0_i32_1 = arith.constant 0 : i32
    return %arg0, %c0_i32, %c0_i32_0 : i32, i32, i32
  }
  func.func @transform_7(%arg0: i32) -> (i32, i32, i32) {
    %c0_i32 = arith.constant 0 : i32
    %c0_i32_0 = arith.constant 0 : i32
    %c0_i32_1 = arith.constant 0 : i32
    return %arg0, %c0_i32, %c0_i32_0 : i32, i32, i32
  }
  func.func @transform_8(%arg0: i32) -> (i32, i32, i32) {
    %c0_i32 = arith.constant 0 : i32
    %c0_i32_0 = arith.constant 0 : i32
    %c0_i32_1 = arith.constant 0 : i32
    return %arg0, %c0_i32, %c0_i32_0 : i32, i32, i32
  }
}

module attributes {stable_mosaic.version = 11 : i64} {
  func.func @_bn_add_relu_kernel(%arg0: i32, %arg1: memref<1x64x8xf32, #tpu.memory_space<vmem>>, %arg2: memref<1x64x8xf32, #tpu.memory_space<vmem>>, %arg3: memref<1x8xf32, #tpu.memory_space<vmem>>, %arg4: memref<1x8xf32, #tpu.memory_space<vmem>>, %arg5: memref<1x8xf32, #tpu.memory_space<vmem>>, %arg6: memref<1x8xf32, #tpu.memory_space<vmem>>, %arg7: memref<1x64x8xf32, #tpu.memory_space<vmem>>) attributes {dimension_semantics = [#tpu.dimension_semantics<parallel>], iteration_bounds = array<i64: 2>, scalar_prefetch = 0 : i64, scratch_operands = 0 : i64, tpu.core_type = #tpu.core_type<tc>, window_params = [{transform_indices = @transform_0, window_bounds = array<i64: 1, 64, 8>}, {transform_indices = @transform_1, window_bounds = array<i64: 1, 64, 8>}, {pipeline_mode = #tpu.pipeline_mode<synchronous>, transform_indices = @transform_2, window_bounds = array<i64: 1, 8>}, {pipeline_mode = #tpu.pipeline_mode<synchronous>, transform_indices = @transform_3, window_bounds = array<i64: 1, 8>}, {pipeline_mode = #tpu.pipeline_mode<synchronous>, transform_indices = @transform_4, window_bounds = array<i64: 1, 8>}, {pipeline_mode = #tpu.pipeline_mode<synchronous>, transform_indices = @transform_5, window_bounds = array<i64: 1, 8>}, {transform_indices = @transform_6, window_bounds = array<i64: 1, 64, 8>}]} {
    %c0 = arith.constant 0 : index
    %c0_0 = arith.constant 0 : index
    %c0_1 = arith.constant 0 : index
    %0 = vector.load %arg1[%c0, %c0_0, %c0_1] : memref<1x64x8xf32, #tpu.memory_space<vmem>>, vector<1x64x8xf32>
    %1 = vector.shape_cast %0 : vector<1x64x8xf32> to vector<64x8xf32>
    %c0_2 = arith.constant 0 : index
    %c0_3 = arith.constant 0 : index
    %2 = vector.load %arg3[%c0_2, %c0_3] : memref<1x8xf32, #tpu.memory_space<vmem>>, vector<1x8xf32>
    %3 = vector.broadcast %2 : vector<1x8xf32> to vector<64x8xf32>
    %4 = arith.mulf %1, %3 : vector<64x8xf32>
    %c0_4 = arith.constant 0 : index
    %c0_5 = arith.constant 0 : index
    %5 = vector.load %arg4[%c0_4, %c0_5] : memref<1x8xf32, #tpu.memory_space<vmem>>, vector<1x8xf32>
    %6 = vector.broadcast %5 : vector<1x8xf32> to vector<64x8xf32>
    %7 = arith.addf %4, %6 : vector<64x8xf32>
    %c0_6 = arith.constant 0 : index
    %c0_7 = arith.constant 0 : index
    %c0_8 = arith.constant 0 : index
    %8 = vector.load %arg2[%c0_6, %c0_7, %c0_8] : memref<1x64x8xf32, #tpu.memory_space<vmem>>, vector<1x64x8xf32>
    %9 = vector.shape_cast %8 : vector<1x64x8xf32> to vector<64x8xf32>
    %c0_9 = arith.constant 0 : index
    %c0_10 = arith.constant 0 : index
    %10 = vector.load %arg5[%c0_9, %c0_10] : memref<1x8xf32, #tpu.memory_space<vmem>>, vector<1x8xf32>
    %11 = vector.broadcast %10 : vector<1x8xf32> to vector<64x8xf32>
    %12 = arith.mulf %9, %11 : vector<64x8xf32>
    %13 = arith.addf %7, %12 : vector<64x8xf32>
    %c0_11 = arith.constant 0 : index
    %c0_12 = arith.constant 0 : index
    %14 = vector.load %arg6[%c0_11, %c0_12] : memref<1x8xf32, #tpu.memory_space<vmem>>, vector<1x8xf32>
    %15 = vector.broadcast %14 : vector<1x8xf32> to vector<64x8xf32>
    %16 = arith.addf %13, %15 : vector<64x8xf32>
    %cst = arith.constant 0.000000e+00 : f32
    %17 = vector.broadcast %cst : f32 to vector<64x8xf32>
    %18 = arith.maximumf %16, %17 : vector<64x8xf32>
    %c0_13 = arith.constant 0 : index
    %c0_14 = arith.constant 0 : index
    %c0_15 = arith.constant 0 : index
    %19 = vector.load %arg7[%c0_13, %c0_14, %c0_15] : memref<1x64x8xf32, #tpu.memory_space<vmem>>, vector<1x64x8xf32>
    %20 = vector.shape_cast %19 : vector<1x64x8xf32> to vector<64x8xf32>
    %21 = vector.shape_cast %18 : vector<64x8xf32> to vector<1x64x8xf32>
    tpu.vector_store %arg7[%c0_13, %c0_14, %c0_15], %21 {strides = array<i32>} : memref<1x64x8xf32, #tpu.memory_space<vmem>>, vector<1x64x8xf32>,
    return
  }
  func.func @transform_0(%arg0: i32) -> (i32, i32, i32) {
    %c0_i32 = arith.constant 0 : i32
    %c0_i32_0 = arith.constant 0 : i32
    %c0_i32_1 = arith.constant 0 : i32
    return %arg0, %c0_i32, %c0_i32_0 : i32, i32, i32
  }
  func.func @transform_1(%arg0: i32) -> (i32, i32, i32) {
    %c0_i32 = arith.constant 0 : i32
    %c0_i32_0 = arith.constant 0 : i32
    %c0_i32_1 = arith.constant 0 : i32
    return %arg0, %c0_i32, %c0_i32_0 : i32, i32, i32
  }
  func.func @transform_2(%arg0: i32) -> (i32, i32) {
    %c0_i32 = arith.constant 0 : i32
    %c0_i32_0 = arith.constant 0 : i32
    %c0_i32_1 = arith.constant 0 : i32
    return %c0_i32, %c0_i32_0 : i32, i32
  }
  func.func @transform_3(%arg0: i32) -> (i32, i32) {
    %c0_i32 = arith.constant 0 : i32
    %c0_i32_0 = arith.constant 0 : i32
    %c0_i32_1 = arith.constant 0 : i32
    return %c0_i32, %c0_i32_0 : i32, i32
  }
  func.func @transform_4(%arg0: i32) -> (i32, i32) {
    %c0_i32 = arith.constant 0 : i32
    %c0_i32_0 = arith.constant 0 : i32
    %c0_i32_1 = arith.constant 0 : i32
    return %c0_i32, %c0_i32_0 : i32, i32
  }
  func.func @transform_5(%arg0: i32) -> (i32, i32) {
    %c0_i32 = arith.constant 0 : i32
    %c0_i32_0 = arith.constant 0 : i32
    %c0_i32_1 = arith.constant 0 : i32
    return %c0_i32, %c0_i32_0 : i32, i32
  }
  func.func @transform_6(%arg0: i32) -> (i32, i32, i32) {
    %c0_i32 = arith.constant 0 : i32
    %c0_i32_0 = arith.constant 0 : i32
    %c0_i32_1 = arith.constant 0 : i32
    return %arg0, %c0_i32, %c0_i32_0 : i32, i32, i32
  }
}

module attributes {stable_mosaic.version = 11 : i64} {
  func.func @_conv_kernel(%arg0: i32, %arg1: memref<1x1x102x8xf32, #tpu.memory_space<vmem>>, %arg2: memref<9x8x8xbf16, #tpu.memory_space<vmem>>, %arg3: memref<1x8xf32, #tpu.memory_space<vmem>>, %arg4: memref<1x8xf32, #tpu.memory_space<vmem>>, %arg5: memref<102x1xf32, #tpu.memory_space<vmem>>, %arg6: memref<1x64x8xf32, #tpu.memory_space<vmem>>, %arg7: memref<1x1x8xf32, #tpu.memory_space<vmem>>, %arg8: memref<1x1x8xf32, #tpu.memory_space<vmem>>, %arg9: memref<80x8xf32, #tpu.memory_space<vmem>>, %arg10: memref<102x8xbf16, #tpu.memory_space<vmem>>) attributes {dimension_semantics = [#tpu.dimension_semantics<parallel>], iteration_bounds = array<i64: 2>, scalar_prefetch = 0 : i64, scratch_operands = 2 : i64, tpu.core_type = #tpu.core_type<tc>, window_params = [{transform_indices = @transform_0, window_bounds = array<i64: 1, 1, 102, 8>}, {pipeline_mode = #tpu.pipeline_mode<synchronous>, transform_indices = @transform_1, window_bounds = array<i64: 9, 8, 8>}, {pipeline_mode = #tpu.pipeline_mode<synchronous>, transform_indices = @transform_2, window_bounds = array<i64: 1, 8>}, {pipeline_mode = #tpu.pipeline_mode<synchronous>, transform_indices = @transform_3, window_bounds = array<i64: 1, 8>}, {pipeline_mode = #tpu.pipeline_mode<synchronous>, transform_indices = @transform_4, window_bounds = array<i64: 102, 1>}, {transform_indices = @transform_5, window_bounds = array<i64: 1, 64, 8>}, {transform_indices = @transform_6, window_bounds = array<i64: 1, 1, 8>}, {transform_indices = @transform_7, window_bounds = array<i64: 1, 1, 8>}]} {
    %c0 = arith.constant 0 : index
    %c0_0 = arith.constant 0 : index
    %c0_1 = arith.constant 0 : index
    %c0_2 = arith.constant 0 : index
    %0 = vector.load %arg1[%c0, %c0_0, %c0_1, %c0_2] : memref<1x1x102x8xf32, #tpu.memory_space<vmem>>, vector<1x1x102x8xf32>
    %1 = vector.shape_cast %0 : vector<1x1x102x8xf32> to vector<102x8xf32>
    %c0_3 = arith.constant 0 : index
    %c0_4 = arith.constant 0 : index
    %2 = vector.load %arg3[%c0_3, %c0_4] : memref<1x8xf32, #tpu.memory_space<vmem>>, vector<1x8xf32>
    %3 = vector.broadcast %2 : vector<1x8xf32> to vector<102x8xf32>
    %4 = arith.mulf %1, %3 : vector<102x8xf32>
    %c0_5 = arith.constant 0 : index
    %c0_6 = arith.constant 0 : index
    %5 = vector.load %arg4[%c0_5, %c0_6] : memref<1x8xf32, #tpu.memory_space<vmem>>, vector<1x8xf32>
    %6 = vector.broadcast %5 : vector<1x8xf32> to vector<102x8xf32>
    %7 = arith.addf %4, %6 : vector<102x8xf32>
    %cst = arith.constant 0.000000e+00 : f32
    %8 = vector.broadcast %cst : f32 to vector<102x8xf32>
    %9 = arith.maximumf %7, %8 : vector<102x8xf32>
    %c0_7 = arith.constant 0 : index
    %c0_8 = arith.constant 0 : index
    %10 = vector.load %arg5[%c0_7, %c0_8] : memref<102x1xf32, #tpu.memory_space<vmem>>, vector<102x1xf32>
    %11 = vector.broadcast %10 : vector<102x1xf32> to vector<102x8xf32>
    %12 = arith.mulf %9, %11 : vector<102x8xf32>
    %13 = arith.truncf %12 : vector<102x8xf32> to vector<102x8xbf16>
    %c0_9 = arith.constant 0 : index
    %c0_10 = arith.constant 0 : index
    %14 = vector.load %arg10[%c0_9, %c0_10] : memref<102x8xbf16, #tpu.memory_space<vmem>>, vector<102x8xbf16>
    tpu.vector_store %arg10[%c0_9, %c0_10], %13 {strides = array<i32>} : memref<102x8xbf16, #tpu.memory_space<vmem>>, vector<102x8xbf16>,
    %cst_11 = arith.constant 0.000000e+00 : f32
    %15 = vector.broadcast %cst_11 : f32 to vector<80x8xf32>
    %c0_12 = arith.constant 0 : index
    %c0_13 = arith.constant 0 : index
    %16 = vector.load %arg9[%c0_12, %c0_13] : memref<80x8xf32, #tpu.memory_space<vmem>>, vector<80x8xf32>
    tpu.vector_store %arg9[%c0_12, %c0_13], %15 {strides = array<i32>} : memref<80x8xf32, #tpu.memory_space<vmem>>, vector<80x8xf32>,
    %c0_14 = arith.constant 0 : index
    %c0_15 = arith.constant 0 : index
    %17 = vector.load %arg10[%c0_14, %c0_15] : memref<102x8xbf16, #tpu.memory_space<vmem>>, vector<80x8xbf16>
    %c0_16 = arith.constant 0 : index
    %c0_17 = arith.constant 0 : index
    %18 = vector.load %arg9[%c0_16, %c0_17] : memref<80x8xf32, #tpu.memory_space<vmem>>, vector<80x8xf32>
    %c0_18 = arith.constant 0 : index
    %c0_19 = arith.constant 0 : index
    %c0_20 = arith.constant 0 : index
    %19 = vector.load %arg2[%c0_18, %c0_19, %c0_20] : memref<9x8x8xbf16, #tpu.memory_space<vmem>>, vector<1x8x8xbf16>
    %20 = vector.shape_cast %19 : vector<1x8x8xbf16> to vector<8x8xbf16>
    %cst_21 = arith.constant dense<0.000000e+00> : vector<80x8xf32>
    %21 = tpu.matmul %17, %20, %cst_21 {dimension_numbers = #tpu.dot_dimension_numbers<[1], [0], [0], [1], [0, 0, 1, 1], [], []>} : vector<80x8xbf16>, vector<8x8xbf16>, vector<80x8xf32> -> vector<80x8xf32>
    %22 = arith.addf %18, %21 : vector<80x8xf32>
    %c0_22 = arith.constant 0 : index
    %c0_23 = arith.constant 0 : index
    %23 = vector.load %arg9[%c0_22, %c0_23] : memref<80x8xf32, #tpu.memory_space<vmem>>, vector<80x8xf32>
    tpu.vector_store %arg9[%c0_22, %c0_23], %22 {strides = array<i32>} : memref<80x8xf32, #tpu.memory_space<vmem>>, vector<80x8xf32>,
    %c1 = arith.constant 1 : index
    %c0_24 = arith.constant 0 : index
    %24 = vector.load %arg10[%c1, %c0_24] : memref<102x8xbf16, #tpu.memory_space<vmem>>, vector<80x8xbf16>
    %c0_25 = arith.constant 0 : index
    %c0_26 = arith.constant 0 : index
    %25 = vector.load %arg9[%c0_25, %c0_26] : memref<80x8xf32, #tpu.memory_space<vmem>>, vector<80x8xf32>
    %c1_27 = arith.constant 1 : index
    %c0_28 = arith.constant 0 : index
    %c0_29 = arith.constant 0 : index
    %26 = vector.load %arg2[%c1_27, %c0_28, %c0_29] : memref<9x8x8xbf16, #tpu.memory_space<vmem>>, vector<1x8x8xbf16>
    %27 = vector.shape_cast %26 : vector<1x8x8xbf16> to vector<8x8xbf16>
    %cst_30 = arith.constant dense<0.000000e+00> : vector<80x8xf32>
    %28 = tpu.matmul %24, %27, %cst_30 {dimension_numbers = #tpu.dot_dimension_numbers<[1], [0], [0], [1], [0, 0, 1, 1], [], []>} : vector<80x8xbf16>, vector<8x8xbf16>, vector<80x8xf32> -> vector<80x8xf32>
    %29 = arith.addf %25, %28 : vector<80x8xf32>
    %c0_31 = arith.constant 0 : index
    %c0_32 = arith.constant 0 : index
    %30 = vector.load %arg9[%c0_31, %c0_32] : memref<80x8xf32, #tpu.memory_space<vmem>>, vector<80x8xf32>
    tpu.vector_store %arg9[%c0_31, %c0_32], %29 {strides = array<i32>} : memref<80x8xf32, #tpu.memory_space<vmem>>, vector<80x8xf32>,
    %c2 = arith.constant 2 : index
    %c0_33 = arith.constant 0 : index
    %31 = vector.load %arg10[%c2, %c0_33] : memref<102x8xbf16, #tpu.memory_space<vmem>>, vector<80x8xbf16>
    %c0_34 = arith.constant 0 : index
    %c0_35 = arith.constant 0 : index
    %32 = vector.load %arg9[%c0_34, %c0_35] : memref<80x8xf32, #tpu.memory_space<vmem>>, vector<80x8xf32>
    %c2_36 = arith.constant 2 : index
    %c0_37 = arith.constant 0 : index
    %c0_38 = arith.constant 0 : index
    %33 = vector.load %arg2[%c2_36, %c0_37, %c0_38] : memref<9x8x8xbf16, #tpu.memory_space<vmem>>, vector<1x8x8xbf16>
    %34 = vector.shape_cast %33 : vector<1x8x8xbf16> to vector<8x8xbf16>
    %cst_39 = arith.constant dense<0.000000e+00> : vector<80x8xf32>
    %35 = tpu.matmul %31, %34, %cst_39 {dimension_numbers = #tpu.dot_dimension_numbers<[1], [0], [0], [1], [0, 0, 1, 1], [], []>} : vector<80x8xbf16>, vector<8x8xbf16>, vector<80x8xf32> -> vector<80x8xf32>
    %36 = arith.addf %32, %35 : vector<80x8xf32>
    %c0_40 = arith.constant 0 : index
    %c0_41 = arith.constant 0 : index
    %37 = vector.load %arg9[%c0_40, %c0_41] : memref<80x8xf32, #tpu.memory_space<vmem>>, vector<80x8xf32>
    tpu.vector_store %arg9[%c0_40, %c0_41], %36 {strides = array<i32>} : memref<80x8xf32, #tpu.memory_space<vmem>>, vector<80x8xf32>,
    %c10 = arith.constant 10 : index
    %c0_42 = arith.constant 0 : index
    %38 = vector.load %arg10[%c10, %c0_42] : memref<102x8xbf16, #tpu.memory_space<vmem>>, vector<80x8xbf16>
    %c0_43 = arith.constant 0 : index
    %c0_44 = arith.constant 0 : index
    %39 = vector.load %arg9[%c0_43, %c0_44] : memref<80x8xf32, #tpu.memory_space<vmem>>, vector<80x8xf32>
    %c3 = arith.constant 3 : index
    %c0_45 = arith.constant 0 : index
    %c0_46 = arith.constant 0 : index
    %40 = vector.load %arg2[%c3, %c0_45, %c0_46] : memref<9x8x8xbf16, #tpu.memory_space<vmem>>, vector<1x8x8xbf16>
    %41 = vector.shape_cast %40 : vector<1x8x8xbf16> to vector<8x8xbf16>
    %cst_47 = arith.constant dense<0.000000e+00> : vector<80x8xf32>
    %42 = tpu.matmul %38, %41, %cst_47 {dimension_numbers = #tpu.dot_dimension_numbers<[1], [0], [0], [1], [0, 0, 1, 1], [], []>} : vector<80x8xbf16>, vector<8x8xbf16>, vector<80x8xf32> -> vector<80x8xf32>
    %43 = arith.addf %39, %42 : vector<80x8xf32>
    %c0_48 = arith.constant 0 : index
    %c0_49 = arith.constant 0 : index
    %44 = vector.load %arg9[%c0_48, %c0_49] : memref<80x8xf32, #tpu.memory_space<vmem>>, vector<80x8xf32>
    tpu.vector_store %arg9[%c0_48, %c0_49], %43 {strides = array<i32>} : memref<80x8xf32, #tpu.memory_space<vmem>>, vector<80x8xf32>,
    %c11 = arith.constant 11 : index
    %c0_50 = arith.constant 0 : index
    %45 = vector.load %arg10[%c11, %c0_50] : memref<102x8xbf16, #tpu.memory_space<vmem>>, vector<80x8xbf16>
    %c0_51 = arith.constant 0 : index
    %c0_52 = arith.constant 0 : index
    %46 = vector.load %arg9[%c0_51, %c0_52] : memref<80x8xf32, #tpu.memory_space<vmem>>, vector<80x8xf32>
    %c4 = arith.constant 4 : index
    %c0_53 = arith.constant 0 : index
    %c0_54 = arith.constant 0 : index
    %47 = vector.load %arg2[%c4, %c0_53, %c0_54] : memref<9x8x8xbf16, #tpu.memory_space<vmem>>, vector<1x8x8xbf16>
    %48 = vector.shape_cast %47 : vector<1x8x8xbf16> to vector<8x8xbf16>
    %cst_55 = arith.constant dense<0.000000e+00> : vector<80x8xf32>
    %49 = tpu.matmul %45, %48, %cst_55 {dimension_numbers = #tpu.dot_dimension_numbers<[1], [0], [0], [1], [0, 0, 1, 1], [], []>} : vector<80x8xbf16>, vector<8x8xbf16>, vector<80x8xf32> -> vector<80x8xf32>
    %50 = arith.addf %46, %49 : vector<80x8xf32>
    %c0_56 = arith.constant 0 : index
    %c0_57 = arith.constant 0 : index
    %51 = vector.load %arg9[%c0_56, %c0_57] : memref<80x8xf32, #tpu.memory_space<vmem>>, vector<80x8xf32>
    tpu.vector_store %arg9[%c0_56, %c0_57], %50 {strides = array<i32>} : memref<80x8xf32, #tpu.memory_space<vmem>>, vector<80x8xf32>,
    %c12 = arith.constant 12 : index
    %c0_58 = arith.constant 0 : index
    %52 = vector.load %arg10[%c12, %c0_58] : memref<102x8xbf16, #tpu.memory_space<vmem>>, vector<80x8xbf16>
    %c0_59 = arith.constant 0 : index
    %c0_60 = arith.constant 0 : index
    %53 = vector.load %arg9[%c0_59, %c0_60] : memref<80x8xf32, #tpu.memory_space<vmem>>, vector<80x8xf32>
    %c5 = arith.constant 5 : index
    %c0_61 = arith.constant 0 : index
    %c0_62 = arith.constant 0 : index
    %54 = vector.load %arg2[%c5, %c0_61, %c0_62] : memref<9x8x8xbf16, #tpu.memory_space<vmem>>, vector<1x8x8xbf16>
    %55 = vector.shape_cast %54 : vector<1x8x8xbf16> to vector<8x8xbf16>
    %cst_63 = arith.constant dense<0.000000e+00> : vector<80x8xf32>
    %56 = tpu.matmul %52, %55, %cst_63 {dimension_numbers = #tpu.dot_dimension_numbers<[1], [0], [0], [1], [0, 0, 1, 1], [], []>} : vector<80x8xbf16>, vector<8x8xbf16>, vector<80x8xf32> -> vector<80x8xf32>
    %57 = arith.addf %53, %56 : vector<80x8xf32>
    %c0_64 = arith.constant 0 : index
    %c0_65 = arith.constant 0 : index
    %58 = vector.load %arg9[%c0_64, %c0_65] : memref<80x8xf32, #tpu.memory_space<vmem>>, vector<80x8xf32>
    tpu.vector_store %arg9[%c0_64, %c0_65], %57 {strides = array<i32>} : memref<80x8xf32, #tpu.memory_space<vmem>>, vector<80x8xf32>,
    %c20 = arith.constant 20 : index
    %c0_66 = arith.constant 0 : index
    %59 = vector.load %arg10[%c20, %c0_66] : memref<102x8xbf16, #tpu.memory_space<vmem>>, vector<80x8xbf16>
    %c0_67 = arith.constant 0 : index
    %c0_68 = arith.constant 0 : index
    %60 = vector.load %arg9[%c0_67, %c0_68] : memref<80x8xf32, #tpu.memory_space<vmem>>, vector<80x8xf32>
    %c6 = arith.constant 6 : index
    %c0_69 = arith.constant 0 : index
    %c0_70 = arith.constant 0 : index
    %61 = vector.load %arg2[%c6, %c0_69, %c0_70] : memref<9x8x8xbf16, #tpu.memory_space<vmem>>, vector<1x8x8xbf16>
    %62 = vector.shape_cast %61 : vector<1x8x8xbf16> to vector<8x8xbf16>
    %cst_71 = arith.constant dense<0.000000e+00> : vector<80x8xf32>
    %63 = tpu.matmul %59, %62, %cst_71 {dimension_numbers = #tpu.dot_dimension_numbers<[1], [0], [0], [1], [0, 0, 1, 1], [], []>} : vector<80x8xbf16>, vector<8x8xbf16>, vector<80x8xf32> -> vector<80x8xf32>
    %64 = arith.addf %60, %63 : vector<80x8xf32>
    %c0_72 = arith.constant 0 : index
    %c0_73 = arith.constant 0 : index
    %65 = vector.load %arg9[%c0_72, %c0_73] : memref<80x8xf32, #tpu.memory_space<vmem>>, vector<80x8xf32>
    tpu.vector_store %arg9[%c0_72, %c0_73], %64 {strides = array<i32>} : memref<80x8xf32, #tpu.memory_space<vmem>>, vector<80x8xf32>,
    %c21 = arith.constant 21 : index
    %c0_74 = arith.constant 0 : index
    %66 = vector.load %arg10[%c21, %c0_74] : memref<102x8xbf16, #tpu.memory_space<vmem>>, vector<80x8xbf16>
    %c0_75 = arith.constant 0 : index
    %c0_76 = arith.constant 0 : index
    %67 = vector.load %arg9[%c0_75, %c0_76] : memref<80x8xf32, #tpu.memory_space<vmem>>, vector<80x8xf32>
    %c7 = arith.constant 7 : index
    %c0_77 = arith.constant 0 : index
    %c0_78 = arith.constant 0 : index
    %68 = vector.load %arg2[%c7, %c0_77, %c0_78] : memref<9x8x8xbf16, #tpu.memory_space<vmem>>, vector<1x8x8xbf16>
    %69 = vector.shape_cast %68 : vector<1x8x8xbf16> to vector<8x8xbf16>
    %cst_79 = arith.constant dense<0.000000e+00> : vector<80x8xf32>
    %70 = tpu.matmul %66, %69, %cst_79 {dimension_numbers = #tpu.dot_dimension_numbers<[1], [0], [0], [1], [0, 0, 1, 1], [], []>} : vector<80x8xbf16>, vector<8x8xbf16>, vector<80x8xf32> -> vector<80x8xf32>
    %71 = arith.addf %67, %70 : vector<80x8xf32>
    %c0_80 = arith.constant 0 : index
    %c0_81 = arith.constant 0 : index
    %72 = vector.load %arg9[%c0_80, %c0_81] : memref<80x8xf32, #tpu.memory_space<vmem>>, vector<80x8xf32>
    tpu.vector_store %arg9[%c0_80, %c0_81], %71 {strides = array<i32>} : memref<80x8xf32, #tpu.memory_space<vmem>>, vector<80x8xf32>,
    %c22 = arith.constant 22 : index
    %c0_82 = arith.constant 0 : index
    %73 = vector.load %arg10[%c22, %c0_82] : memref<102x8xbf16, #tpu.memory_space<vmem>>, vector<80x8xbf16>
    %c0_83 = arith.constant 0 : index
    %c0_84 = arith.constant 0 : index
    %74 = vector.load %arg9[%c0_83, %c0_84] : memref<80x8xf32, #tpu.memory_space<vmem>>, vector<80x8xf32>
    %c8 = arith.constant 8 : index
    %c0_85 = arith.constant 0 : index
    %c0_86 = arith.constant 0 : index
    %75 = vector.load %arg2[%c8, %c0_85, %c0_86] : memref<9x8x8xbf16, #tpu.memory_space<vmem>>, vector<1x8x8xbf16>
    %76 = vector.shape_cast %75 : vector<1x8x8xbf16> to vector<8x8xbf16>
    %cst_87 = arith.constant dense<0.000000e+00> : vector<80x8xf32>
    %77 = tpu.matmul %73, %76, %cst_87 {dimension_numbers = #tpu.dot_dimension_numbers<[1], [0], [0], [1], [0, 0, 1, 1], [], []>} : vector<80x8xbf16>, vector<8x8xbf16>, vector<80x8xf32> -> vector<80x8xf32>
    %78 = arith.addf %74, %77 : vector<80x8xf32>
    %c0_88 = arith.constant 0 : index
    %c0_89 = arith.constant 0 : index
    %79 = vector.load %arg9[%c0_88, %c0_89] : memref<80x8xf32, #tpu.memory_space<vmem>>, vector<80x8xf32>
    tpu.vector_store %arg9[%c0_88, %c0_89], %78 {strides = array<i32>} : memref<80x8xf32, #tpu.memory_space<vmem>>, vector<80x8xf32>,
    %c0_90 = arith.constant 0 : index
    %c0_91 = arith.constant 0 : index
    %80 = vector.load %arg9[%c0_90, %c0_91] : memref<80x8xf32, #tpu.memory_space<vmem>>, vector<80x8xf32>
    %81 = vector.extract_strided_slice %80 {offsets = [0, 0], sizes = [8, 8], strides = [1, 1]} : vector<80x8xf32> to vector<8x8xf32>
    %c0_92 = arith.constant 0 : index
    %c0_93 = arith.constant 0 : index
    %c0_94 = arith.constant 0 : index
    %82 = vector.load %arg6[%c0_92, %c0_93, %c0_94] : memref<1x64x8xf32, #tpu.memory_space<vmem>>, vector<1x8x8xf32>
    %83 = vector.shape_cast %82 : vector<1x8x8xf32> to vector<8x8xf32>
    %84 = vector.shape_cast %81 : vector<8x8xf32> to vector<1x8x8xf32>
    tpu.vector_store %arg6[%c0_92, %c0_93, %c0_94], %84 {strides = array<i32>} : memref<1x64x8xf32, #tpu.memory_space<vmem>>, vector<1x8x8xf32>,
    %85 = vector.extract_strided_slice %80 {offsets = [10, 0], sizes = [8, 8], strides = [1, 1]} : vector<80x8xf32> to vector<8x8xf32>
    %c0_95 = arith.constant 0 : index
    %c8_96 = arith.constant 8 : index
    %c0_97 = arith.constant 0 : index
    %86 = vector.load %arg6[%c0_95, %c8_96, %c0_97] : memref<1x64x8xf32, #tpu.memory_space<vmem>>, vector<1x8x8xf32>
    %87 = vector.shape_cast %86 : vector<1x8x8xf32> to vector<8x8xf32>
    %88 = vector.shape_cast %85 : vector<8x8xf32> to vector<1x8x8xf32>
    tpu.vector_store %arg6[%c0_95, %c8_96, %c0_97], %88 {strides = array<i32>} : memref<1x64x8xf32, #tpu.memory_space<vmem>>, vector<1x8x8xf32>,
    %89 = vector.extract_strided_slice %80 {offsets = [20, 0], sizes = [8, 8], strides = [1, 1]} : vector<80x8xf32> to vector<8x8xf32>
    %c0_98 = arith.constant 0 : index
    %c16 = arith.constant 16 : index
    %c0_99 = arith.constant 0 : index
    %90 = vector.load %arg6[%c0_98, %c16, %c0_99] : memref<1x64x8xf32, #tpu.memory_space<vmem>>, vector<1x8x8xf32>
    %91 = vector.shape_cast %90 : vector<1x8x8xf32> to vector<8x8xf32>
    %92 = vector.shape_cast %89 : vector<8x8xf32> to vector<1x8x8xf32>
    tpu.vector_store %arg6[%c0_98, %c16, %c0_99], %92 {strides = array<i32>} : memref<1x64x8xf32, #tpu.memory_space<vmem>>, vector<1x8x8xf32>,
    %93 = vector.extract_strided_slice %80 {offsets = [30, 0], sizes = [8, 8], strides = [1, 1]} : vector<80x8xf32> to vector<8x8xf32>
    %c0_100 = arith.constant 0 : index
    %c24 = arith.constant 24 : index
    %c0_101 = arith.constant 0 : index
    %94 = vector.load %arg6[%c0_100, %c24, %c0_101] : memref<1x64x8xf32, #tpu.memory_space<vmem>>, vector<1x8x8xf32>
    %95 = vector.shape_cast %94 : vector<1x8x8xf32> to vector<8x8xf32>
    %96 = vector.shape_cast %93 : vector<8x8xf32> to vector<1x8x8xf32>
    tpu.vector_store %arg6[%c0_100, %c24, %c0_101], %96 {strides = array<i32>} : memref<1x64x8xf32, #tpu.memory_space<vmem>>, vector<1x8x8xf32>,
    %97 = vector.extract_strided_slice %80 {offsets = [40, 0], sizes = [8, 8], strides = [1, 1]} : vector<80x8xf32> to vector<8x8xf32>
    %c0_102 = arith.constant 0 : index
    %c32 = arith.constant 32 : index
    %c0_103 = arith.constant 0 : index
    %98 = vector.load %arg6[%c0_102, %c32, %c0_103] : memref<1x64x8xf32, #tpu.memory_space<vmem>>, vector<1x8x8xf32>
    %99 = vector.shape_cast %98 : vector<1x8x8xf32> to vector<8x8xf32>
    %100 = vector.shape_cast %97 : vector<8x8xf32> to vector<1x8x8xf32>
    tpu.vector_store %arg6[%c0_102, %c32, %c0_103], %100 {strides = array<i32>} : memref<1x64x8xf32, #tpu.memory_space<vmem>>, vector<1x8x8xf32>,
    %101 = vector.extract_strided_slice %80 {offsets = [50, 0], sizes = [8, 8], strides = [1, 1]} : vector<80x8xf32> to vector<8x8xf32>
    %c0_104 = arith.constant 0 : index
    %c40 = arith.constant 40 : index
    %c0_105 = arith.constant 0 : index
    %102 = vector.load %arg6[%c0_104, %c40, %c0_105] : memref<1x64x8xf32, #tpu.memory_space<vmem>>, vector<1x8x8xf32>
    %103 = vector.shape_cast %102 : vector<1x8x8xf32> to vector<8x8xf32>
    %104 = vector.shape_cast %101 : vector<8x8xf32> to vector<1x8x8xf32>
    tpu.vector_store %arg6[%c0_104, %c40, %c0_105], %104 {strides = array<i32>} : memref<1x64x8xf32, #tpu.memory_space<vmem>>, vector<1x8x8xf32>,
    %105 = vector.extract_strided_slice %80 {offsets = [60, 0], sizes = [8, 8], strides = [1, 1]} : vector<80x8xf32> to vector<8x8xf32>
    %c0_106 = arith.constant 0 : index
    %c48 = arith.constant 48 : index
    %c0_107 = arith.constant 0 : index
    %106 = vector.load %arg6[%c0_106, %c48, %c0_107] : memref<1x64x8xf32, #tpu.memory_space<vmem>>, vector<1x8x8xf32>
    %107 = vector.shape_cast %106 : vector<1x8x8xf32> to vector<8x8xf32>
    %108 = vector.shape_cast %105 : vector<8x8xf32> to vector<1x8x8xf32>
    tpu.vector_store %arg6[%c0_106, %c48, %c0_107], %108 {strides = array<i32>} : memref<1x64x8xf32, #tpu.memory_space<vmem>>, vector<1x8x8xf32>,
    %109 = vector.extract_strided_slice %80 {offsets = [70, 0], sizes = [8, 8], strides = [1, 1]} : vector<80x8xf32> to vector<8x8xf32>
    %c0_108 = arith.constant 0 : index
    %c56 = arith.constant 56 : index
    %c0_109 = arith.constant 0 : index
    %110 = vector.load %arg6[%c0_108, %c56, %c0_109] : memref<1x64x8xf32, #tpu.memory_space<vmem>>, vector<1x8x8xf32>
    %111 = vector.shape_cast %110 : vector<1x8x8xf32> to vector<8x8xf32>
    %112 = vector.shape_cast %109 : vector<8x8xf32> to vector<1x8x8xf32>
    tpu.vector_store %arg6[%c0_108, %c56, %c0_109], %112 {strides = array<i32>} : memref<1x64x8xf32, #tpu.memory_space<vmem>>, vector<1x8x8xf32>,
    %c0_110 = arith.constant 0 : index
    %c0_111 = arith.constant 0 : index
    %c0_112 = arith.constant 0 : index
    %113 = vector.load %arg6[%c0_110, %c0_111, %c0_112] : memref<1x64x8xf32, #tpu.memory_space<vmem>>, vector<1x64x8xf32>
    %114 = vector.shape_cast %113 : vector<1x64x8xf32> to vector<64x8xf32>
    %cst_113 = arith.constant dense<0.000000e+00> : vector<8xf32>
    %115 = vector.multi_reduction <add>, %114, %cst_113 [0] : vector<64x8xf32> to vector<8xf32>
    %116 = vector.shape_cast %115 : vector<8xf32> to vector<1x8xf32>
    %c0_114 = arith.constant 0 : index
    %c0_115 = arith.constant 0 : index
    %c0_116 = arith.constant 0 : index
    %117 = vector.load %arg7[%c0_114, %c0_115, %c0_116] : memref<1x1x8xf32, #tpu.memory_space<vmem>>, vector<1x1x8xf32>
    %118 = vector.shape_cast %117 : vector<1x1x8xf32> to vector<1x8xf32>
    %119 = vector.shape_cast %116 : vector<1x8xf32> to vector<1x1x8xf32>
    tpu.vector_store %arg7[%c0_114, %c0_115, %c0_116], %119 {strides = array<i32>} : memref<1x1x8xf32, #tpu.memory_space<vmem>>, vector<1x1x8xf32>,
    %120 = arith.mulf %114, %114 : vector<64x8xf32>
    %cst_117 = arith.constant dense<0.000000e+00> : vector<8xf32>
    %121 = vector.multi_reduction <add>, %120, %cst_117 [0] : vector<64x8xf32> to vector<8xf32>
    %122 = vector.shape_cast %121 : vector<8xf32> to vector<1x8xf32>
    %c0_118 = arith.constant 0 : index
    %c0_119 = arith.constant 0 : index
    %c0_120 = arith.constant 0 : index
    %123 = vector.load %arg8[%c0_118, %c0_119, %c0_120] : memref<1x1x8xf32, #tpu.memory_space<vmem>>, vector<1x1x8xf32>
    %124 = vector.shape_cast %123 : vector<1x1x8xf32> to vector<1x8xf32>
    %125 = vector.shape_cast %122 : vector<1x8xf32> to vector<1x1x8xf32>
    tpu.vector_store %arg8[%c0_118, %c0_119, %c0_120], %125 {strides = array<i32>} : memref<1x1x8xf32, #tpu.memory_space<vmem>>, vector<1x1x8xf32>,
    return
  }
  func.func @transform_0(%arg0: i32) -> (i32, i32, i32, i32) {
    %c0_i32 = arith.constant 0 : i32
    %c0_i32_0 = arith.constant 0 : i32
    %c0_i32_1 = arith.constant 0 : i32
    %c0_i32_2 = arith.constant 0 : i32
    return %c0_i32, %arg0, %c0_i32_0, %c0_i32_1 : i32, i32, i32, i32
  }
  func.func @transform_1(%arg0: i32) -> (i32, i32, i32) {
    %c0_i32 = arith.constant 0 : i32
    %c0_i32_0 = arith.constant 0 : i32
    %c0_i32_1 = arith.constant 0 : i32
    %c0_i32_2 = arith.constant 0 : i32
    return %c0_i32, %c0_i32_0, %c0_i32_1 : i32, i32, i32
  }
  func.func @transform_2(%arg0: i32) -> (i32, i32) {
    %c0_i32 = arith.constant 0 : i32
    %c0_i32_0 = arith.constant 0 : i32
    %c0_i32_1 = arith.constant 0 : i32
    return %c0_i32, %c0_i32_0 : i32, i32
  }
  func.func @transform_3(%arg0: i32) -> (i32, i32) {
    %c0_i32 = arith.constant 0 : i32
    %c0_i32_0 = arith.constant 0 : i32
    %c0_i32_1 = arith.constant 0 : i32
    return %c0_i32, %c0_i32_0 : i32, i32
  }
  func.func @transform_4(%arg0: i32) -> (i32, i32) {
    %c0_i32 = arith.constant 0 : i32
    %c0_i32_0 = arith.constant 0 : i32
    %c0_i32_1 = arith.constant 0 : i32
    return %c0_i32, %c0_i32_0 : i32, i32
  }
  func.func @transform_5(%arg0: i32) -> (i32, i32, i32) {
    %c0_i32 = arith.constant 0 : i32
    %c0_i32_0 = arith.constant 0 : i32
    %c0_i32_1 = arith.constant 0 : i32
    return %arg0, %c0_i32, %c0_i32_0 : i32, i32, i32
  }
  func.func @transform_6(%arg0: i32) -> (i32, i32, i32) {
    %c0_i32 = arith.constant 0 : i32
    %c0_i32_0 = arith.constant 0 : i32
    %c0_i32_1 = arith.constant 0 : i32
    return %arg0, %c0_i32, %c0_i32_0 : i32, i32, i32
  }
  func.func @transform_7(%arg0: i32) -> (i32, i32, i32) {
    %c0_i32 = arith.constant 0 : i32
    %c0_i32_0 = arith.constant 0 : i32
    %c0_i32_1 = arith.constant 0 : i32
    return %arg0, %c0_i32, %c0_i32_0 : i32, i32, i32
  }
}

</mosaic_0001>

<bundles_post_ra>
// kernel: basic_block_forward.5
= control target key start
LH: loop header
LB: loop body
LE: loop exit
PB: predicated region body
PF: predicated region fallthrough
CT: control target
= control target key end

     0   :  { %s511_s21 = smov 0   ;;  %s596_s0 = inlined_call_operand.vmem [shape: f32[2,64,8], index: 0, kind: input, shape index: {}]   ;;  %s597_s1 = inlined_call_operand.vmem [shape: f32[2,64,8], index: 1, kind: input, shape index: {}]   ;;  %s598_s2 = inlined_call_operand.vmem [shape: f32[1,8], index: 2, kind: input, shape index: {}]   ;;  %s599_s3 = inlined_call_operand.vmem [shape: f32[1,8], index: 3, kind: input, shape index: {}]   ;;  %s600_s4 = inlined_call_operand.vmem [shape: f32[1,8], index: 4, kind: input, shape index: {}]   ;;  %s601_s5 = inlined_call_operand.vmem [shape: f32[1,8], index: 5, kind: input, shape index: {}]   ;;  %s602_s6 = inlined_call_operand.vmem [shape: f32[2,64,8], index: 6, kind: output, shape index: {}]  }
   0x1 LB: > { %s440_s22 = sadd.s32 4294967295, %s474_s21   ;;  %p444_p0 = scmp.ge.s32.totalorder %s474_s21, 1  ;;  %s474_s21 = sphi %s511_s21, %s16_s21  }
   0x2   : > { %p222_p1 = scmp.lt.s32.totalorder %s474_s21, 3 }
   0x4   : > { %p223_p2 = pnand %p444_p0, %p222_p1 }
   0x5   : > { %p257_p3 = scmp.lt.s32.totalorder (!%p223_p2), %s440_s22, 1  ;;  %v451_v0 = vld [vmem:[%s598_s2] ss:$0 sm:$0xff] (!%p223_p2)  ;;  %vm364_vm0 = vcmask (!%p223_p2), 64512  }
   0x6   : > { %226 = sbr.rel (%p223_p2) target bundleno = 36 (0x24), region = 44  ;;  %v527_v1 = vld [vmem:[%s600_s4] ss:$0 sm:$0xff] (!%p223_p2) }
   0x7   : > { %v452_v2 = vld [vmem:[%s599_s3] ss:$0 sm:$0xff] (!%p223_p2) }
   0x8   : > { %v454_v25 = vld [vmem:[%s601_s5] ss:$0 sm:$0xff] (!%p223_p2) }
   0xd   : > { %s604_s22 = smov (!%p257_p3, %s440_s22), 1 }
   0xe   : > { %s519_s23 = sshll.u32 %s604_s22, 6 }
   0xf   : > { %s533_s30 = scalar_lea.vmem %s596_s0, %s519_s23  ;;  %s539_s9 = scalar_lea.vmem %s597_s1, %s519_s23 }
  0x10   : > { %v272_v3 = vld [vmem:[%s533_s30] sm:$0xff]  ;;  %v273_v5 = vld [vmem:[%s533_s30 + $0x8] sm:$0xff]  ;;  %v274_v10 = vld [vmem:[%s533_s30 + $0x10] sm:$0xff]  ;;  %s573_s16 = scalar_lea.vmem %s602_s6, %s519_s23 }
  0x11   : > { %v310_v4 = vld [vmem:[%s539_s9] sm:$0xff]  ;;  %v287_v6 = vmul.f32 %v451_v0, %v272_v3  ;;  %v288_v8 = vmul.f32 %v451_v0, %v273_v5  ;;  %v311_v9 = vld [vmem:[%s539_s9 + $0x8] sm:$0xff]  ;;  %v312_v11 = vld [vmem:[%s539_s9 + $0x10] sm:$0xff]  ;;  %v289_v13 = vmul.f32 %v451_v0, %v274_v10 }
  0x12   : > { %v325_v7 = vmul.f32 %v527_v1, %v310_v4  ;;  %v326_v12 = vmul.f32 %v527_v1, %v311_v9  ;;  %v327_v14 = vmul.f32 %v527_v1, %v312_v11  ;;  %v275_v15 = vld [vmem:[%s533_s30 + $0x18] sm:$0xff]  ;;  %v276_v17 = vld [vmem:[%s533_s30 + $0x20] sm:$0xff]  ;;  %v277_v23 = vld [vmem:[%s533_s30 + $0x28] sm:$0xff] }
  0x13   : > { %v313_v16 = vld [vmem:[%s539_s9 + $0x18] sm:$0xff]  ;;  %v302_v18 = vadd.f32 %v452_v2, %v287_v6  ;;  %v303_v19 = vadd.f32 %v452_v2, %v288_v8  ;;  %v290_v20 = vmul.f32 %v451_v0, %v275_v15  ;;  %v314_v22 = vld [vmem:[%s539_s9 + $0x20] sm:$0xff]  ;;  %v315_v24 = vld [vmem:[%s539_s9 + $0x28] sm:$0xff]  ;;  %v304_v26 = vadd.f32 %v452_v2, %v289_v13 }
  0x14   : > { %v328_v21 = vmul.f32 %v527_v1, %v313_v16  ;;  %v291_v27 = vmul.f32 %v451_v0, %v276_v17  ;;  %v329_v28 = vmul.f32 %v527_v1, %v314_v22  ;;  %v292_v29 = vmul.f32 %v451_v0, %v277_v23  ;;  %v278_v30 = vld [vmem:[%s533_s30 + $0x30] sm:$0xff]  ;;  %v279_v40 = vld [vmem:[%s533_s30 + $0x38] sm:$0xff] }
  0x15   : > { %v316_v31 = vld [vmem:[%s539_s9 + $0x30] sm:$0xff]  ;;  %v333_v32 = vadd.f32 %v325_v7, %v302_v18  ;;  %v334_v33 = vadd.f32 %v326_v12, %v303_v19  ;;  %v305_v34 = vadd.f32 %v452_v2, %v290_v20  ;;  %v330_v35 = vmul.f32 %v527_v1, %v315_v24  ;;  %v317_v49 = vld [vmem:[%s539_s9 + $0x38] sm:$0xff] }
  0x16   : > { %v335_v36 = vadd.f32 %v327_v14, %v304_v26  ;;  %v306_v37 = vadd.f32 %v452_v2, %v291_v27  ;;  %v307_v38 = vadd.f32 %v452_v2, %v292_v29  ;;  %v293_v39 = vmul.f32 %v451_v0, %v278_v30 }
  0x17   : > { %v348_v41 = vadd.f32 %v454_v25, %v333_v32  ;;  %v349_v42 = vadd.f32 %v454_v25, %v334_v33  ;;  %v336_v43 = vadd.f32 %v328_v21, %v305_v34  ;;  %v331_v44 = vmul.f32 %v527_v1, %v316_v31 }
  0x18   : > { %v350_v45 = vadd.f32 %v454_v25, %v335_v36  ;;  %v337_v46 = vadd.f32 %v329_v28, %v306_v37  ;;  %v338_v47 = vadd.f32 %v330_v35, %v307_v38  ;;  %v308_v48 = vadd.f32 %v452_v2, %v293_v39 }
  0x19   : > { %v356_v50 = vmax.f32 %v348_v41, 0.0  ;;  %v357_v51 = vmax.f32 %v349_v42, 0.0  ;;  %v351_v52 = vadd.f32 %v454_v25, %v336_v43  ;;  %v294_v53 = vmul.f32 %v451_v0, %v279_v40 }
  0x1a   : > { %v358_v54 = vmax.f32 %v350_v45, 0.0  ;;  %v352_v55 = vadd.f32 %v454_v25, %v337_v46  ;;  %v353_v56 = vadd.f32 %v454_v25, %v338_v47  ;;  %v339_v57 = vadd.f32 %v331_v44, %v308_v48 }
  0x1b   : > { %365 = vst.msk [vmem:[%s573_s16] sm:$0xff] %vm364_vm0, %v356_v50  ;;  %366 = vst.msk [vmem:[%s573_s16 + $0x8] sm:$0xff] %vm364_vm0, %v357_v51  ;;  %v359_v58 = vmax.f32 %v351_v52, 0.0  ;;  %v309_v59 = vadd.f32 %v452_v2, %v294_v53  ;;  %v332_v60 = vmul.f32 %v527_v1, %v317_v49 }
  0x1c   : > { %367 = vst.msk [vmem:[%s573_s16 + $0x10] sm:$0xff] %vm364_vm0, %v358_v54  ;;  %v360_v61 = vmax.f32 %v352_v55, 0.0  ;;  %v361_v62 = vmax.f32 %v353_v56, 0.0  ;;  %v354_v63 = vadd.f32 %v454_v25, %v339_v57 }
  0x1d   : > { %368 = vst.msk [vmem:[%s573_s16 + $0x18] sm:$0xff] %vm364_vm0, %v359_v58  ;;  %v340_v0 = vadd.f32 %v332_v60, %v309_v59 }
  0x1e   : > { %369 = vst.msk [vmem:[%s573_s16 + $0x20] sm:$0xff] %vm364_vm0, %v360_v61  ;;  %370 = vst.msk [vmem:[%s573_s16 + $0x28] sm:$0xff] %vm364_vm0, %v361_v62  ;;  %v362_v3 = vmax.f32 %v354_v63, 0.0 }
  0x1f   : > { %v355_v4 = vadd.f32 %v454_v25, %v340_v0 }
  0x20   : > { %371 = vst.msk [vmem:[%s573_s16 + $0x30] sm:$0xff] %vm364_vm0, %v362_v3 }
  0x21   : > { %v363_v5 = vmax.f32 %v355_v4, 0.0 }
  0x23   : > { %372 = vst.msk [vmem:[%s573_s16 + $0x38] sm:$0xff] %vm364_vm0, %v363_v5 }
  0x24 PF: > { %s16_s21 = sadd.s32 1, %s474_s21  }
  0x25   : > { %p13_p4 = scmp.ge.s32.totalorder %s16_s21, 4  }
  0x27   :  { %15 = sbr.rel (!%p13_p4) target bundleno = 1 (0x1), region = 77 }

// kernel: basic_block_forward.3
= control target key start
LH: loop header
LB: loop body
LE: loop exit
PB: predicated region body
PF: predicated region fallthrough
CT: control target
= control target key end

     0   :  { %s3153_s27 = smov 0   ;;  %s3155_s28 = smov 0   ;;  %s3843_s0 = inlined_call_operand.vmem [shape: bf16[4,2,82,4], index: 0, kind: input, shape index: {}]   ;;  %s3844_s1 = inlined_call_operand.vmem [shape: bf16[9,4,8], index: 1, kind: input, shape index: {}]   ;;  %s3845_s2 = inlined_call_operand.vmem [shape: bf16[4,8], index: 2, kind: input, shape index: {}]   ;;  %s3846_s3 = inlined_call_operand.vmem [shape: f32[2,64,8], index: 3, kind: output, shape index: {0}]   ;;  %s3847_s4 = inlined_call_operand.vmem [shape: f32[2,1,8], index: 4, kind: output, shape index: {1}]   ;;  %s3848_s5 = inlined_call_operand.vmem [shape: f32[2,1,8], index: 5, kind: output, shape index: {2}]   ;;  %s3849_s6 = inlined_call_operand.vmem [shape: f32[2,64,8], index: 6, kind: output, shape index: {3}]   ;;  %s3850_s7 = inlined_call_operand.vmem [shape: f32[2,1,8], index: 7, kind: output, shape index: {4}]   ;;  %s3851_s8 = inlined_call_operand.vmem [shape: f32[2,1,8], index: 8, kind: output, shape index: {5}]  }
   0x1   :  { %s3157_s29 = smov 0  }
   0x2 LB: > { %s2564_s30 = sadd.s32 4294967295, %s3104_s29   ;;  %s3170_s9 = sadd.s32 1, %s3104_s29   ;;  %s3104_s29 = sphi %s3157_s29, %s3854_s29   ;;  %s3100_s28 = sphi %s3155_s28, %s3853_s28   ;;  %s3096_s27 = sphi %s3153_s27, %s3852_s27  }
   0x3   : > { %s23_s10 = ssub.s32 %s3104_s29, %s3170_s9  ;;  %s26_s11 = sadd.s32 1, %s3100_s28 }
   0x4   : > { %p24_p0 = scmp.eq.s32.totalorder %s23_s10, 0  ;;  %p33_p1 = scmp.ne.s32.totalorder %s3100_s28, %s3096_s27 }
   0x5   : > { %p34_p2 = scmp.eq.s32.totalorder %s3104_s29, 0  ;;  %p2567_p4 = scmp.ge.s32.totalorder %s3104_s29, 2 }
   0x6   : > { %s3179_s12 = scalar_select %p24_p0, %s3100_s28, %s26_s11  }
   0x7   : > { %p35_p3 = por %p34_p2, %p33_p1  ;;  %263 = sbr.rel (%p2567_p4) target bundleno = 31 (0x1f), region = 24 }
   0xe   : > { %266 = sbr.rel (!%p35_p3) target bundleno = 31 (0x1f), region = 28  ;;  %s268_s13 = sand.u32 (%p35_p3), 1, %s3100_s28  }
   0xf   : > { %s3009_s14 = smul.u32 (%p35_p3), 44, %s3104_s29 }
  0x10   : > { %s3008_s15 = smul.u32 (%p35_p3), 176, %s268_s13 }
  0x11   : > { %s3187_s18 = scalar_lea.vmem (%p35_p3), %s3843_s0, %s3009_s14 }
  0x12   : > { %v289_v0 = vld [vmem:[%s3187_s18] sm:$0xff] (%p35_p3)   ;;  %v293_v1 = vld [vmem:[%s3187_s18 + $0x8] sm:$0xff] (%p35_p3)   ;;  %v297_v2 = vld [vmem:[%s3187_s18 + $0x10] sm:$0xff] (%p35_p3)   ;;  %s3192_s19 = scalar_lea.vmem (%p35_p3), [#allocation3], %s3008_s15 }
  0x13   : > { %290 = vst [vmem:[%s3192_s19] sm:$0xff] (%p35_p3), %v289_v0   ;;  %294 = vst [vmem:[%s3192_s19 + $0x8] sm:$0xff] (%p35_p3), %v293_v1   ;;  %v301_v3 = vld [vmem:[%s3187_s18 + $0x18] sm:$0xff] (%p35_p3)   ;;  %v305_v4 = vld [vmem:[%s3187_s18 + $0x20] sm:$0xff] (%p35_p3)  }
  0x14   : > { %298 = vst [vmem:[%s3192_s19 + $0x10] sm:$0xff] (%p35_p3), %v297_v2   ;;  %v309_v5 = vld [vmem:[%s3187_s18 + $0x28] sm:$0xf] (%p35_p3)  ;;  %302 = vst [vmem:[%s3192_s19 + $0x18] sm:$0xff] (%p35_p3), %v301_v3   ;;  %v311_v6 = vld [vmem:[%s3187_s18 + $0x58] sm:$0xff] (%p35_p3)  }
  0x15   : > { %306 = vst [vmem:[%s3192_s19 + $0x20] sm:$0xff] %v305_v4   ;;  %310 = vst [vmem:[%s3192_s19 + $0x28] sm:$0xf] %v309_v5  ;;  %v315_v7 = vld [vmem:[%s3187_s18 + $0x60] sm:$0xff]   ;;  %v319_v8 = vld [vmem:[%s3187_s18 + $0x68] sm:$0xff]  }
  0x16   : > { %312 = vst [vmem:[%s3192_s19 + $0x2c] sm:$0xff] %v311_v6   ;;  %316 = vst [vmem:[%s3192_s19 + $0x34] sm:$0xff] %v315_v7   ;;  %v323_v9 = vld [vmem:[%s3187_s18 + $0x70] sm:$0xff]   ;;  %v327_v10 = vld [vmem:[%s3187_s18 + $0x78] sm:$0xff]  }
  0x17   : > { %320 = vst [vmem:[%s3192_s19 + $0x3c] sm:$0xff] %v319_v8   ;;  %v331_v11 = vld [vmem:[%s3187_s18 + $0x80] sm:$0xf]  ;;  %324 = vst [vmem:[%s3192_s19 + $0x44] sm:$0xff] %v323_v9   ;;  %v333_v12 = vld [vmem:[%s3187_s18 + $0xb0] sm:$0xff]  }
  0x18   : > { %328 = vst [vmem:[%s3192_s19 + $0x4c] sm:$0xff] %v327_v10   ;;  %332 = vst [vmem:[%s3192_s19 + $0x54] sm:$0xf] %v331_v11  ;;  %v337_v13 = vld [vmem:[%s3187_s18 + $0xb8] sm:$0xff]   ;;  %v341_v14 = vld [vmem:[%s3187_s18 + $0xc0] sm:$0xff]  }
  0x19   : > { %334 = vst [vmem:[%s3192_s19 + $0x58] sm:$0xff] %v333_v12   ;;  %338 = vst [vmem:[%s3192_s19 + $0x60] sm:$0xff] %v337_v13   ;;  %v345_v15 = vld [vmem:[%s3187_s18 + $0xc8] sm:$0xff]   ;;  %v349_v16 = vld [vmem:[%s3187_s18 + $0xd0] sm:$0xff]  }
  0x1a   : > { %342 = vst [vmem:[%s3192_s19 + $0x68] sm:$0xff] %v341_v14   ;;  %v353_v17 = vld [vmem:[%s3187_s18 + $0xd8] sm:$0xf]  ;;  %346 = vst [vmem:[%s3192_s19 + $0x70] sm:$0xff] %v345_v15   ;;  %v355_v18 = vld [vmem:[%s3187_s18 + $0x108] sm:$0xff]  }
  0x1b   : > { %350 = vst [vmem:[%s3192_s19 + $0x78] sm:$0xff] %v349_v16   ;;  %354 = vst [vmem:[%s3192_s19 + $0x80] sm:$0xf] %v353_v17  ;;  %v359_v19 = vld [vmem:[%s3187_s18 + $0x110] sm:$0xff]   ;;  %v363_v20 = vld [vmem:[%s3187_s18 + $0x118] sm:$0xff]  }
  0x1c   : > { %356 = vst [vmem:[%s3192_s19 + $0x84] sm:$0xff] %v355_v18   ;;  %360 = vst [vmem:[%s3192_s19 + $0x8c] sm:$0xff] %v359_v19   ;;  %v367_v21 = vld [vmem:[%s3187_s18 + $0x120] sm:$0xff]   ;;  %v371_v22 = vld [vmem:[%s3187_s18 + $0x128] sm:$0xff]  }
  0x1d   : > { %364 = vst [vmem:[%s3192_s19 + $0x94] sm:$0xff] %v363_v20   ;;  %v375_v23 = vld [vmem:[%s3187_s18 + $0x130] sm:$0xf]  ;;  %368 = vst [vmem:[%s3192_s19 + $0x9c] sm:$0xff] %v367_v21  }
  0x1e   : > { %372 = vst [vmem:[%s3192_s19 + $0xa4] sm:$0xff] %v371_v22   ;;  %376 = vst [vmem:[%s3192_s19 + $0xac] sm:$0xf] %v375_v23 }
  0x1f PF: > { %p2569_p5 = scmp.ge.s32.totalorder %s3104_s29, 1  ;;  %p486_p6 = scmp.lt.s32.totalorder %s3104_s29, 3 }
  0x21   : > { %p487_p7 = pnand %p2569_p5, %p486_p6 }
  0x22   : > { %v594_v24 = vld [vmem:[%s3844_s1] sm:$0x3] (!%p487_p7)  ;;  %vm634_vm0 = vcmask (!%p487_p7), 1041408   ;;  %v2593_v25 = vld [vmem:[%s3844_s1 + $0x2] sm:$0x3] (!%p487_p7)  ;;  %v3106_v26 = vmov (!%p487_p7), 0.0  }
  0x23   : > { %490 = sbr.rel (%p487_p7) target bundleno = 492 (0x1ec), region = 69  ;;  %2788 = vmatprep.subr.bf16.mxu0 (!%p487_p7), %v3106_v26  ;;  %v636_v27 = vsel (!%p487_p7), %vm634_vm0, %v594_v24, 0  ;;  %2810 = vmatprep.subr.bf16.mxu1 (!%p487_p7), %v3106_v26  ;;  %v788_v28 = vsel (!%p487_p7), %vm634_vm0, %v2593_v25, 0  ;;  %s493_s24 = sand.u32 (!%p487_p7), 1, %s3096_s27   ;;  %v2604_v29 = vld [vmem:[%s3844_s1 + $0x4] sm:$0x3] (!%p487_p7) }
  0x24   : > { %2789 = vmatpush3.bf16.msra.mxu0 (!%p487_p7), %v636_v27  ;;  %2811 = vmatpush3.bf16.msra.mxu1 (!%p487_p7), %v788_v28  ;;  %s3010_s25 = smul.u32 (!%p487_p7), 176, %s493_s24  ;;  %vm3107_vm1 = vmmov (!%p487_p7), 0   ;;  %vm618_vm2 = vcmask (!%p487_p7), 31744   ;;  %v2624_v30 = vld [vmem:[%s3844_s1 + $0x6] sm:$0x3] (!%p487_p7)  ;;  %v982_v32 = vsel (!%p487_p7), %vm634_vm0, %v2604_v29, 0 }
  0x25   : > { %2790 = vmatprep.mubr.msk.bf16.mxu0 (!%p487_p7), %vm3107_vm1, %v3106_v26  ;;  %2812 = vmatprep.mubr.msk.bf16.mxu1 (!%p487_p7), %vm3107_vm1, %v3106_v26  ;;  %v1134_v34 = vsel (!%p487_p7), %vm634_vm0, %v2624_v30, 0  ;;  %v2644_v40 = vld [vmem:[%s3844_s1 + $0x8] sm:$0x3] (!%p487_p7)  ;;  %v1378_v41 = vld [vmem:[%s3845_s2] sm:$0x3] (!%p487_p7)  ;;  %vm566_vm4 = vcmask (!%p487_p7), 64512  }
  0x26   : > { %2832 = vmatprep.subr.bf16.mxu0 (!%p487_p7), %v3106_v26  ;;  %2854 = vmatprep.subr.bf16.mxu1 (!%p487_p7), %v3106_v26  ;;  %s3264_s13 = scalar_lea.vmem (!%p487_p7), [#allocation3], %s3010_s25  ;;  %vm926_vm3 = vsmask.f32 (!%p487_p7), 7424  ;;  %v3307_v46 = vsel (!%p487_p7), %vm634_vm0, %v2644_v40, 0  ;;  %v3310_v47 = vsel (!%p487_p7), %vm634_vm0, %v1378_v41, 0  ;;  %567 = vst.msk [vmem:[#allocation2] sm:$0xff] (!%p487_p7), %vm566_vm4, %v3106_v26 }
  0x27   : > { %v3037_v31 = vld [vmem:[%s3264_s13] sm:$0xff] (!%p487_p7)   ;;  %v3038_v33 = vld [vmem:[%s3264_s13 + $0x2c] sm:$0xff] (!%p487_p7)   ;;  %v3040_v36 = vld [vmem:[%s3264_s13 + $0x34] sm:$0xff] (!%p487_p7)   ;;  %568 = vst.msk [vmem:[#allocation2 + $0x8] sm:$0xff] (!%p487_p7), %vm566_vm4, %v3106_v26  ;;  %vm2168_vm5 = vcmask (!%p487_p7), 1046528   ;;  %p543_p8 = scmp.lt.s32.totalorder (!%p487_p7), %s2564_s30, 1 }
  0x28   : > { %2791 = vmatmul.mubr.msk.bf16.vlgmr.msra.gmra.mrb[0].mxu0 (!%p487_p7), %vm618_vm2, %v3037_v31  ;;  %2813 = vmatmul.mubr.msk.bf16.vlgmr.msra.gmra.mrb[0].mxu1 (!%p487_p7), %vm618_vm2, %v3038_v33  ;;  %v3039_v35 = vld [vmem:[%s3264_s13 + $0x8] sm:$0xff] (!%p487_p7)   ;;  %v3041_v37 = vld [vmem:[%s3264_s13 + $0x10] sm:$0xff] (!%p487_p7)   ;;  %v3042_v38 = vld [vmem:[%s3264_s13 + $0x3c] sm:$0xff] (!%p487_p7)   ;;  %569 = vst.msk [vmem:[#allocation2 + $0x10] sm:$0xff] (!%p487_p7), %vm566_vm4, %v3106_v26  ;;  %vm1455_vm6 = vcmask (!%p487_p7), 64513   ;;  %vm1457_vm7 = vcmask (!%p487_p7), 57344  }
  0x29   : > { %2833 = vmatpush3.bf16.msra.mxu0 (!%p487_p7), %v982_v32  ;;  %2794 = vmatprep.mubr.msk.bf16.mxu0 (!%p487_p7), %vm3107_vm1, %v3106_v26  ;;  %v3047_v39 = vld [vmem:[%s3264_s13] sm:$0xff] (!%p487_p7)   ;;  %v3043_v42 = vld [vmem:[%s3264_s13 + $0x18] sm:$0xff] (!%p487_p7)   ;;  %v3304_v44 = vld [vmem:[%s3264_s13 + $0x8] sm:$0xff] (!%p487_p7)   ;;  %570 = vst.msk [vmem:[#allocation2 + $0x18] sm:$0xff] (!%p487_p7), %vm566_vm4, %v3106_v26  ;;  %vm1459_vm8 = vcmask (!%p487_p7), 64514   ;;  %vm1461_vm9 = vcmask (!%p487_p7), 58368  }
  0x2a   : > { %2816 = vmatprep.mubr.msk.bf16.mxu1 %vm3107_vm1, %v3106_v26  ;;  %2855 = vmatpush3.bf16.msra.mxu1 %v1134_v34  ;;  %v3044_v43 = vld [vmem:[%s3264_s13 + $0x44] sm:$0xff]   ;;  %v930_v45 = vshll.u32 %v3047_v39, 16  ;;  %v928_v48 = vshrl.u32 %v3047_v39, 16  ;;  %v3062_v49 = vld [vmem:[%s3264_s13 + $0x58] sm:$0xff]   ;;  %v935_v50 = vshll.u32 %v3304_v44, 16  ;;  %v3319_v51 = vld [vmem:[%s3264_s13 + $0x10] sm:$0xff]  }
  0x2b   : > { %2876 = vmatprep.subr.bf16.mxu0 %v3106_v26  ;;  %2898 = vmatprep.subr.bf16.mxu1 %v3106_v26  ;;  %v939_v52 = vshrl.u32 %v3304_v44, 16  ;;  %v3063_v53 = vld [vmem:[%s3264_s13 + $0x60] sm:$0xff]   ;;  %v1590_v56 = vshrl.u32 %v3062_v49, 16  ;;  %v1592_v57 = vshll.u32 %v3062_v49, 16  ;;  %v3046_v59 = vld [vmem:[%s3264_s13 + $0x4c] ss:$0 sps:$4 sm:$0xff]  }
  0x2c   : > { %v3045_v54 = vld [vmem:[%s3264_s13 + $0x20] ss:$0 sps:$4 sm:$0xff]   ;;  %v932_v55 = vrot.slane %v930_v45, 1  ;;  %v3064_v58 = vld [vmem:[%s3264_s13 + $0x4] sm:$0xff]   ;;  %v1597_v60 = vshll.u32 %v3063_v53, 16  ;;  %v3065_v61 = vld [vmem:[%s3264_s13 + $0xc] sm:$0xff]  }
  0x2d   : > { %v1594_v62 = vrot.slane %v1592_v57, 1  ;;  %v1783_v63 = vshrl.u32 %v3064_v58, 16  ;;  %v1785_v0 = vshll.u32 %v3064_v58, 16  ;;  %v3066_v1 = vld [vmem:[%s3264_s13 + $0x68] sm:$0xff]   ;;  %v1790_v3 = vshll.u32 %v3065_v61, 16  ;;  %v3067_v5 = vld [vmem:[%s3264_s13 + $0x14] sm:$0xff]  }
  0x2e   : > { %v1599_v2 = vrot.slane %v1597_v60, 1  ;;  %v1601_v4 = vshrl.u32 %v3063_v53, 16  ;;  %v943_v6 = vshll.u32 %v3319_v51, 16  ;;  %v1605_v9 = vshll.u32 %v3066_v1, 16  ;;  %v3068_v14 = vld [vmem:[%s3264_s13 + $0x70] sm:$0xff]   ;;  %v3069_v27 = vld [vmem:[%s3264_s13 + $0x1c] sm:$0xff]  }
  0x2f   : > { %v1595_v7 = vor.u32 %v1594_v62, %v1590_v56  ;;  %v1787_v8 = vrot.slane %v1785_v0, 1  ;;  %v937_v10 = vrot.slane %v935_v50, 1  ;;  %v1792_v11 = vrot.slane %v1790_v3, 1  ;;  %v3072_v29 = vld [vmem:[%s3264_s13 + $0x30] sm:$0xff]   ;;  %v3351_v32 = vld [vmem:[%s3264_s13 + $0x78] sm:$0x1f]  }
  0x30   : > { %2795 = vmatmul.mubr.msk.bf16.gmra.mrb[4].mxu0 %vm618_vm2, %v3039_v35  ;;  %2817 = vmatmul.mubr.msk.bf16.gmra.mrb[4].mxu1 %vm618_vm2, %v3040_v36  ;;  %v1603_v12 = vor.u32 %v1601_v4, %v1599_v2  ;;  %v1794_v13 = vshrl.u32 %v3065_v61, 16  ;;  %v1607_v17 = vrot.slane %v1605_v9, 1  ;;  %v1798_v18 = vshll.u32 %v3067_v5, 16  ;;  %v3049_v39 = vld [vmem:[%s3264_s13 + $0x58] sm:$0xff]   ;;  %571 = vst.msk [vmem:[#allocation2 + $0x20] sm:$0xff] %vm566_vm4, %v3106_v26  ;;  %572 = vst.msk [vmem:[#allocation2 + $0x28] sm:$0xff] %vm566_vm4, %v3106_v26 }
  0x31   : > { %2798 = vmatprep.mubr.msk.bf16.mxu0 %vm3107_vm1, %v3106_v26  ;;  %2820 = vmatprep.mubr.msk.bf16.mxu1 %vm3107_vm1, %v3106_v26  ;;  %v3335_v15 = vsel %vm926_vm3, %v1595_v7, %v1599_v2  ;;  %v1788_v16 = vor.u32 %v1787_v8, %v1783_v63  ;;  %v933_v19 = vor.u32 %v932_v55, %v928_v48  ;;  %v1609_v21 = vshrl.u32 %v3066_v1, 16  ;;  %v3073_v48 = vld [vmem:[%s3264_s13 + $0x38] sm:$0xff]   ;;  %v3076_v1 = vld [vmem:[%s3264_s13 + $0x40] sm:$0xff]   ;;  %s3856_s30 = smov (!%p543_p8, %s2564_s30), 1 }
  0x32   : > { %v1796_v20 = vor.u32 %v1794_v13, %v1792_v11  ;;  %v1613_v22 = vshll.u32 %v3068_v14, 16  ;;  %v3346_v24 = vsel %vm926_vm3, %v1603_v12, %v1607_v17  ;;  %v1800_v25 = vrot.slane %v1798_v18, 1  ;;  %v3052_v49 = vld [vmem:[%s3264_s13 + $0x18] sm:$0xff]   ;;  %v3414_v18 = vld [vmem:[%s3264_s13 + $0x50] sm:$0x1f]   ;;  %573 = vst.msk [vmem:[#allocation2 + $0x30] sm:$0xff] %vm566_vm4, %v3106_v26  ;;  %s561_s14 = scalar_lea.vmem %s3850_s7, %s3856_s30  ;;  %s564_s17 = scalar_lea.vmem %s3851_s8, %s3856_s30 }
  0x33   : > { %v3343_v23 = vsel %vm926_vm3, %v1788_v16, %v1792_v11  ;;  %v1802_v28 = vshrl.u32 %v3067_v5, 16  ;;  %v1611_v30 = vor.u32 %v1609_v21, %v1607_v17  ;;  %v1617_v33 = vshrl.u32 %v3068_v14, 16  ;;  %v3054_v16 = vld [vmem:[%s3264_s13 + $0x20] sm:$0x1f]   ;;  %574 = vst.msk [vmem:[#allocation2 + $0x38] sm:$0xff] %vm566_vm4, %v3106_v26  ;;  %575 = vst.msk [vmem:[#allocation2 + $0x40] sm:$0xff] %vm566_vm4, %v3106_v26  ;;  %s550_s23 = scalar_lea.vmem %s3847_s4, %s3856_s30 }
  0x34   : > { %v1615_v31 = vrot.slane %v1613_v22, 1  ;;  %v3354_v34 = vsel %vm926_vm3, %v1796_v20, %v1800_v25  ;;  %v1806_v36 = vshll.u32 %v3069_v27, 16  ;;  %v1978_v57 = vshll.u32 %v3072_v29, 16  ;;  %s2726_s26 = sshll.u32 %s3856_s30, 6 }
  0x35   : > { %v1804_v35 = vor.u32 %v1802_v28, %v1800_v25  ;;  %v1983_v58 = vshll.u32 %v3073_v48, 16  ;;  %v945_v60 = vrot.slane %v943_v6, 1  ;;  %v947_v2 = vshrl.u32 %v3319_v51, 16  ;;  %s3650_s27 = scalar_lea.vmem %s3849_s6, %s2726_s26  ;;  %s3755_s20 = scalar_lea.vmem %s3846_s3, %s2726_s26 }
  0x36   : > { %v3359_v40 = vsel %vm926_vm3, %v1611_v30, %v1615_v31  ;;  %v1619_v41 = vor.u32 %v1617_v33, %v1615_v31  ;;  %v1808_v45 = vrot.slane %v1806_v36, 1  ;;  %v1980_v63 = vrot.slane %v1978_v57, 1  ;;  %v3060_v57 = vld [vmem:[%s3264_s13 + $0x9c] sm:$0xff]   ;;  %s553_s26 = scalar_lea.vmem %s3848_s5, %s3856_s30 }
  0x37   : > { %v1985_v0 = vrot.slane %v1983_v58, 1  ;;  %v1991_v4 = vshll.u32 %v3076_v1, 16  ;;  %v951_v6 = vshll.u32 %v3052_v49, 16  ;;  %v949_v13 = vor.u32 %v947_v2, %v945_v60  ;;  %v3061_v58 = vld [vmem:[%s3264_s13 + $0xa4] ss:$0 sps:$4 sm:$0xff]  }
  0x38   : > { %2799 = vmatmul.mubr.msk.bf16.gmra.mrb[8].mxu0 %vm618_vm2, %v3041_v37  ;;  %2821 = vmatmul.mubr.msk.bf16.gmra.mrb[8].mxu1 %vm618_vm2, %v3042_v38  ;;  %v1810_v37 = vshrl.u32 %v3069_v27, 16  ;;  %v938_v38 = vsel %vm926_vm3, %v933_v19, %v937_v10  ;;  %v3372_v55 = vsel %vm926_vm3, %v1804_v35, %v1808_v45  ;;  %v2007_v22 = vshll.u32 %v3414_v18, 16  ;;  %v3053_v27 = vld [vmem:[%s3264_s13 + $0x68] sm:$0xff]  }
  0x39   : > { %2802 = vmatprep.mubr.msk.bf16.mxu0 %vm3107_vm1, %v3106_v26  ;;  %2824 = vmatprep.mubr.msk.bf16.mxu1 %vm3107_vm1, %v3106_v26  ;;  %v1993_v9 = vrot.slane %v1991_v4, 1  ;;  %v953_v14 = vrot.slane %v951_v6, 1  ;;  %v955_v28 = vshrl.u32 %v3052_v49, 16  ;;  %v3081_v2 = vld [vmem:[%s3264_s13 + $0x24] sm:$0x1f]   ;;  %vm1463_vm10 = vcmask 64515  }
  0x3a   : > { %v1812_v56 = vor.u32 %v1810_v37, %v1808_v45  ;;  %v3422_v30 = vrot.slane %v2007_v22, 1  ;;  %v3055_v37 = vld [vmem:[%s3264_s13 + $0x70] sm:$0xff]   ;;  %v3057_v45 = vld [vmem:[%s3264_s13 + $0x84] sm:$0xff]   ;;  %vm1465_vm11 = vcmask 59392   ;;  %vm1467_vm12 = vcmask 64516  }
  0x3b   : > { %v954_v25 = vsel %vm926_vm3, %v949_v13, %v953_v14  ;;  %v957_v33 = vor.u32 %v955_v28, %v953_v14  ;;  %vm1469_vm13 = vcmask 60416   ;;  %vm1471_vm14 = vcmask 64517  }
  0x3c   : > { %vm1473_vm15 = vcmask 61440  }
  0x40   : > { %2803 = vmatmul.mubr.msk.bf16.gmra.mrb[12].mxu0 %vm618_vm2, %v3043_v42  ;;  %2825 = vmatmul.mubr.msk.bf16.gmra.mrb[12].mxu1 %vm618_vm2, %v3044_v43  ;;  %v1621_v42 = vshll.u32 %v3351_v32, 16  ;;  %v3363_v43 = vld [vmem:[%s3264_s13 + $0x24] sm:$0x1f]  }
  0x41   : > { %2806 = vmatprep.mubr.msk.bf16.mxu0 %vm3107_vm1, %v3106_v26  ;;  %2828 = vmatprep.mubr.msk.bf16.mxu1 %vm3107_vm1, %v3106_v26  ;;  %v1814_v53 = vshll.u32 %v3363_v43, 16 }
  0x42   : > { %v3367_v50 = vrot.slane %v1621_v42, 1  ;;  %v2670_v42 = vld [vmem:[%s3844_s1 + $0xa] sm:$0x3] }
  0x43   : > { %v3382_v62 = vrot.slane %v1814_v53, 1  ;;  %v1644_v49 = vsel %vm634_vm0, %v2670_v42, 0 }
  0x44   : > { %v3380_v61 = vsel %vm926_vm3, %v1619_v41, %v3367_v50  ;;  %v3056_v41 = vld [vmem:[%s3264_s13 + $0x78] ss:$0 sps:$4 sm:$0xff]  }
  0x45   : > { %v3394_v44 = vsel %vm926_vm3, %v1812_v56, %v3382_v62  ;;  %v3059_v56 = vld [vmem:[%s3264_s13 + $0x94] sm:$0xff]  }
  0x48   : > { %2807 = vmatmul.mubr.msk.bf16.gmra.mrb[16].mxu0 %vm618_vm2, %v3045_v54  ;;  %2829 = vmatmul.mubr.msk.bf16.gmra.mrb[16].mxu1 %vm618_vm2, %v3046_v59  ;;  %v1976_v54 = vshrl.u32 %v3072_v29, 16  ;;  %v941_v59 = vor.u32 %v939_v52, %v937_v10  ;;  %v1987_v52 = vshrl.u32 %v3073_v48, 16  ;;  %v3078_v10 = vld [vmem:[%s3264_s13 + $0x48] sm:$0xff]   ;;  %v959_v29 = vshll.u32 %v3054_v16, 16  ;;  %v2681_v48 = vld [vmem:[%s3844_s1 + $0xc] sm:$0x3] }
  0x49   : > { %2834 = vmatprep.mubr.msk.bf16.mxu0 %vm3107_vm1, %v3106_v26  ;;  %2856 = vmatprep.mubr.msk.bf16.mxu1 %vm3107_vm1, %v3106_v26  ;;  %v1999_v12 = vshll.u32 %v3078_v10, 16  ;;  %v2003_v19 = vshrl.u32 %v3078_v10, 16  ;;  %v1837_v53 = vsel %vm634_vm0, %v2681_v48, 0 }
  0x4a   : > { %v1981_v3 = vor.u32 %v1980_v63, %v1976_v54  ;;  %v946_v5 = vsel %vm926_vm3, %v941_v59, %v945_v60  ;;  %v1989_v7 = vor.u32 %v1987_v52, %v1985_v0  ;;  %v961_v35 = vrot.slane %v959_v29, 1  ;;  %v3058_v54 = vld [vmem:[%s3264_s13 + $0x8c] sm:$0xff]   ;;  %v2702_v59 = vld [vmem:[%s3844_s1 + $0xe] sm:$0x3]  ;;  %v2713_v60 = vld [vmem:[%s3844_s1 + $0x10] sm:$0x3] }
  0x4b   : > { %v2001_v17 = vrot.slane %v1999_v12, 1  ;;  %v2030_v63 = vsel %vm634_vm0, %v2702_v59, 0 }
  0x4c   : > { %v3400_v8 = vsel %vm926_vm3, %v1981_v3, %v1985_v0  ;;  %v3405_v51 = vsel %vm926_vm3, %v1989_v7, %v1993_v9  ;;  %v962_v36 = vsel %vm926_vm3, %v957_v33, %v961_v35  ;;  %v2194_v0 = vsel %vm634_vm0, %v2713_v60, 0  ;;  %v585_v7 = vld [vmem:[#allocation2] sm:$0xff] }
  0x4d   : > { %v2005_v21 = vor.u32 %v2003_v19, %v2001_v17  ;;  %v2176_v3 = vrot.slane %v3081_v2, 1  ;;  %v588_v19 = vld [vmem:[#allocation2 + $0x18] sm:$0xff]  ;;  %vm1475_vm0 = vcmask 64518  }
  0x4f   : > { %v3427_v31 = vsel %vm926_vm3, %v2005_v21, %v3422_v30 }
  0x50   : > { %2835 = vmatmul.mubr.msk.bf16.vlgmr.msra.gmra.mrb[20].mxu0 %vm618_vm2, %v938_v38  ;;  %2857 = vmatmul.mubr.msk.bf16.vlgmr.msra.gmra.mrb[20].mxu1 %vm618_vm2, %v3049_v39  ;;  %v963_v38 = vshrl.u32 %v3054_v16, 16 }
  0x51   : > { %2877 = vmatpush3.bf16.msra.mxu0 %v3307_v46  ;;  %2838 = vmatprep.mubr.msk.bf16.mxu0 %vm3107_vm1, %v3106_v26  ;;  %v3051_v46 = vld [vmem:[%s3264_s13 + $0x60] sm:$0xff]  }
  0x52   : > { %2860 = vmatprep.mubr.msk.bf16.mxu1 %vm3107_vm1, %v3106_v26  ;;  %2899 = vmatpush3.bf16.msra.mxu1 %v3310_v47  ;;  %v1995_v47 = vshrl.u32 %v3076_v1, 16  ;;  %v965_v39 = vor.u32 %v963_v38, %v961_v35  ;;  %v589_v38 = vld [vmem:[#allocation2 + $0x20] sm:$0xff] }
  0x53   : > { %2920 = vmatprep.subr.bf16.mxu0 %v3106_v26  ;;  %2942 = vmatprep.subr.bf16.mxu1 %v3106_v26 }
  0x54   : > { %v1997_v11 = vor.u32 %v1995_v47, %v1993_v9 }
  0x56   : > { %v3417_v20 = vsel %vm926_vm3, %v1997_v11, %v2001_v17  ;;  %v587_v17 = vld [vmem:[#allocation2 + $0x10] sm:$0xff]  ;;  %vm1481_vm3 = vcmask 63488  }
  0x58   : > { %2839 = vmatmul.mubr.msk.bf16.gmra.mrb[24].mxu0 %vm618_vm2, %v946_v5  ;;  %2861 = vmatmul.mubr.msk.bf16.gmra.mrb[24].mxu1 %vm618_vm2, %v3051_v46  ;;  %v3079_v46 = vld [vmem:[%s3264_s13 + $0x1c] sm:$0xff]   ;;  %v2011_v5 = vshrl.u32 %v3414_v18, 16 }
  0x59   : > { %2842 = vmatprep.mubr.msk.bf16.mxu0 %vm3107_vm1, %v3106_v26  ;;  %2864 = vmatprep.mubr.msk.bf16.mxu1 %vm3107_vm1, %v3106_v26 }
  0x5a   : > { %v2013_v6 = vor.u32 %v2011_v5, %v3422_v30 }
  0x60   : > { %2843 = vmatmul.mubr.msk.bf16.gmra.mrb[28].mxu0 %vm618_vm2, %v954_v25  ;;  %2865 = vmatmul.mubr.msk.bf16.gmra.mrb[28].mxu1 %vm618_vm2, %v3053_v27 }
  0x61   : > { %2846 = vmatprep.mubr.msk.bf16.mxu0 %vm3107_vm1, %v3106_v26  ;;  %2868 = vmatprep.mubr.msk.bf16.mxu1 %vm3107_vm1, %v3106_v26 }
  0x68   : > { %2847 = vmatmul.mubr.msk.bf16.gmra.mrb[32].mxu0 %vm618_vm2, %v962_v36  ;;  %2869 = vmatmul.mubr.msk.bf16.gmra.mrb[32].mxu1 %vm618_vm2, %v3055_v37 }
  0x69   : > { %2850 = vmatprep.mubr.msk.bf16.mxu0 %vm3107_vm1, %v3106_v26  ;;  %2872 = vmatprep.mubr.msk.bf16.mxu1 %vm3107_vm1, %v3106_v26 }
  0x70   : > { %2851 = vmatmul.mubr.msk.bf16.gmra.mrb[36].mxu0 %vm618_vm2, %v965_v39  ;;  %2873 = vmatmul.mubr.msk.bf16.gmra.mrb[36].mxu1 %vm618_vm2, %v3056_v41  ;;  %v590_v41 = vld [vmem:[#allocation2 + $0x28] sm:$0xff] }
  0x71   : > { %2878 = vmatprep.mubr.msk.bf16.mxu0 %vm3107_vm1, %v3106_v26  ;;  %2900 = vmatprep.mubr.msk.bf16.mxu1 %vm3107_vm1, %v3106_v26 }
  0x78   : > { %2879 = vmatmul.mubr.msk.bf16.vlgmr.msra.gmra.mrb[40].mxu0 %vm618_vm2, %v3057_v45  ;;  %2901 = vmatmul.mubr.msk.bf16.vlgmr.msra.gmra.mrb[40].mxu1 %vm618_vm2, %v3057_v45 }
  0x79   : > { %2921 = vmatpush3.bf16.msra.mxu0 %v1644_v49  ;;  %2882 = vmatprep.mubr.msk.bf16.mxu0 %vm3107_vm1, %v3106_v26 }
  0x7a   : > { %2904 = vmatprep.mubr.msk.bf16.mxu1 %vm3107_vm1, %v3106_v26  ;;  %2943 = vmatpush3.bf16.msra.mxu1 %v1837_v53 }
  0x7b   : > { %2964 = vmatprep.subr.bf16.mxu0 %v3106_v26  ;;  %2986 = vmatprep.subr.bf16.mxu1 %v3106_v26 }
  0x80   : > { %2883 = vmatmul.mubr.msk.bf16.gmra.mrb[44].mxu0 %vm618_vm2, %v3058_v54  ;;  %2905 = vmatmul.mubr.msk.bf16.gmra.mrb[44].mxu1 %vm618_vm2, %v3058_v54 }
  0x81   : > { %2886 = vmatprep.mubr.msk.bf16.mxu0 %vm3107_vm1, %v3106_v26  ;;  %2908 = vmatprep.mubr.msk.bf16.mxu1 %vm3107_vm1, %v3106_v26 }
  0x88   : > { %2887 = vmatmul.mubr.msk.bf16.gmra.mrb[48].mxu0 %vm618_vm2, %v3059_v56  ;;  %2909 = vmatmul.mubr.msk.bf16.gmra.mrb[48].mxu1 %vm618_vm2, %v3059_v56 }
  0x89   : > { %2890 = vmatprep.mubr.msk.bf16.mxu0 %vm3107_vm1, %v3106_v26  ;;  %2912 = vmatprep.mubr.msk.bf16.mxu1 %vm3107_vm1, %v3106_v26 }
  0x90   : > { %2891 = vmatmul.mubr.msk.bf16.gmra.mrb[52].mxu0 %vm618_vm2, %v3060_v57  ;;  %2913 = vmatmul.mubr.msk.bf16.gmra.mrb[52].mxu1 %vm618_vm2, %v3060_v57 }
  0x91   : > { %2894 = vmatprep.mubr.msk.bf16.mxu0 %vm3107_vm1, %v3106_v26  ;;  %2916 = vmatprep.mubr.msk.bf16.mxu1 %vm3107_vm1, %v3106_v26 }
  0x98   : > { %2895 = vmatmul.mubr.msk.bf16.gmra.mrb[56].mxu0 %vm618_vm2, %v3061_v58  ;;  %2917 = vmatmul.mubr.msk.bf16.gmra.mrb[56].mxu1 %vm618_vm2, %v3061_v58 }
  0x99   : > { %2922 = vmatprep.mubr.msk.bf16.mxu0 %vm3107_vm1, %v3106_v26  ;;  %2944 = vmatprep.mubr.msk.bf16.mxu1 %vm3107_vm1, %v3106_v26 }
  0xa0   : > { %2923 = vmatmul.mubr.msk.bf16.vlgmr.msra.gmra.mrb[60].mxu0 %vm618_vm2, %v3335_v15  ;;  %2945 = vmatmul.mubr.msk.bf16.vlgmr.msra.gmra.mrb[60].mxu1 %vm618_vm2, %v3343_v23  ;;  %v1625_v15 = vshrl.u32 %v3351_v32, 16  ;;  %v1818_v23 = vshrl.u32 %v3363_v43, 16 }
  0xa1   : > { %2965 = vmatpush3.bf16.msra.mxu0 %v2030_v63  ;;  %2926 = vmatprep.mubr.msk.bf16.mxu0 %vm3107_vm1, %v3106_v26 }
  0xa2   : > { %2987 = vmatpush3.bf16.msra.mxu1 %v2194_v0  ;;  %2948 = vmatprep.mubr.msk.bf16.mxu1 %vm3107_vm1, %v3106_v26 }
  0xa8   : > { %2927 = vmatmul.mubr.msk.bf16.gmra.mrb[64].mxu0 %vm618_vm2, %v3346_v24  ;;  %2949 = vmatmul.mubr.msk.bf16.gmra.mrb[64].mxu1 %vm618_vm2, %v3354_v34  ;;  %v1627_v24 = vor.u32 %v1625_v15, %v3367_v50  ;;  %v1820_v34 = vor.u32 %v1818_v23, %v3382_v62  ;;  %v591_v15 = vld [vmem:[#allocation2 + $0x30] sm:$0xff] }
  0xa9   : > { %2930 = vmatprep.mubr.msk.bf16.mxu0 %vm3107_vm1, %v3106_v26  ;;  %2952 = vmatprep.mubr.msk.bf16.mxu1 %vm3107_vm1, %v3106_v26 }
  0xb0   : > { %2931 = vmatmul.mubr.msk.bf16.gmra.mrb[68].mxu0 %vm618_vm2, %v3359_v40  ;;  %2953 = vmatmul.mubr.msk.bf16.gmra.mrb[68].mxu1 %vm618_vm2, %v3372_v55  ;;  %v3074_v40 = vld [vmem:[%s3264_s13 + $0x4] sm:$0xfe]   ;;  %v3075_v55 = vld [vmem:[%s3264_s13 + $0xc] sm:$0xff]  }
  0xb1   : > { %2934 = vmatprep.mubr.msk.bf16.mxu0 %vm3107_vm1, %v3106_v26  ;;  %2956 = vmatprep.mubr.msk.bf16.mxu1 %vm3107_vm1, %v3106_v26  ;;  %v2169_v32 = vrot.slane %v3074_v40, 1  ;;  %v2170_v43 = vrot.slane %v3075_v55, 1 }
  0xb3   : > { %v2171_v50 = vsel %vm2168_vm5, %v2169_v32, %v2170_v43 }
  0xb8   : > { %2935 = vmatmul.mubr.msk.bf16.gmra.mrb[72].mxu0 %vm618_vm2, %v3380_v61  ;;  %2957 = vmatmul.mubr.msk.bf16.gmra.mrb[72].mxu1 %vm618_vm2, %v3394_v44  ;;  %v3077_v61 = vld [vmem:[%s3264_s13 + $0x14] sm:$0xff]   ;;  %v2174_v44 = vrot.slane %v3079_v46, 1 }
  0xb9   : > { %2938 = vmatprep.mubr.msk.bf16.mxu0 %vm3107_vm1, %v3106_v26  ;;  %2960 = vmatprep.mubr.msk.bf16.mxu1 %vm3107_vm1, %v3106_v26  ;;  %v2172_v62 = vrot.slane %v3077_v61, 1 }
  0xba   : > { %v2177_v4 = vsel %vm2168_vm5, %v2174_v44, %v2176_v3 }
  0xbb   : > { %v2173_v1 = vsel %vm2168_vm5, %v2170_v43, %v2172_v62  ;;  %v2175_v52 = vsel %vm2168_vm5, %v2172_v62, %v2174_v44 }
  0xc0   : > { %2939 = vmatmul.mubr.msk.bf16.gmra.mrb[76].mxu0 %vm618_vm2, %v1627_v24  ;;  %2961 = vmatmul.mubr.msk.bf16.gmra.mrb[76].mxu1 %vm618_vm2, %v1820_v34  ;;  %v592_v24 = vld [vmem:[#allocation2 + $0x38] sm:$0xff] }
  0xc1   : > { %2966 = vmatprep.mubr.msk.bf16.mxu0 %vm3107_vm1, %v3106_v26  ;;  %2988 = vmatprep.mubr.msk.bf16.mxu1 %vm3107_vm1, %v3106_v26 }
  0xc8   : > { %2967 = vmatmul.mubr.msk.bf16.vlgmr.msra.gmra.mrb[80].mxu0 %vm618_vm2, %v3400_v8  ;;  %2989 = vmatmul.mubr.msk.bf16.vlgmr.msra.gmra.mrb[80].mxu1 %vm618_vm2, %v2171_v50  ;;  %v586_v8 = vld [vmem:[#allocation2 + $0x8] sm:$0xff] }
  0xc9   : > { %2970 = vmatprep.mubr.msk.bf16.mxu0 %vm3107_vm1, %v3106_v26  ;;  %2992 = vmatprep.mubr.msk.bf16.mxu1 %vm3107_vm1, %v3106_v26 }
  0xd0   : > { %2971 = vmatmul.mubr.msk.bf16.gmra.mrb[84].mxu0 %vm618_vm2, %v3405_v51  ;;  %2993 = vmatmul.mubr.msk.bf16.gmra.mrb[84].mxu1 %vm618_vm2, %v2173_v1 }
  0xd1   : > { %2974 = vmatprep.mubr.msk.bf16.mxu0 %vm3107_vm1, %v3106_v26  ;;  %2996 = vmatprep.mubr.msk.bf16.mxu1 %vm3107_vm1, %v3106_v26 }
  0xd8   : > { %2975 = vmatmul.mubr.msk.bf16.gmra.mrb[88].mxu0 %vm618_vm2, %v3417_v20  ;;  %2997 = vmatmul.mubr.msk.bf16.gmra.mrb[88].mxu1 %vm618_vm2, %v2175_v52 }
  0xd9   : > { %2978 = vmatprep.mubr.msk.bf16.mxu0 %vm3107_vm1, %v3106_v26  ;;  %3000 = vmatprep.mubr.msk.bf16.mxu1 %vm3107_vm1, %v3106_v26 }
  0xe0   : > { %2979 = vmatmul.mubr.msk.bf16.gmra.mrb[92].mxu0 %vm618_vm2, %v3427_v31  ;;  %3001 = vmatmul.mubr.msk.bf16.gmra.mrb[92].mxu1 %vm618_vm2, %v2177_v4 }
  0xe1   : > { %2982 = vmatprep.mubr.msk.bf16.mxu0 %vm3107_vm1, %v3106_v26  ;;  %3004 = vmatprep.mubr.msk.bf16.mxu1 %vm3107_vm1, %v3106_v26  ;;  %vm1477_vm1 = vcmask 62464  }
  0xe8   : > { %2983 = vmatmul.mubr.msk.bf16.gmra.mrb[96].mxu0 %vm618_vm2, %v2013_v6  ;;  %3005 = vmatmul.mubr.msk.bf16.gmra.mrb[96].mxu1 %vm618_vm2, %v2176_v3  ;;  %v593_v3 = vld [vmem:[#allocation2 + $0x40] sm:$0xff]  ;;  %vm1479_vm2 = vcmask 64519  }
  0xfb   : > { %v672_v47 = vpop.f32.mrb[0].mxu0  ;;  %v824_v51 = vpop.f32.mrb[0].mxu1 }
  0xfc   : > { %v710_v9 = vadd.f32 %v672_v47, %v585_v7  ;;  %v2792_v10 = vpop.f32.mrb[1].mxu0  ;;  %v2814_v12 = vpop.f32.mrb[1].mxu1 }
  0xfd   : > { %v675_v11 = vpop.f32.mrb[2].mxu0  ;;  %v827_v16 = vpop.f32.mrb[2].mxu1 }
  0xfe   : > { %719 = vst.msk [vmem:[#allocation2] sm:$0xff] %vm566_vm4, %v710_v9  ;;  %v711_v13 = vadd.f32 %v675_v11, %v586_v8  ;;  %v2793_v14 = vpop.f32.mrb[3].mxu0  ;;  %v2815_v26 = vpop.f32.mrb[3].mxu1 }
 0x100   : > { %720 = vst.msk [vmem:[#allocation2 + $0x8] sm:$0xff] %vm566_vm4, %v711_v13 }
 0x103   : > { %v680_v18 = vpop.f32.mrb[4].mxu0  ;;  %v832_v22 = vpop.f32.mrb[4].mxu1 }
 0x104   : > { %v712_v20 = vadd.f32 %v680_v18, %v587_v17  ;;  %v2796_v21 = vpop.f32.mrb[5].mxu0  ;;  %v2818_v28 = vpop.f32.mrb[5].mxu1 }
 0x105   : > { %v738_v25 = vld [vmem:[#allocation2] sm:$0xff]  ;;  %v683_v27 = vpop.f32.mrb[6].mxu0  ;;  %v835_v33 = vpop.f32.mrb[6].mxu1 }
 0x106   : > { %v862_v29 = vadd.f32 %v824_v51, %v738_v25  ;;  %721 = vst.msk [vmem:[#allocation2 + $0x10] sm:$0xff] %vm566_vm4, %v712_v20  ;;  %v713_v30 = vadd.f32 %v683_v27, %v588_v19  ;;  %v2797_v31 = vpop.f32.mrb[7].mxu0  ;;  %v2819_v36 = vpop.f32.mrb[7].mxu1 }
 0x107   : > { %v739_v35 = vld [vmem:[#allocation2 + $0x8] sm:$0xff] }
 0x108   : > { %871 = vst.msk [vmem:[#allocation2] sm:$0xff] %vm566_vm4, %v862_v29  ;;  %v863_v37 = vadd.f32 %v827_v16, %v739_v35  ;;  %722 = vst.msk [vmem:[#allocation2 + $0x18] sm:$0xff] %vm566_vm4, %v713_v30 }
 0x10a   : > { %872 = vst.msk [vmem:[#allocation2 + $0x8] sm:$0xff] %vm566_vm4, %v863_v37 }
 0x10b   : > { %v688_v39 = vpop.f32.mrb[8].mxu0  ;;  %v840_v48 = vpop.f32.mrb[8].mxu1 }
 0x10c   : > { %v714_v42 = vadd.f32 %v688_v39, %v589_v38  ;;  %v2800_v45 = vpop.f32.mrb[9].mxu0  ;;  %v2822_v54 = vpop.f32.mrb[9].mxu1 }
 0x10d   : > { %v740_v49 = vld [vmem:[#allocation2 + $0x10] sm:$0xff]  ;;  %v691_v53 = vpop.f32.mrb[10].mxu0  ;;  %v843_v59 = vpop.f32.mrb[10].mxu1 }
 0x10e   : > { %v864_v56 = vadd.f32 %v832_v22, %v740_v49  ;;  %723 = vst.msk [vmem:[#allocation2 + $0x20] sm:$0xff] %vm566_vm4, %v714_v42  ;;  %v715_v57 = vadd.f32 %v691_v53, %v590_v41  ;;  %v2801_v58 = vpop.f32.mrb[11].mxu0  ;;  %v2823_v63 = vpop.f32.mrb[11].mxu1 }
 0x10f   : > { %v741_v60 = vld [vmem:[#allocation2 + $0x18] sm:$0xff]  ;;  %v890_v16 = vld [vmem:[#allocation2] sm:$0xff] }
 0x110   : > { %873 = vst.msk [vmem:[#allocation2 + $0x10] sm:$0xff] %vm566_vm4, %v864_v56  ;;  %v865_v0 = vadd.f32 %v835_v33, %v741_v60  ;;  %724 = vst.msk [vmem:[#allocation2 + $0x28] sm:$0xff] %vm566_vm4, %v715_v57 }
 0x111   : > { %v891_v21 = vld [vmem:[#allocation2 + $0x8] sm:$0xff] }
 0x112   : > { %874 = vst.msk [vmem:[#allocation2 + $0x18] sm:$0xff] %vm566_vm4, %v865_v0 }
 0x113   : > { %v696_v23 = vpop.f32.mrb[12].mxu0  ;;  %v848_v55 = vpop.f32.mrb[12].mxu1 }
 0x114   : > { %v716_v34 = vadd.f32 %v696_v23, %v591_v15  ;;  %v2804_v40 = vpop.f32.mrb[13].mxu0  ;;  %v2826_v50 = vpop.f32.mrb[13].mxu1 }
 0x115   : > { %v742_v32 = vld [vmem:[#allocation2 + $0x20] sm:$0xff]  ;;  %v699_v43 = vpop.f32.mrb[14].mxu0  ;;  %v851_v46 = vpop.f32.mrb[14].mxu1 }
 0x116   : > { %v866_v61 = vadd.f32 %v840_v48, %v742_v32  ;;  %725 = vst.msk [vmem:[#allocation2 + $0x30] sm:$0xff] %vm566_vm4, %v716_v34  ;;  %v717_v62 = vadd.f32 %v699_v43, %v592_v24  ;;  %v2805_v1 = vpop.f32.mrb[15].mxu0  ;;  %v2827_v52 = vpop.f32.mrb[15].mxu1 }
 0x117   : > { %v743_v44 = vld [vmem:[#allocation2 + $0x28] sm:$0xff]  ;;  %v892_v33 = vld [vmem:[#allocation2 + $0x10] sm:$0xff] }
 0x118   : > { %875 = vst.msk [vmem:[#allocation2 + $0x20] sm:$0xff] %vm566_vm4, %v866_v61  ;;  %v867_v2 = vadd.f32 %v843_v59, %v743_v44  ;;  %726 = vst.msk [vmem:[#allocation2 + $0x38] sm:$0xff] %vm566_vm4, %v717_v62 }
 0x119   : > { %v893_v41 = vld [vmem:[#allocation2 + $0x18] sm:$0xff] }
 0x11a   : > { %876 = vst.msk [vmem:[#allocation2 + $0x28] sm:$0xff] %vm566_vm4, %v867_v2 }
 0x11b   : > { %v704_v4 = vpop.f32.mrb[16].mxu0  ;;  %v856_v7 = vpop.f32.mrb[16].mxu1 }
 0x11c   : > { %v718_v5 = vadd.f32 %v704_v4, %v593_v3  ;;  %v2808_v6 = vpop.f32.mrb[17].mxu0  ;;  %v2830_v9 = vpop.f32.mrb[17].mxu1 }
 0x11d   : > { %v744_v47 = vld [vmem:[#allocation2 + $0x30] sm:$0xff]  ;;  %v707_v8 = vpop.f32.mrb[18].mxu0  ;;  %v859_v11 = vpop.f32.mrb[18].mxu1 }
 0x11e   : > { %v868_v10 = vadd.f32 %v848_v55, %v744_v47  ;;  %727 = vst.msk [vmem:[#allocation2 + $0x40] sm:$0xff] %vm566_vm4, %v718_v5  ;;  %v2809_v51 = vpop.f32.mrb[19].mxu0  ;;  %v2831_v13 = vpop.f32.mrb[19].mxu1 }
 0x11f   : > { %v745_v12 = vld [vmem:[#allocation2 + $0x38] sm:$0xff]  ;;  %v894_v59 = vld [vmem:[#allocation2 + $0x20] sm:$0xff] }
 0x120   : > { %877 = vst.msk [vmem:[#allocation2 + $0x30] sm:$0xff] %vm566_vm4, %v868_v10  ;;  %v869_v14 = vadd.f32 %v851_v46, %v745_v12 }
 0x121   : > { %v895_v24 = vld [vmem:[#allocation2 + $0x28] sm:$0xff] }
 0x122   : > { %878 = vst.msk [vmem:[#allocation2 + $0x38] sm:$0xff] %vm566_vm4, %v869_v14 }
 0x123   : > { %v1018_v26 = vpop.f32.mrb[20].mxu0  ;;  %v1170_v19 = vpop.f32.mrb[20].mxu1 }
 0x124   : > { %v1056_v17 = vadd.f32 %v1018_v26, %v890_v16  ;;  %v2836_v18 = vpop.f32.mrb[21].mxu0  ;;  %v2858_v25 = vpop.f32.mrb[21].mxu1 }
 0x125   : > { %v746_v20 = vld [vmem:[#allocation2 + $0x40] sm:$0xff]  ;;  %v1021_v22 = vpop.f32.mrb[22].mxu0  ;;  %v1173_v30 = vpop.f32.mrb[22].mxu1 }
 0x126   : > { %v870_v27 = vadd.f32 %v856_v7, %v746_v20  ;;  %1065 = vst.msk [vmem:[#allocation2] sm:$0xff] %vm566_vm4, %v1056_v17  ;;  %v1057_v28 = vadd.f32 %v1021_v22, %v891_v21  ;;  %v2837_v29 = vpop.f32.mrb[23].mxu0  ;;  %v2859_v31 = vpop.f32.mrb[23].mxu1 }
 0x127   : > { %v896_v46 = vld [vmem:[#allocation2 + $0x30] sm:$0xff] }
 0x128   : > { %879 = vst.msk [vmem:[#allocation2 + $0x40] sm:$0xff] %vm566_vm4, %v870_v27  ;;  %1066 = vst.msk [vmem:[#allocation2 + $0x8] sm:$0xff] %vm566_vm4, %v1057_v28 }
 0x129   : > { %v897_v5 = vld [vmem:[#allocation2 + $0x38] sm:$0xff] }
 0x12b   : > { %v1026_v35 = vpop.f32.mrb[24].mxu0  ;;  %v1178_v38 = vpop.f32.mrb[24].mxu1 }
 0x12c   : > { %v1058_v36 = vadd.f32 %v1026_v35, %v892_v33  ;;  %v2840_v37 = vpop.f32.mrb[25].mxu0  ;;  %v2862_v45 = vpop.f32.mrb[25].mxu1 }
 0x12d   : > { %v1084_v39 = vld [vmem:[#allocation2] sm:$0xff]  ;;  %v1029_v42 = vpop.f32.mrb[26].mxu0  ;;  %v1181_v54 = vpop.f32.mrb[26].mxu1 }
 0x12e   : > { %v1208_v48 = vadd.f32 %v1170_v19, %v1084_v39  ;;  %1067 = vst.msk [vmem:[#allocation2 + $0x10] sm:$0xff] %vm566_vm4, %v1058_v36  ;;  %v1059_v49 = vadd.f32 %v1029_v42, %v893_v41  ;;  %v2841_v53 = vpop.f32.mrb[27].mxu0  ;;  %v2863_v57 = vpop.f32.mrb[27].mxu1 }
 0x12f   : > { %v1085_v56 = vld [vmem:[#allocation2 + $0x8] sm:$0xff]  ;;  %v898_v13 = vld [vmem:[#allocation2 + $0x40] sm:$0xff] }
 0x130   : > { %1217 = vst.msk [vmem:[#allocation2] sm:$0xff] %vm566_vm4, %v1208_v48  ;;  %v1209_v58 = vadd.f32 %v1173_v30, %v1085_v56  ;;  %1068 = vst.msk [vmem:[#allocation2 + $0x18] sm:$0xff] %vm566_vm4, %v1059_v49 }
 0x132   : > { %1218 = vst.msk [vmem:[#allocation2 + $0x8] sm:$0xff] %vm566_vm4, %v1209_v58 }
 0x133   : > { %v1034_v60 = vpop.f32.mrb[28].mxu0  ;;  %v1186_v15 = vpop.f32.mrb[28].mxu1 }
 0x134   : > { %v1060_v63 = vadd.f32 %v1034_v60, %v894_v59  ;;  %v2844_v0 = vpop.f32.mrb[29].mxu0  ;;  %v2866_v40 = vpop.f32.mrb[29].mxu1 }
 0x135   : > { %v1086_v23 = vld [vmem:[#allocation2 + $0x10] sm:$0xff]  ;;  %v1037_v34 = vpop.f32.mrb[30].mxu0  ;;  %v1189_v50 = vpop.f32.mrb[30].mxu1 }
 0x136   : > { %v1210_v55 = vadd.f32 %v1178_v38, %v1086_v23  ;;  %1069 = vst.msk [vmem:[#allocation2 + $0x20] sm:$0xff] %vm566_vm4, %v1060_v63  ;;  %v1061_v32 = vadd.f32 %v1037_v34, %v895_v24  ;;  %v2845_v43 = vpop.f32.mrb[31].mxu0  ;;  %v2867_v62 = vpop.f32.mrb[31].mxu1 }
 0x137   : > { %v1087_v61 = vld [vmem:[#allocation2 + $0x18] sm:$0xff]  ;;  %v1236_v30 = vld [vmem:[#allocation2] sm:$0xff] }
 0x138   : > { %1219 = vst.msk [vmem:[#allocation2 + $0x10] sm:$0xff] %vm566_vm4, %v1210_v55  ;;  %v1211_v1 = vadd.f32 %v1181_v54, %v1087_v61  ;;  %1070 = vst.msk [vmem:[#allocation2 + $0x28] sm:$0xff] %vm566_vm4, %v1061_v32 }
 0x139   : > { %v1237_v38 = vld [vmem:[#allocation2 + $0x8] sm:$0xff] }
 0x13a   : > { %1220 = vst.msk [vmem:[#allocation2 + $0x18] sm:$0xff] %vm566_vm4, %v1211_v1 }
 0x13b   : > { %v1042_v44 = vpop.f32.mrb[32].mxu0  ;;  %v1194_v3 = vpop.f32.mrb[32].mxu1 }
 0x13c   : > { %v1062_v52 = vadd.f32 %v1042_v44, %v896_v46  ;;  %v2848_v2 = vpop.f32.mrb[33].mxu0  ;;  %v2870_v7 = vpop.f32.mrb[33].mxu1 }
 0x13d   : > { %v1088_v4 = vld [vmem:[#allocation2 + $0x20] sm:$0xff]  ;;  %v1045_v6 = vpop.f32.mrb[34].mxu0  ;;  %v1197_v10 = vpop.f32.mrb[34].mxu1 }
 0x13e   : > { %v1212_v47 = vadd.f32 %v1186_v15, %v1088_v4  ;;  %1071 = vst.msk [vmem:[#allocation2 + $0x30] sm:$0xff] %vm566_vm4, %v1062_v52  ;;  %v1063_v8 = vadd.f32 %v1045_v6, %v897_v5  ;;  %v2849_v9 = vpop.f32.mrb[35].mxu0  ;;  %v2871_v11 = vpop.f32.mrb[35].mxu1 }
 0x13f   : > { %v1089_v51 = vld [vmem:[#allocation2 + $0x28] sm:$0xff]  ;;  %v1238_v54 = vld [vmem:[#allocation2 + $0x10] sm:$0xff] }
 0x140   : > { %1221 = vst.msk [vmem:[#allocation2 + $0x20] sm:$0xff] %vm566_vm4, %v1212_v47  ;;  %v1213_v12 = vadd.f32 %v1189_v50, %v1089_v51  ;;  %1072 = vst.msk [vmem:[#allocation2 + $0x38] sm:$0xff] %vm566_vm4, %v1063_v8 }
 0x141   : > { %v1239_v60 = vld [vmem:[#allocation2 + $0x18] sm:$0xff] }
 0x142   : > { %1222 = vst.msk [vmem:[#allocation2 + $0x28] sm:$0xff] %vm566_vm4, %v1213_v12 }
 0x143   : > { %v1050_v14 = vpop.f32.mrb[36].mxu0  ;;  %v1202_v17 = vpop.f32.mrb[36].mxu1 }
 0x144   : > { %v1064_v16 = vadd.f32 %v1050_v14, %v898_v13  ;;  %v2852_v26 = vpop.f32.mrb[37].mxu0  ;;  %v2874_v20 = vpop.f32.mrb[37].mxu1 }
 0x145   : > { %v1090_v18 = vld [vmem:[#allocation2 + $0x30] sm:$0xff]  ;;  %v1053_v19 = vpop.f32.mrb[38].mxu0  ;;  %v1205_v25 = vpop.f32.mrb[38].mxu1 }
 0x146   : > { %v1214_v21 = vadd.f32 %v1194_v3, %v1090_v18  ;;  %1073 = vst.msk [vmem:[#allocation2 + $0x40] sm:$0xff] %vm566_vm4, %v1064_v16  ;;  %v2853_v22 = vpop.f32.mrb[39].mxu0  ;;  %v2875_v28 = vpop.f32.mrb[39].mxu1 }
 0x147   : > { %v1091_v27 = vld [vmem:[#allocation2 + $0x38] sm:$0xff]  ;;  %v1240_v40 = vld [vmem:[#allocation2 + $0x20] sm:$0xff] }
 0x148   : > { %1223 = vst.msk [vmem:[#allocation2 + $0x30] sm:$0xff] %vm566_vm4, %v1214_v21  ;;  %v1215_v29 = vadd.f32 %v1197_v10, %v1091_v27 }
 0x149   : > { %v1241_v46 = vld [vmem:[#allocation2 + $0x28] sm:$0xff] }
 0x14a   : > { %1224 = vst.msk [vmem:[#allocation2 + $0x38] sm:$0xff] %vm566_vm4, %v1215_v29 }
 0x14b   : > { %v1322_v31 = vpop.f32.mrb[40].mxu0  ;;  %v1416_v36 = vpop.f32.mrb[40].mxu1 }
 0x14c   : > { %v1360_v33 = vadd.f32 %v1322_v31, %v1236_v30  ;;  %v2880_v35 = vpop.f32.mrb[41].mxu0  ;;  %1454 = vst.msk [vmem:[%s3650_s27] sm:$0xff] %vm566_vm4, %v1416_v36  ;;  %v2902_v41 = vpop.f32.mrb[41].mxu1 }
 0x14d   : > { %v1092_v37 = vld [vmem:[#allocation2 + $0x40] sm:$0xff]  ;;  %v1325_v39 = vpop.f32.mrb[42].mxu0  ;;  %v1419_v49 = vpop.f32.mrb[42].mxu1 }
 0x14e   : > { %v1216_v42 = vadd.f32 %v1202_v17, %v1092_v37  ;;  %1369 = vst.msk [vmem:[#allocation2] sm:$0xff] %vm566_vm4, %v1360_v33  ;;  %v1361_v45 = vadd.f32 %v1325_v39, %v1237_v38  ;;  %v2881_v48 = vpop.f32.mrb[43].mxu0  ;;  %v2903_v53 = vpop.f32.mrb[43].mxu1 }
 0x14f   : > { %1456 = vst.msk [vmem:[%s3650_s27 + $0x7] sm:$0xfe] %vm1455_vm6, %v1419_v49  ;;  %v1242_v11 = vld [vmem:[#allocation2 + $0x30] sm:$0xff] }
 0x150   : > { %1225 = vst.msk [vmem:[#allocation2 + $0x40] sm:$0xff] %vm566_vm4, %v1216_v42  ;;  %1370 = vst.msk [vmem:[#allocation2 + $0x8] sm:$0xff] %vm566_vm4, %v1361_v45 }
 0x151   : > { %v1243_v21 = vld [vmem:[#allocation2 + $0x38] sm:$0xff] }
 0x153   : > { %v1330_v56 = vpop.f32.mrb[44].mxu0  ;;  %v1424_v59 = vpop.f32.mrb[44].mxu1  ;;  %v1483_v32 = vld [vmem:[%s3650_s27] sm:$0xff] }
 0x154   : > { %v1362_v57 = vadd.f32 %v1330_v56, %v1238_v54  ;;  %v2884_v58 = vpop.f32.mrb[45].mxu0  ;;  %1458 = vst.msk [vmem:[%s3650_s27 + $0xf] sm:$0x1] %vm1457_vm7, %v1424_v59  ;;  %v2906_v0 = vpop.f32.mrb[45].mxu1  ;;  %v1513_v4 = vmul.f32 %v1483_v32, %v1483_v32  ;;  %v1491_v47 = vsel %vm566_vm4, %v1483_v32, 0.0 }
 0x155   : > { %v1333_v63 = vpop.f32.mrb[46].mxu0  ;;  %1460 = vst.msk [vmem:[%s3650_s27 + $0xe] sm:$0xfc] %vm1459_vm8, %v1424_v59  ;;  %v1427_v24 = vpop.f32.mrb[46].mxu1 }
 0x156   : > { %1371 = vst.msk [vmem:[#allocation2 + $0x10] sm:$0xff] %vm566_vm4, %v1362_v57  ;;  %v1363_v15 = vadd.f32 %v1333_v63, %v1239_v60  ;;  %v2885_v23 = vpop.f32.mrb[47].mxu0  ;;  %v2907_v34 = vpop.f32.mrb[47].mxu1  ;;  %v1521_v9 = vsel %vm566_vm4, %v1513_v4, 0.0 }
 0x157   : > { %1462 = vst.msk [vmem:[%s3650_s27 + $0x16] sm:$0x3] %vm1461_vm9, %v1427_v24  ;;  %v1244_v45 = vld [vmem:[#allocation2 + $0x40] sm:$0xff] }
 0x158   : > { %1464 = vst.msk [vmem:[%s3650_s27 + $0x15] sm:$0xf8] %vm1463_vm10, %v1427_v24 }
 0x159   : > { %1372 = vst.msk [vmem:[#allocation2 + $0x18] sm:$0xff] %vm566_vm4, %v1363_v15 }
 0x15b   : > { %v1338_v55 = vpop.f32.mrb[48].mxu0  ;;  %v1484_v43 = vld [vmem:[%s3650_s27 + $0x8] sm:$0xff]  ;;  %v1432_v61 = vpop.f32.mrb[48].mxu1 }
 0x15c   : > { %v1364_v50 = vadd.f32 %v1338_v55, %v1240_v40  ;;  %v2888_v62 = vpop.f32.mrb[49].mxu0  ;;  %1466 = vst.msk [vmem:[%s3650_s27 + $0x1d] sm:$0x7] %vm1465_vm11, %v1432_v61  ;;  %v2910_v1 = vpop.f32.mrb[49].mxu1  ;;  %v1514_v5 = vmul.f32 %v1484_v43, %v1484_v43  ;;  %v1492_v8 = vsel %vm566_vm4, %v1484_v43, 0.0 }
 0x15d   : > { %1468 = vst.msk [vmem:[%s3650_s27 + $0x1c] sm:$0xf0] %vm1467_vm12, %v1432_v61  ;;  %v1341_v44 = vpop.f32.mrb[50].mxu0  ;;  %v1435_v2 = vpop.f32.mrb[50].mxu1  ;;  %v1493_v13 = vadd.f32 %v1492_v8, %v1491_v47 }
 0x15e   : > { %1373 = vst.msk [vmem:[#allocation2 + $0x20] sm:$0xff] %vm566_vm4, %v1364_v50  ;;  %v1365_v52 = vadd.f32 %v1341_v44, %v1241_v46  ;;  %v2889_v3 = vpop.f32.mrb[51].mxu0  ;;  %v2911_v6 = vpop.f32.mrb[51].mxu1  ;;  %v1485_v7 = vld [vmem:[%s3650_s27 + $0x10] sm:$0xff]  ;;  %v1522_v10 = vsel %vm566_vm4, %v1514_v5, 0.0  ;;  %v1553_v46 = vld [vmem:[#allocation2] sm:$0xff] }
 0x15f   : > { %1470 = vst.msk [vmem:[%s3650_s27 + $0x24] sm:$0xf] %vm1469_vm13, %v1435_v2  ;;  %v1515_v51 = vmul.f32 %v1485_v7, %v1485_v7  ;;  %v1494_v18 = vsel %vm566_vm4, %v1485_v7, 0.0  ;;  %v1523_v25 = vadd.f32 %v1522_v10, %v1521_v9  ;;  %v1554_v7 = vld [vmem:[#allocation2 + $0x8] sm:$0xff] }
 0x160   : > { %1472 = vst.msk [vmem:[%s3650_s27 + $0x23] sm:$0xe0] %vm1471_vm14, %v1435_v2  ;;  %v1495_v36 = vadd.f32 %v1494_v18, %v1493_v13 }
 0x161   : > { %1374 = vst.msk [vmem:[#allocation2 + $0x28] sm:$0xff] %vm566_vm4, %v1365_v52  ;;  %v1524_v31 = vsel %vm566_vm4, %v1515_v51, 0.0 }
 0x162   : > { %v1525_v39 = vadd.f32 %v1524_v31, %v1523_v25 }
 0x163   : > { %v1346_v12 = vpop.f32.mrb[52].mxu0  ;;  %v1486_v14 = vld [vmem:[%s3650_s27 + $0x18] sm:$0xff]  ;;  %v1440_v26 = vpop.f32.mrb[52].mxu1 }
 0x164   : > { %v1366_v16 = vadd.f32 %v1346_v12, %v1242_v11  ;;  %v2892_v17 = vpop.f32.mrb[53].mxu0  ;;  %v1516_v19 = vmul.f32 %v1486_v14, %v1486_v14  ;;  %1474 = vst.msk [vmem:[%s3650_s27 + $0x2b] sm:$0x1f] %vm1473_vm15, %v1440_v26  ;;  %v2914_v20 = vpop.f32.mrb[53].mxu1  ;;  %v1496_v33 = vsel %vm566_vm4, %v1486_v14, 0.0 }
 0x165   : > { %1476 = vst.msk [vmem:[%s3650_s27 + $0x2a] sm:$0xc0] %vm1475_vm0, %v1440_v26  ;;  %v1349_v22 = vpop.f32.mrb[54].mxu0  ;;  %v1443_v29 = vpop.f32.mrb[54].mxu1  ;;  %v1497_v41 = vadd.f32 %v1496_v33, %v1495_v36  ;;  %v1555_v20 = vld [vmem:[#allocation2 + $0x10] sm:$0xff] }
 0x166   : > { %v1487_v27 = vld [vmem:[%s3650_s27 + $0x20] sm:$0xff]  ;;  %1375 = vst.msk [vmem:[#allocation2 + $0x30] sm:$0xff] %vm566_vm4, %v1366_v16  ;;  %v1367_v28 = vadd.f32 %v1349_v22, %v1243_v21  ;;  %v2893_v30 = vpop.f32.mrb[55].mxu0  ;;  %v2915_v35 = vpop.f32.mrb[55].mxu1  ;;  %v1526_v37 = vsel %vm566_vm4, %v1516_v19, 0.0 }
 0x167   : > { %1478 = vst.msk [vmem:[%s3650_s27 + $0x32] sm:$0x3f] %vm1477_vm1, %v1443_v29  ;;  %v1517_v38 = vmul.f32 %v1487_v27, %v1487_v27  ;;  %v1498_v42 = vsel %vm566_vm4, %v1487_v27, 0.0  ;;  %v1527_v49 = vadd.f32 %v1526_v37, %v1525_v39  ;;  %v1556_v30 = vld [vmem:[#allocation2 + $0x18] sm:$0xff] }
 0x168   : > { %1480 = vst.msk [vmem:[%s3650_s27 + $0x31] sm:$0x80] %vm1479_vm2, %v1443_v29  ;;  %v1499_v15 = vadd.f32 %v1498_v42, %v1497_v41 }
 0x169   : > { %1376 = vst.msk [vmem:[#allocation2 + $0x38] sm:$0xff] %vm566_vm4, %v1367_v28  ;;  %v1528_v58 = vsel %vm566_vm4, %v1517_v38, 0.0 }
 0x16a   : > { %v1529_v43 = vadd.f32 %v1528_v58, %v1527_v49  ;;  %v1557_v58 = vld [vmem:[#allocation2 + $0x20] sm:$0xff] }
 0x16b   : > { %v1354_v48 = vpop.f32.mrb[56].mxu0  ;;  %v1488_v53 = vld [vmem:[%s3650_s27 + $0x28] sm:$0xff]  ;;  %v1448_v56 = vpop.f32.mrb[56].mxu1 }
 0x16c   : > { %v1368_v54 = vadd.f32 %v1354_v48, %v1244_v45  ;;  %v2896_v57 = vpop.f32.mrb[57].mxu0  ;;  %v1500_v59 = vsel %vm566_vm4, %v1488_v53, 0.0  ;;  %v1518_v60 = vmul.f32 %v1488_v53, %v1488_v53  ;;  %1482 = vst.msk [vmem:[%s3650_s27 + $0x39] sm:$0x7f] %vm1481_vm3, %v1448_v56  ;;  %v2918_v0 = vpop.f32.mrb[57].mxu1 }
 0x16d   : > { %v1357_v63 = vpop.f32.mrb[58].mxu0  ;;  %v1451_v34 = vpop.f32.mrb[58].mxu1  ;;  %v1501_v50 = vadd.f32 %v1500_v59, %v1499_v15 }
 0x16e   : > { %v1489_v23 = vld [vmem:[%s3650_s27 + $0x30] sm:$0xff]  ;;  %1377 = vst.msk [vmem:[#allocation2 + $0x40] sm:$0xff] %vm566_vm4, %v1368_v54  ;;  %v2897_v24 = vpop.f32.mrb[59].mxu0  ;;  %v1530_v40 = vsel %vm566_vm4, %v1518_v60, 0.0  ;;  %v2919_v32 = vpop.f32.mrb[59].mxu1 }
 0x16f   : > { %v1519_v55 = vmul.f32 %v1489_v23, %v1489_v23  ;;  %v1502_v61 = vsel %vm566_vm4, %v1489_v23, 0.0  ;;  %v1531_v62 = vadd.f32 %v1530_v40, %v1529_v43  ;;  %v1558_v23 = vld [vmem:[#allocation2 + $0x28] sm:$0xff] }
 0x170   : > { %v1503_v52 = vadd.f32 %v1502_v61, %v1501_v50 }
 0x171   : > { %v1532_v1 = vsel %vm566_vm4, %v1519_v55, 0.0 }
 0x172   : > { %v1533_v9 = vadd.f32 %v1532_v1, %v1531_v62 }
 0x173   : > { %v1680_v44 = vpop.f32.mrb[60].mxu0  ;;  %v1490_v2 = vld [vmem:[%s3650_s27 + $0x38] sm:$0xff]  ;;  %v1873_v8 = vpop.f32.mrb[60].mxu1 }
 0x174   : > { %v1718_v3 = vadd.f32 %v1680_v44, %v1553_v46  ;;  %v2924_v4 = vpop.f32.mrb[61].mxu0  ;;  %v1504_v5 = vsel %vm566_vm4, %v1490_v2, 0.0  ;;  %v1520_v6 = vmul.f32 %v1490_v2, %v1490_v2  ;;  %v2946_v12 = vpop.f32.mrb[61].mxu1  ;;  %v1559_v46 = vld [vmem:[#allocation2 + $0x30] sm:$0xff] }
 0x175   : > { %v1683_v47 = vpop.f32.mrb[62].mxu0  ;;  %v1505_v10 = vadd.f32 %v1504_v5, %v1503_v52  ;;  %v1876_v14 = vpop.f32.mrb[62].mxu1  ;;  %v1560_v4 = vld [vmem:[#allocation2 + $0x38] sm:$0xff] }
 0x176   : > { %1727 = vst.msk [vmem:[#allocation2] sm:$0xff] %vm566_vm4, %v1718_v3  ;;  %v1719_v51 = vadd.f32 %v1683_v47, %v1554_v7  ;;  %v2925_v11 = vpop.f32.mrb[63].mxu0  ;;  %v1534_v13 = vsel %vm566_vm4, %v1520_v6, 0.0  ;;  %v2947_v17 = vpop.f32.mrb[63].mxu1 }
 0x177   : > { %v1506_v16 = vrot.slane %v1505_v10, 4  ;;  %v1535_v26 = vadd.f32 %v1534_v13, %v1533_v9  ;;  %v1561_v13 = vld [vmem:[#allocation2 + $0x40] sm:$0xff] }
 0x178   : > { %1728 = vst.msk [vmem:[#allocation2 + $0x8] sm:$0xff] %vm566_vm4, %v1719_v51 }
 0x179   : > { %v1507_v18 = vadd.f32 %v1506_v16, %v1505_v10  ;;  %v1536_v19 = vrot.slane %v1535_v26, 4 }
 0x17b   : > { %v1688_v21 = vpop.f32.mrb[64].mxu0  ;;  %v1508_v22 = vrot.slane %v1507_v18, 2  ;;  %v1537_v25 = vadd.f32 %v1536_v19, %v1535_v26  ;;  %v1881_v33 = vpop.f32.mrb[64].mxu1 }
 0x17c   : > { %v1720_v27 = vadd.f32 %v1688_v21, %v1555_v20  ;;  %v2928_v28 = vpop.f32.mrb[65].mxu0  ;;  %v2950_v41 = vpop.f32.mrb[65].mxu1 }
 0x17d   : > { %v1746_v29 = vld [vmem:[#allocation2] sm:$0xff]  ;;  %v1691_v31 = vpop.f32.mrb[66].mxu0  ;;  %v1509_v35 = vadd.f32 %v1508_v22, %v1507_v18  ;;  %v1538_v36 = vrot.slane %v1537_v25, 2  ;;  %v1884_v45 = vpop.f32.mrb[66].mxu1 }
 0x17e   : > { %v1911_v37 = vadd.f32 %v1873_v8, %v1746_v29  ;;  %1729 = vst.msk [vmem:[#allocation2 + $0x10] sm:$0xff] %vm566_vm4, %v1720_v27  ;;  %v1721_v38 = vadd.f32 %v1691_v31, %v1556_v30  ;;  %v2929_v39 = vpop.f32.mrb[67].mxu0  ;;  %v2951_v54 = vpop.f32.mrb[67].mxu1 }
 0x17f   : > { %v1747_v42 = vld [vmem:[#allocation2 + $0x8] sm:$0xff]  ;;  %v1510_v48 = vrot.slane %v1509_v35, 1  ;;  %v1539_v49 = vadd.f32 %v1538_v36, %v1537_v25 }
 0x180   : > { %1920 = vst.msk [vmem:[#allocation2] sm:$0xff] %vm566_vm4, %v1911_v37  ;;  %v1912_v53 = vadd.f32 %v1876_v14, %v1747_v42  ;;  %1730 = vst.msk [vmem:[#allocation2 + $0x18] sm:$0xff] %vm566_vm4, %v1721_v38 }
 0x181   : > { %v1511_v56 = vadd.f32 %v1510_v48, %v1509_v35  ;;  %v1540_v57 = vrot.slane %v1539_v49, 1 }
 0x182   : > { %1921 = vst.msk [vmem:[#allocation2 + $0x8] sm:$0xff] %vm566_vm4, %v1912_v53 }
 0x183   : > { %v1696_v59 = vpop.f32.mrb[68].mxu0  ;;  %1512 = vst.msk [vmem:[%s561_s14] sm:$0x1] %vm1457_vm7, %v1511_v56  ;;  %v1541_v60 = vadd.f32 %v1540_v57, %v1539_v49  ;;  %v1889_v34 = vpop.f32.mrb[68].mxu1 }
 0x184   : > { %v1722_v63 = vadd.f32 %v1696_v59, %v1557_v58  ;;  %v2932_v0 = vpop.f32.mrb[69].mxu0  ;;  %v2954_v43 = vpop.f32.mrb[69].mxu1 }
 0x185   : > { %v1748_v15 = vld [vmem:[#allocation2 + $0x10] sm:$0xff]  ;;  %v1699_v24 = vpop.f32.mrb[70].mxu0  ;;  %1542 = vst.msk [vmem:[%s564_s17] sm:$0x1] %vm1457_vm7, %v1541_v60  ;;  %v1892_v61 = vpop.f32.mrb[70].mxu1 }
 0x186   : > { %v1913_v40 = vadd.f32 %v1881_v33, %v1748_v15  ;;  %1731 = vst.msk [vmem:[#allocation2 + $0x20] sm:$0xff] %vm566_vm4, %v1722_v63  ;;  %v1723_v55 = vadd.f32 %v1699_v24, %v1558_v23  ;;  %v2933_v32 = vpop.f32.mrb[71].mxu0  ;;  %v2955_v1 = vpop.f32.mrb[71].mxu1 }
 0x187   : > { %v1749_v50 = vld [vmem:[#allocation2 + $0x18] sm:$0xff]  ;;  %v1939_v30 = vld [vmem:[#allocation2] sm:$0xff] }
 0x188   : > { %1922 = vst.msk [vmem:[#allocation2 + $0x10] sm:$0xff] %vm566_vm4, %v1913_v40  ;;  %v1914_v62 = vadd.f32 %v1884_v45, %v1749_v50  ;;  %1732 = vst.msk [vmem:[#allocation2 + $0x28] sm:$0xff] %vm566_vm4, %v1723_v55 }
 0x189   : > { %v1940_v37 = vld [vmem:[#allocation2 + $0x8] sm:$0xff] }
 0x18a   : > { %1923 = vst.msk [vmem:[#allocation2 + $0x18] sm:$0xff] %vm566_vm4, %v1914_v62 }
 0x18b   : > { %v1704_v44 = vpop.f32.mrb[72].mxu0  ;;  %v1897_v6 = vpop.f32.mrb[72].mxu1 }
 0x18c   : > { %v1724_v52 = vadd.f32 %v1704_v44, %v1559_v46  ;;  %v2936_v2 = vpop.f32.mrb[73].mxu0  ;;  %v2958_v9 = vpop.f32.mrb[73].mxu1 }
 0x18d   : > { %v1750_v3 = vld [vmem:[#allocation2 + $0x20] sm:$0xff]  ;;  %v1707_v5 = vpop.f32.mrb[74].mxu0  ;;  %v1900_v51 = vpop.f32.mrb[74].mxu1 }
 0x18e   : > { %v1915_v7 = vadd.f32 %v1889_v34, %v1750_v3  ;;  %1733 = vst.msk [vmem:[#allocation2 + $0x30] sm:$0xff] %vm566_vm4, %v1724_v52  ;;  %v1725_v47 = vadd.f32 %v1707_v5, %v1560_v4  ;;  %v2937_v8 = vpop.f32.mrb[75].mxu0  ;;  %v2959_v12 = vpop.f32.mrb[75].mxu1 }
 0x18f   : > { %v1751_v10 = vld [vmem:[#allocation2 + $0x28] sm:$0xff]  ;;  %v1941_v54 = vld [vmem:[#allocation2 + $0x10] sm:$0xff] }
 0x190   : > { %1924 = vst.msk [vmem:[#allocation2 + $0x20] sm:$0xff] %vm566_vm4, %v1915_v7  ;;  %v1916_v11 = vadd.f32 %v1892_v61, %v1751_v10  ;;  %1734 = vst.msk [vmem:[#allocation2 + $0x38] sm:$0xff] %vm566_vm4, %v1725_v47 }
 0x191   : > { %v1942_v60 = vld [vmem:[#allocation2 + $0x18] sm:$0xff] }
 0x192   : > { %1925 = vst.msk [vmem:[#allocation2 + $0x28] sm:$0xff] %vm566_vm4, %v1916_v11 }
 0x193   : > { %v1712_v14 = vpop.f32.mrb[76].mxu0  ;;  %v1905_v19 = vpop.f32.mrb[76].mxu1 }
 0x194   : > { %v1726_v16 = vadd.f32 %v1712_v14, %v1561_v13  ;;  %v2940_v26 = vpop.f32.mrb[77].mxu0  ;;  %v2962_v22 = vpop.f32.mrb[77].mxu1 }
 0x195   : > { %v1752_v17 = vld [vmem:[#allocation2 + $0x30] sm:$0xff]  ;;  %v1715_v18 = vpop.f32.mrb[78].mxu0  ;;  %v1908_v27 = vpop.f32.mrb[78].mxu1 }
 0x196   : > { %v1917_v20 = vadd.f32 %v1897_v6, %v1752_v17  ;;  %1735 = vst.msk [vmem:[#allocation2 + $0x40] sm:$0xff] %vm566_vm4, %v1726_v16  ;;  %v2941_v21 = vpop.f32.mrb[79].mxu0  ;;  %v2963_v29 = vpop.f32.mrb[79].mxu1 }
 0x197   : > { %v1753_v25 = vld [vmem:[#allocation2 + $0x38] sm:$0xff]  ;;  %v1943_v50 = vld [vmem:[#allocation2 + $0x20] sm:$0xff] }
 0x198   : > { %1926 = vst.msk [vmem:[#allocation2 + $0x30] sm:$0xff] %vm566_vm4, %v1917_v20  ;;  %v1918_v28 = vadd.f32 %v1900_v51, %v1753_v25 }
 0x199   : > { %v1944_v44 = vld [vmem:[#allocation2 + $0x28] sm:$0xff] }
 0x19a   : > { %1927 = vst.msk [vmem:[#allocation2 + $0x38] sm:$0xff] %vm566_vm4, %v1918_v28 }
 0x19b   : > { %v2066_v31 = vpop.f32.mrb[80].mxu0  ;;  %v2230_v39 = vpop.f32.mrb[80].mxu1 }
 0x19c   : > { %v2104_v33 = vadd.f32 %v2066_v31, %v1939_v30  ;;  %v2968_v35 = vpop.f32.mrb[81].mxu0  ;;  %v2990_v48 = vpop.f32.mrb[81].mxu1 }
 0x19d   : > { %v1754_v36 = vld [vmem:[#allocation2 + $0x40] sm:$0xff]  ;;  %v2069_v38 = vpop.f32.mrb[82].mxu0  ;;  %v2233_v49 = vpop.f32.mrb[82].mxu1 }
 0x19e   : > { %v1919_v41 = vadd.f32 %v1905_v19, %v1754_v36  ;;  %2113 = vst.msk [vmem:[#allocation2] sm:$0xff] %vm566_vm4, %v2104_v33  ;;  %v2105_v42 = vadd.f32 %v2069_v38, %v1940_v37  ;;  %v2969_v45 = vpop.f32.mrb[83].mxu0  ;;  %v2991_v53 = vpop.f32.mrb[83].mxu1 }
 0x19f   : > { %v1945_v11 = vld [vmem:[#allocation2 + $0x30] sm:$0xff] }
 0x1a0   : > { %1928 = vst.msk [vmem:[#allocation2 + $0x40] sm:$0xff] %vm566_vm4, %v1919_v41  ;;  %2114 = vst.msk [vmem:[#allocation2 + $0x8] sm:$0xff] %vm566_vm4, %v2105_v42 }
 0x1a1   : > { %v1946_v26 = vld [vmem:[#allocation2 + $0x38] sm:$0xff] }
 0x1a3   : > { %v2074_v56 = vpop.f32.mrb[84].mxu0  ;;  %v2238_v0 = vpop.f32.mrb[84].mxu1 }
 0x1a4   : > { %v2106_v57 = vadd.f32 %v2074_v56, %v1941_v54  ;;  %v2972_v58 = vpop.f32.mrb[85].mxu0  ;;  %v2994_v34 = vpop.f32.mrb[85].mxu1 }
 0x1a5   : > { %v2132_v59 = vld [vmem:[#allocation2] sm:$0xff]  ;;  %v2077_v63 = vpop.f32.mrb[86].mxu0  ;;  %v2241_v55 = vpop.f32.mrb[86].mxu1 }
 0x1a6   : > { %v2268_v15 = vadd.f32 %v2230_v39, %v2132_v59  ;;  %2115 = vst.msk [vmem:[#allocation2 + $0x10] sm:$0xff] %vm566_vm4, %v2106_v57  ;;  %v2107_v23 = vadd.f32 %v2077_v63, %v1942_v60  ;;  %v2973_v24 = vpop.f32.mrb[87].mxu0  ;;  %v2995_v43 = vpop.f32.mrb[87].mxu1 }
 0x1a7   : > { %v2133_v40 = vld [vmem:[#allocation2 + $0x8] sm:$0xff]  ;;  %v1947_v33 = vld [vmem:[#allocation2 + $0x40] sm:$0xff] }
 0x1a8   : > { %2277 = vst.msk [vmem:[#allocation2] sm:$0xff] %vm566_vm4, %v2268_v15  ;;  %v2269_v32 = vadd.f32 %v2233_v49, %v2133_v40  ;;  %2116 = vst.msk [vmem:[#allocation2 + $0x18] sm:$0xff] %vm566_vm4, %v2107_v23 }
 0x1aa   : > { %2278 = vst.msk [vmem:[#allocation2 + $0x8] sm:$0xff] %vm566_vm4, %v2269_v32 }
 0x1ab   : > { %v2082_v61 = vpop.f32.mrb[88].mxu0  ;;  %v2246_v2 = vpop.f32.mrb[88].mxu1 }
 0x1ac   : > { %v2108_v62 = vadd.f32 %v2082_v61, %v1943_v50  ;;  %v2976_v1 = vpop.f32.mrb[89].mxu0  ;;  %v2998_v6 = vpop.f32.mrb[89].mxu1 }
 0x1ad   : > { %v2134_v46 = vld [vmem:[#allocation2 + $0x10] sm:$0xff]  ;;  %v2085_v52 = vpop.f32.mrb[90].mxu0  ;;  %v2249_v8 = vpop.f32.mrb[90].mxu1 }
 0x1ae   : > { %v2270_v3 = vadd.f32 %v2238_v0, %v2134_v46  ;;  %2117 = vst.msk [vmem:[#allocation2 + $0x20] sm:$0xff] %vm566_vm4, %v2108_v62  ;;  %v2109_v4 = vadd.f32 %v2085_v52, %v1944_v44  ;;  %v2977_v5 = vpop.f32.mrb[91].mxu0  ;;  %v2999_v10 = vpop.f32.mrb[91].mxu1 }
 0x1af   : > { %v2286_v7 = vld [vmem:[#allocation2] sm:$0xff]  ;;  %v2135_v47 = vld [vmem:[#allocation2 + $0x18] sm:$0xff] }
 0x1b0   : > { %2295 = vst.msk [vmem:[%s3755_s20] sm:$0xff] %vm566_vm4, %v2286_v7  ;;  %2279 = vst.msk [vmem:[#allocation2 + $0x10] sm:$0xff] %vm566_vm4, %v2270_v3  ;;  %v2271_v9 = vadd.f32 %v2241_v55, %v2135_v47 }
 0x1b1   : > { %2118 = vst.msk [vmem:[#allocation2 + $0x28] sm:$0xff] %vm566_vm4, %v2109_v4  ;;  %v2287_v51 = vld [vmem:[#allocation2 + $0x8] sm:$0xff] }
 0x1b2   : > { %2296 = vst.msk [vmem:[%s3755_s20 + $0x7] sm:$0xfe] %vm1455_vm6, %v2287_v51 }
 0x1b3   : > { %2280 = vst.msk [vmem:[#allocation2 + $0x18] sm:$0xff] %vm566_vm4, %v2271_v9  ;;  %v2090_v12 = vpop.f32.mrb[92].mxu0  ;;  %v2254_v18 = vpop.f32.mrb[92].mxu1 }
 0x1b4   : > { %v2110_v13 = vadd.f32 %v2090_v12, %v1945_v11  ;;  %v2980_v14 = vpop.f32.mrb[93].mxu0  ;;  %v3002_v22 = vpop.f32.mrb[93].mxu1 }
 0x1b5   : > { %v2136_v16 = vld [vmem:[#allocation2 + $0x20] sm:$0xff]  ;;  %v2093_v17 = vpop.f32.mrb[94].mxu0  ;;  %v2257_v28 = vpop.f32.mrb[94].mxu1 }
 0x1b6   : > { %v2272_v19 = vadd.f32 %v2246_v2, %v2136_v16  ;;  %2119 = vst.msk [vmem:[#allocation2 + $0x30] sm:$0xff] %vm566_vm4, %v2110_v13  ;;  %v2111_v20 = vadd.f32 %v2093_v17, %v1946_v26  ;;  %v2981_v21 = vpop.f32.mrb[95].mxu0  ;;  %v3003_v30 = vpop.f32.mrb[95].mxu1 }
 0x1b7   : > { %v2288_v25 = vld [vmem:[#allocation2 + $0x10] sm:$0xff]  ;;  %v2310_v59 = vld [vmem:[%s3755_s20] sm:$0xff] }
 0x1b8   : > { %v2137_v27 = vld [vmem:[#allocation2 + $0x28] sm:$0xff]  ;;  %2297 = vst.msk [vmem:[%s3755_s20 + $0xf] sm:$0x1] %vm1457_vm7, %v2288_v25  ;;  %v2340_v15 = vmul.f32 %v2310_v59, %v2310_v59  ;;  %v2318_v34 = vsel %vm566_vm4, %v2310_v59, 0.0 }
 0x1b9   : > { %2298 = vst.msk [vmem:[%s3755_s20 + $0xe] sm:$0xfc] %vm1459_vm8, %v2288_v25  ;;  %v2273_v29 = vadd.f32 %v2249_v8, %v2137_v27 }
 0x1ba   : > { %2281 = vst.msk [vmem:[#allocation2 + $0x20] sm:$0xff] %vm566_vm4, %v2272_v19  ;;  %2120 = vst.msk [vmem:[#allocation2 + $0x38] sm:$0xff] %vm566_vm4, %v2111_v20  ;;  %v2289_v31 = vld [vmem:[#allocation2 + $0x18] sm:$0xff]  ;;  %v2348_v62 = vsel %vm566_vm4, %v2340_v15, 0.0 }
 0x1bb   : > { %2299 = vst.msk [vmem:[%s3755_s20 + $0x16] sm:$0x3] %vm1461_vm9, %v2289_v31  ;;  %v2098_v35 = vpop.f32.mrb[96].mxu0  ;;  %v2262_v41 = vpop.f32.mrb[96].mxu1 }
 0x1bc   : > { %2300 = vst.msk [vmem:[%s3755_s20 + $0x15] sm:$0xf8] %vm1463_vm10, %v2289_v31  ;;  %v2112_v36 = vadd.f32 %v2098_v35, %v1947_v33  ;;  %v2984_v37 = vpop.f32.mrb[97].mxu0  ;;  %v3006_v48 = vpop.f32.mrb[97].mxu1 }
 0x1bd   : > { %2282 = vst.msk [vmem:[#allocation2 + $0x28] sm:$0xff] %vm566_vm4, %v2273_v29  ;;  %v2138_v38 = vld [vmem:[#allocation2 + $0x30] sm:$0xff]  ;;  %v2101_v39 = vpop.f32.mrb[98].mxu0  ;;  %v2265_v56 = vpop.f32.mrb[98].mxu1 }
 0x1be   : > { %v2274_v42 = vadd.f32 %v2254_v18, %v2138_v38  ;;  %2121 = vst.msk [vmem:[#allocation2 + $0x40] sm:$0xff] %vm566_vm4, %v2112_v36  ;;  %v2985_v45 = vpop.f32.mrb[99].mxu0  ;;  %v3007_v58 = vpop.f32.mrb[99].mxu1 }
 0x1bf   : > { %v2311_v49 = vld [vmem:[%s3755_s20 + $0x8] sm:$0xff] }
 0x1c0   : > { %2283 = vst.msk [vmem:[#allocation2 + $0x30] sm:$0xff] %vm566_vm4, %v2274_v42  ;;  %v2341_v63 = vmul.f32 %v2311_v49, %v2311_v49  ;;  %v2319_v23 = vsel %vm566_vm4, %v2311_v49, 0.0 }
 0x1c1   : > { %v2290_v53 = vld [vmem:[#allocation2 + $0x20] sm:$0xff]  ;;  %v2139_v54 = vld [vmem:[#allocation2 + $0x38] sm:$0xff]  ;;  %v2320_v43 = vadd.f32 %v2319_v23, %v2318_v34 }
 0x1c2   : > { %2301 = vst.msk [vmem:[%s3755_s20 + $0x1d] sm:$0x7] %vm1465_vm11, %v2290_v53  ;;  %v2275_v57 = vadd.f32 %v2257_v28, %v2139_v54  ;;  %v2312_v0 = vld [vmem:[%s3755_s20 + $0x10] sm:$0xff]  ;;  %v2349_v40 = vsel %vm566_vm4, %v2341_v63, 0.0 }
 0x1c3   : > { %2302 = vst.msk [vmem:[%s3755_s20 + $0x1c] sm:$0xf0] %vm1467_vm12, %v2290_v53  ;;  %v2342_v55 = vmul.f32 %v2312_v0, %v2312_v0  ;;  %v2321_v1 = vsel %vm566_vm4, %v2312_v0, 0.0  ;;  %v2350_v44 = vadd.f32 %v2349_v40, %v2348_v62 }
 0x1c4   : > { %v2291_v60 = vld [vmem:[#allocation2 + $0x28] sm:$0xff]  ;;  %2284 = vst.msk [vmem:[#allocation2 + $0x38] sm:$0xff] %vm566_vm4, %v2275_v57  ;;  %v2322_v5 = vadd.f32 %v2321_v1, %v2320_v43 }
 0x1c5   : > { %2303 = vst.msk [vmem:[%s3755_s20 + $0x24] sm:$0xf] %vm1469_vm13, %v2291_v60  ;;  %v2140_v24 = vld [vmem:[#allocation2 + $0x40] sm:$0xff]  ;;  %v2351_v3 = vsel %vm566_vm4, %v2342_v55, 0.0 }
 0x1c6   : > { %2304 = vst.msk [vmem:[%s3755_s20 + $0x23] sm:$0xe0] %vm1471_vm14, %v2291_v60  ;;  %v2276_v32 = vadd.f32 %v2262_v41, %v2140_v24  ;;  %v2352_v47 = vadd.f32 %v2351_v3, %v2350_v44 }
 0x1c7   : > { %v2292_v61 = vld [vmem:[#allocation2 + $0x30] sm:$0xff] }
 0x1c8   : > { %2305 = vst.msk [vmem:[%s3755_s20 + $0x2b] sm:$0x1f] %vm1473_vm15, %v2292_v61 }
 0x1c9   : > { %v2313_v50 = vld [vmem:[%s3755_s20 + $0x18] sm:$0xff]  ;;  %2306 = vst.msk [vmem:[%s3755_s20 + $0x2a] sm:$0xc0] %vm1475_vm0, %v2292_v61 }
 0x1ca   : > { %v2343_v46 = vmul.f32 %v2313_v50, %v2313_v50  ;;  %2285 = vst.msk [vmem:[#allocation2 + $0x40] sm:$0xff] %vm566_vm4, %v2276_v32  ;;  %v2323_v4 = vsel %vm566_vm4, %v2313_v50, 0.0 }
 0x1cb   : > { %v2293_v2 = vld [vmem:[#allocation2 + $0x38] sm:$0xff]  ;;  %v2324_v8 = vadd.f32 %v2323_v4, %v2322_v5 }
 0x1cc   : > { %v2314_v52 = vld [vmem:[%s3755_s20 + $0x20] sm:$0xff]  ;;  %2307 = vst.msk [vmem:[%s3755_s20 + $0x32] sm:$0x3f] %vm1477_vm1, %v2293_v2  ;;  %v2353_v6 = vsel %vm566_vm4, %v2343_v46, 0.0 }
 0x1cd   : > { %2308 = vst.msk [vmem:[%s3755_s20 + $0x31] sm:$0x80] %vm1479_vm2, %v2293_v2  ;;  %v2344_v7 = vmul.f32 %v2314_v52, %v2314_v52  ;;  %v2325_v9 = vsel %vm566_vm4, %v2314_v52, 0.0  ;;  %v2354_v10 = vadd.f32 %v2353_v6, %v2352_v47 }
 0x1ce   : > { %v2326_v16 = vadd.f32 %v2325_v9, %v2324_v8 }
 0x1cf   : > { %v2315_v51 = vld [vmem:[%s3755_s20 + $0x28] sm:$0xff]  ;;  %v2355_v12 = vsel %vm566_vm4, %v2344_v7, 0.0 }
 0x1d0   : > { %v2327_v13 = vsel %vm566_vm4, %v2315_v51, 0.0  ;;  %v2345_v14 = vmul.f32 %v2315_v51, %v2315_v51  ;;  %v2356_v19 = vadd.f32 %v2355_v12, %v2354_v10 }
 0x1d1   : > { %v2294_v11 = vld [vmem:[#allocation2 + $0x40] sm:$0xff]  ;;  %v2328_v20 = vadd.f32 %v2327_v13, %v2326_v16 }
 0x1d2   : > { %2309 = vst.msk [vmem:[%s3755_s20 + $0x39] sm:$0x7f] %vm1481_vm3, %v2294_v11  ;;  %v2357_v17 = vsel %vm566_vm4, %v2345_v14, 0.0 }
 0x1d3   : > { %v2316_v26 = vld [vmem:[%s3755_s20 + $0x30] sm:$0xff]  ;;  %v2358_v22 = vadd.f32 %v2357_v17, %v2356_v19 }
 0x1d4   : > { %v2346_v18 = vmul.f32 %v2316_v26, %v2316_v26  ;;  %v2329_v21 = vsel %vm566_vm4, %v2316_v26, 0.0 }
 0x1d5   : > { %v2330_v27 = vadd.f32 %v2329_v21, %v2328_v20 }
 0x1d6   : > { %v2359_v25 = vsel %vm566_vm4, %v2346_v18, 0.0 }
 0x1d7   : > { %v2360_v31 = vadd.f32 %v2359_v25, %v2358_v22 }
 0x1d9   : > { %v2317_v28 = vld [vmem:[%s3755_s20 + $0x38] sm:$0xff] }
 0x1da   : > { %v2331_v29 = vsel %vm566_vm4, %v2317_v28, 0.0  ;;  %v2347_v30 = vmul.f32 %v2317_v28, %v2317_v28 }
 0x1db   : > { %v2332_v33 = vadd.f32 %v2331_v29, %v2330_v27 }
 0x1dc   : > { %v2361_v35 = vsel %vm566_vm4, %v2347_v30, 0.0 }
 0x1dd   : > { %v2333_v36 = vrot.slane %v2332_v33, 4  ;;  %v2362_v37 = vadd.f32 %v2361_v35, %v2360_v31 }
 0x1df   : > { %v2334_v38 = vadd.f32 %v2333_v36, %v2332_v33  ;;  %v2363_v39 = vrot.slane %v2362_v37, 4 }
 0x1e1   : > { %v2335_v41 = vrot.slane %v2334_v38, 2  ;;  %v2364_v42 = vadd.f32 %v2363_v39, %v2362_v37 }
 0x1e3   : > { %v2336_v45 = vadd.f32 %v2335_v41, %v2334_v38  ;;  %v2365_v48 = vrot.slane %v2364_v42, 2 }
 0x1e5   : > { %v2337_v49 = vrot.slane %v2336_v45, 1  ;;  %v2366_v53 = vadd.f32 %v2365_v48, %v2364_v42 }
 0x1e7   : > { %v2338_v54 = vadd.f32 %v2337_v49, %v2336_v45  ;;  %v2367_v56 = vrot.slane %v2366_v53, 1 }
 0x1e9   : > { %2339 = vst.msk [vmem:[%s550_s23] sm:$0x1] %vm1457_vm7, %v2338_v54  ;;  %v2368_v57 = vadd.f32 %v2367_v56, %v2366_v53 }
 0x1eb   : > { %2369 = vst.msk [vmem:[%s553_s26] sm:$0x1] %vm1457_vm7, %v2368_v57 }
 0x1ec PF: > { %p16_p9 = scmp.ge.s32.totalorder %s3170_s9, 4   ;;  %s3852_s27 = smov %s3100_s28 }
 0x1ed   : > { %s3853_s28 = smov %s3179_s12  ;;  %s3854_s29 = smov %s3170_s9 }
 0x1ee   :  { %18 = sbr.rel (!%p16_p9) target bundleno = 2 (0x2), region = 179 }

// kernel: basic_block_forward.4
= control target key start
LH: loop header
LB: loop body
LE: loop exit
PB: predicated region body
PF: predicated region fallthrough
CT: control target
= control target key end

     0   :  { %s2910_s24 = smov 0   ;;  %s3430_s0 = inlined_call_operand.vmem [shape: f32[1,2,102,8], index: 0, kind: input, shape index: {}]   ;;  %s3431_s1 = inlined_call_operand.vmem [shape: bf16[9,8,8], index: 1, kind: input, shape index: {}]   ;;  %s3432_s2 = inlined_call_operand.vmem [shape: f32[1,8], index: 2, kind: input, shape index: {}]   ;;  %s3433_s3 = inlined_call_operand.vmem [shape: f32[1,8], index: 3, kind: input, shape index: {}]   ;;  %s3434_s4 = inlined_call_operand.vmem [shape: f32[102,1], index: 4, kind: input, shape index: {}]   ;;  %s3435_s5 = inlined_call_operand.vmem [shape: f32[2,64,8], index: 5, kind: output, shape index: {0}]   ;;  %s3436_s6 = inlined_call_operand.vmem [shape: f32[2,1,8], index: 6, kind: output, shape index: {1}]   ;;  %s3437_s7 = inlined_call_operand.vmem [shape: f32[2,1,8], index: 7, kind: output, shape index: {2}]  }
   0x1 LB: > { %s2393_s25 = sadd.s32 4294967295, %s2865_s24   ;;  %p2397_p0 = scmp.ge.s32.totalorder %s2865_s24, 1  ;;  %s2865_s24 = sphi %s2910_s24, %s18_s24  }
   0x2   : > { %p242_p1 = scmp.lt.s32.totalorder %s2865_s24, 3 }
   0x4   : > { %p243_p2 = pnand %p2397_p0, %p242_p1 }
   0x5   : > { %v369_v0 = vld [vmem:[%s3434_s4 + $0x30] sm:$0xff] (!%p243_p2)  ;;  %v363_v1 = vld [vmem:[%s3434_s4] sm:$0xff] (!%p243_p2)  ;;  %v2867_v2 = vmov (!%p243_p2), 0   ;;  %v370_v3 = vld [vmem:[%s3434_s4 + $0x38] sm:$0xff] (!%p243_p2)  ;;  %vm594_vm0 = vcmask (!%p243_p2), 1043456   ;;  %v2868_v12 = vmov (!%p243_p2), 0.0  }
   0x6   : > { %246 = sbr.rel (%p243_p2) target bundleno = 580 (0x244), region = 40  ;;  %2805 = vset.pattern.permute.xlu1 (!%p243_p2), %v2867_v2  ;;  %2804 = vset.pattern.permute.xlu0 (!%p243_p2), %v2867_v2  ;;  %v364_v4 = vld [vmem:[%s3434_s4 + $0x8] sm:$0xff] (!%p243_p2)  ;;  %v371_v5 = vld [vmem:[%s3434_s4 + $0x40] sm:$0xff] (!%p243_p2)  ;;  %v365_v7 = vld [vmem:[%s3434_s4 + $0x10] sm:$0xff] (!%p243_p2)  ;;  %vm522_vm1 = vcmask (!%p243_p2), 64512   ;;  %vm2869_vm2 = vmmov (!%p243_p2), 0  }
   0x7   : > { %408 = vperm.xlu0 (!%p243_p2), %2804, %v369_v0   ;;  %378 = vperm.xlu1 (!%p243_p2), %2805, %v363_v1   ;;  %v372_v6 = vld [vmem:[%s3434_s4 + $0x48] sm:$0xff] (!%p243_p2)  ;;  %v366_v8 = vld [vmem:[%s3434_s4 + $0x18] sm:$0xff] (!%p243_p2)  ;;  %v553_v9 = vld [vmem:[%s3431_s1] sm:$0xf] (!%p243_p2)  ;;  %523 = vst.msk [vmem:[#allocation2] sm:$0xff] (!%p243_p2), %vm522_vm1, %v2868_v12  ;;  %p280_p3 = scmp.lt.s32.totalorder (!%p243_p2), %s2393_s25, 1 }
   0x8   : > { %v367_v10 = vld [vmem:[%s3434_s4 + $0x20] sm:$0xff] (!%p243_p2)  ;;  %v368_v11 = vld [vmem:[%s3434_s4 + $0x28] sm:$0xff] (!%p243_p2)  ;;  %2790 = vmatprep.subr.bf16.mxu1 (!%p243_p2), %v2868_v12  ;;  %2592 = vmatprep.subr.bf16.mxu0 (!%p243_p2), %v2868_v12  ;;  %v596_v13 = vsel (!%p243_p2), %vm594_vm0, %v553_v9, 0  ;;  %v373_v14 = vld [vmem:[%s3434_s4 + $0x50] sm:$0xff] (!%p243_p2)  ;;  %524 = vst.msk [vmem:[#allocation2 + $0x8] sm:$0xff] (!%p243_p2), %vm522_vm1, %v2868_v12  ;;  %vm507_vm3 = vcmask (!%p243_p2), 60416  }
   0x9   : > { %2791 = vmatpush3.bf16.msra.mxu1 (!%p243_p2), %v596_v13  ;;  %2593 = vmatpush3.bf16.msra.mxu0 (!%p243_p2), %v596_v13  ;;  %v374_v15 = vld [vmem:[%s3434_s4 + $0x58] sm:$0xff] (!%p243_p2)  ;;  %525 = vst.msk [vmem:[#allocation2 + $0x10] sm:$0xff] (!%p243_p2), %vm522_vm1, %v2868_v12  ;;  %526 = vst.msk [vmem:[#allocation2 + $0x18] sm:$0xff] (!%p243_p2), %vm522_vm1, %v2868_v12  ;;  %v375_v16 = vld [vmem:[%s3434_s4 + $0x60] sm:$0x3f] (!%p243_p2)  ;;  %vm520_vm4 = vcmask (!%p243_p2), 59392  }
   0xa   : > { %2614 = vmatprep.subr.bf16.mxu1 (!%p243_p2), %v2868_v12  ;;  %2636 = vmatprep.subr.bf16.mxu0 (!%p243_p2), %v2868_v12  ;;  %527 = vst.msk [vmem:[#allocation2 + $0x20] sm:$0xff] (!%p243_p2), %vm522_vm1, %v2868_v12  ;;  %528 = vst.msk [vmem:[#allocation2 + $0x28] sm:$0xff] (!%p243_p2), %vm522_vm1, %v2868_v12  ;;  %v3005_v18 = vld [vmem:[%s3432_s2] ss:$0 sm:$0xff] (!%p243_p2)  ;;  %vm742_vm5 = vsmask.f32 (!%p243_p2), 7424 }
   0xb   : > { %413 = vperm.xlu0 (!%p243_p2), %2804, %v370_v3   ;;  %383 = vperm.xlu1 (!%p243_p2), %2805, %v364_v4   ;;  %529 = vst.msk [vmem:[#allocation2 + $0x30] sm:$0xff] (!%p243_p2), %vm522_vm1, %v2868_v12  ;;  %530 = vst.msk [vmem:[#allocation2 + $0x38] sm:$0xff] (!%p243_p2), %vm522_vm1, %v2868_v12  ;;  %v3014_v23 = vld [vmem:[%s3433_s3] ss:$0 sm:$0xff] (!%p243_p2)  ;;  %vm949_vm6 = vcmask (!%p243_p2), 1046528   ;;  %vm1512_vm8 = vcmask (!%p243_p2), 1045504  }
   0xc   : > { %2594 = vmatprep.mubr.msk.bf16.mxu0 (!%p243_p2), %vm2869_vm2, %v2868_v12  ;;  %2606 = vmatprep.mubr.msk.bf16.mxu1 (!%p243_p2), %vm2869_vm2, %v2868_v12  ;;  %531 = vst.msk [vmem:[#allocation2 + $0x40] sm:$0xff] (!%p243_p2), %vm522_vm1, %v2868_v12  ;;  %532 = vst.msk [vmem:[#allocation2 + $0x48] sm:$0xff] (!%p243_p2), %vm522_vm1, %v2868_v12  ;;  %vm1296_vm7 = vsmask.f32 (!%p243_p2), 6400  ;;  %vm1859_vm9 = vsmask.f32 (!%p243_p2), 5376 }
   0xd   : > { %s3439_s25 = smov (!%p280_p3, %s2393_s25), 1  ;;  %vm2075_vm10 = vcmask 1044480   ;;  %vm2209_vm11 = vcmask 64514   ;;  %vm2211_vm12 = vcmask 58368   ;;  %vm2213_vm13 = vcmask 64516  }
   0xe   : > { %s2792_s10 = smul.u32 104, %s3439_s25  ;;  %vm2216_vm14 = vcmask 64518   ;;  %vm2218_vm15 = vcmask 62464   ;;  %s292_s19 = scalar_lea.vmem %s3436_s6, %s3439_s25 }
   0xf   : > { %418 = vperm.xlu0 %2804, %v371_v5   ;;  %423 = vperm.xlu1 %2805, %v372_v6   ;;  %s295_s22 = scalar_lea.vmem %s3437_s7, %s3439_s25 }
  0x10   : > { %s2999_s13 = scalar_lea.vmem %s3430_s0, %s2792_s10 }
  0x11   : > { %v303_v17 = vld [vmem:[%s2999_s13 + $0x30] sm:$0xff]  ;;  %v297_v19 = vld [vmem:[%s2999_s13] sm:$0xff]  ;;  %v304_v22 = vld [vmem:[%s2999_s13 + $0x38] sm:$0xff] }
  0x12   : > { %v323_v20 = vmul.f32 %v3005_v18, %v303_v17  ;;  %v317_v21 = vmul.f32 %v3005_v18, %v297_v19  ;;  %v298_v24 = vld [vmem:[%s2999_s13 + $0x8] sm:$0xff]  ;;  %v324_v25 = vmul.f32 %v3005_v18, %v304_v22  ;;  %v305_v29 = vld [vmem:[%s2999_s13 + $0x40] sm:$0xff]  ;;  %v299_v37 = vld [vmem:[%s2999_s13 + $0x10] sm:$0xff] }
  0x13   : > { %388 = vperm.xlu0 %2804, %v365_v7   ;;  %393 = vperm.xlu1 %2805, %v366_v8   ;;  %v318_v28 = vmul.f32 %v3005_v18, %v298_v24  ;;  %v306_v30 = vld [vmem:[%s2999_s13 + $0x48] sm:$0xff]  ;;  %v325_v32 = vmul.f32 %v3005_v18, %v305_v29  ;;  %v300_v38 = vld [vmem:[%s2999_s13 + $0x18] sm:$0xff]  ;;  %v301_v39 = vld [vmem:[%s2999_s13 + $0x20] sm:$0xff]  ;;  %v319_v46 = vmul.f32 %v3005_v18, %v299_v37 }
  0x14   : > { %v343_v26 = vadd.f32 %v3014_v23, %v323_v20  ;;  %v337_v27 = vadd.f32 %v3014_v23, %v317_v21  ;;  %v344_v31 = vadd.f32 %v3014_v23, %v324_v25  ;;  %v326_v33 = vmul.f32 %v3005_v18, %v306_v30  ;;  %v302_v40 = vld [vmem:[%s2999_s13 + $0x28] sm:$0xff]  ;;  %v307_v47 = vld [vmem:[%s2999_s13 + $0x50] sm:$0xff]  ;;  %v308_v48 = vld [vmem:[%s2999_s13 + $0x58] sm:$0xff] }
  0x15   : > { %v338_v36 = vadd.f32 %v3014_v23, %v318_v28  ;;  %v345_v44 = vadd.f32 %v3014_v23, %v325_v32  ;;  %v320_v52 = vmul.f32 %v3005_v18, %v300_v38  ;;  %v321_v53 = vmul.f32 %v3005_v18, %v301_v39  ;;  %v309_v19 = vld [vmem:[%s2999_s13 + $0x60] sm:$0x3f]  ;;  %v2438_v25 = vld [vmem:[%s3431_s1 + $0x8] sm:$0xf]  ;;  %s2524_s13 = sshll.u32 %s3439_s25, 6 }
  0x16   : > { %v356_v34 = vmax.f32 %v343_v26, 0.0  ;;  %v350_v35 = vmax.f32 %v337_v27, 0.0  ;;  %v357_v43 = vmax.f32 %v344_v31, 0.0  ;;  %v346_v45 = vadd.f32 %v3014_v23, %v326_v33  ;;  %v2426_v28 = vld [vmem:[%s3431_s1 + $0x4] sm:$0xf]  ;;  %s3351_s16 = scalar_lea.vmem %s3435_s5, %s2524_s13 }
  0x17   : > { %398 = vperm.xlu0 %2804, %v367_v10   ;;  %403 = vperm.xlu1 %2805, %v368_v11   ;;  %v351_v51 = vmax.f32 %v338_v36, 0.0  ;;  %v322_v54 = vmul.f32 %v3005_v18, %v302_v40  ;;  %v327_v57 = vmul.f32 %v3005_v18, %v307_v47  ;;  %v328_v58 = vmul.f32 %v3005_v18, %v308_v48 }
  0x18   : > { %v358_v61 = vmax.f32 %v345_v44, 0.0  ;;  %v359_v62 = vmax.f32 %v346_v45, 0.0  ;;  %v339_v1 = vadd.f32 %v3014_v23, %v319_v46  ;;  %v340_v2 = vadd.f32 %v3014_v23, %v320_v52 }
  0x19   : > { %v341_v3 = vadd.f32 %v3014_v23, %v321_v53  ;;  %v342_v4 = vadd.f32 %v3014_v23, %v322_v54  ;;  %v347_v7 = vadd.f32 %v3014_v23, %v327_v57  ;;  %v348_v8 = vadd.f32 %v3014_v23, %v328_v58 }
  0x1a   : > { %v329_v31 = vmul.f32 %v3005_v18, %v309_v19  ;;  %v977_v37 = vsel %vm594_vm0, %v2438_v25, 0 }
  0x1b   : > { %428 = vperm.xlu0 %2804, %v373_v14   ;;  %433 = vperm.xlu1 %2805, %v374_v15   ;;  %v352_v14 = vmax.f32 %v339_v1, 0.0  ;;  %v353_v15 = vmax.f32 %v340_v2, 0.0  ;;  %v355_v17 = vmax.f32 %v342_v4, 0.0  ;;  %v360_v22 = vmax.f32 %v347_v7, 0.0 }
  0x1c   : > { %v361_v24 = vmax.f32 %v348_v8, 0.0  ;;  %v2462_v8 = vld [vmem:[%s3431_s1 + $0x10] sm:$0xf] }
  0x1f   : > { %438 = vperm.xlu0 %2804, %v375_v16   ;;  %v354_v16 = vmax.f32 %v341_v3, 0.0 }
  0x86   : > { %v409_v41 = vpop.permute.xlu0 %408  ;;  %v379_v42 = vpop.permute.xlu1 %378 }
  0x87   : > { %v447_v49 = vmul.f32 %v409_v41, %v356_v34  ;;  %v441_v50 = vmul.f32 %v379_v42, %v350_v35  ;;  %v803_v41 = vsel %vm594_vm0, %v2426_v28, 0  ;;  %v349_v42 = vadd.f32 %v3014_v23, %v329_v31 }
  0x89   : > { %v2531_v55 = vpack.c.bf16 %v447_v49, %v447_v49  ;;  %v2525_v56 = vpack.c.bf16 %v441_v50, %v441_v50  ;;  %v362_v48 = vmax.f32 %v349_v42, 0.0 }
  0x8a   : > { %v414_v59 = vpop.permute.xlu0 %413  ;;  %v384_v60 = vpop.permute.xlu1 %383 }
  0x8b   : > { %514 = vst.msk [vmem:[#allocation3 + $0x18] sm:$0xf] %vm507_vm3, %v2531_v55  ;;  %508 = vst.msk [vmem:[#allocation3] sm:$0xf] %vm507_vm3, %v2525_v56  ;;  %v448_v63 = vmul.f32 %v414_v59, %v357_v43  ;;  %v442_v0 = vmul.f32 %v384_v60, %v351_v51  ;;  %v2450_v60 = vld [vmem:[%s3431_s1 + $0xc] sm:$0xf] }
  0x8c   : > { %v1150_v2 = vsel %vm594_vm0, %v2450_v60, 0 }
  0x8d   : > { %v2532_v5 = vpack.c.bf16 %v448_v63, %v448_v63  ;;  %v2526_v6 = vpack.c.bf16 %v442_v0, %v442_v0 }
  0x8e   : > { %v419_v9 = vpop.permute.xlu0 %418  ;;  %v424_v10 = vpop.permute.xlu1 %423 }
  0x8f   : > { %515 = vst.msk [vmem:[#allocation3 + $0x1c] sm:$0xf] %vm507_vm3, %v2532_v5  ;;  %509 = vst.msk [vmem:[#allocation3 + $0x4] sm:$0xf] %vm507_vm3, %v2526_v6  ;;  %v449_v11 = vmul.f32 %v419_v9, %v358_v61  ;;  %v450_v13 = vmul.f32 %v424_v10, %v359_v62 }
  0x91   : > { %v2533_v20 = vpack.c.bf16 %v449_v11, %v449_v11  ;;  %v2534_v21 = vpack.c.bf16 %v450_v13, %v450_v13 }
  0x92   : > { %v389_v26 = vpop.permute.xlu0 %388  ;;  %v394_v27 = vpop.permute.xlu1 %393 }
  0x93   : > { %516 = vst.msk [vmem:[#allocation3 + $0x20] sm:$0xf] %vm507_vm3, %v2533_v20  ;;  %517 = vst.msk [vmem:[#allocation3 + $0x24] sm:$0xf] %vm507_vm3, %v2534_v21  ;;  %v443_v29 = vmul.f32 %v389_v26, %v352_v14  ;;  %v444_v30 = vmul.f32 %v394_v27, %v353_v15  ;;  %v1366_v14 = vsel %vm594_vm0, %v2462_v8, 0 }
  0x95   : > { %v2527_v32 = vpack.c.bf16 %v443_v29, %v443_v29  ;;  %v2528_v33 = vpack.c.bf16 %v444_v30, %v444_v30 }
  0x96   : > { %v399_v34 = vpop.permute.xlu0 %398  ;;  %v404_v35 = vpop.permute.xlu1 %403  ;;  %v2806_v36 = vld [vmem:[#allocation3] sm:$0xff]   ;;  %v2807_v40 = vld [vmem:[#allocation3 + $0x18] sm:$0xff]  }
  0x97   : > { %510 = vst.msk [vmem:[#allocation3 + $0x8] sm:$0xf] %vm507_vm3, %v2527_v32  ;;  %511 = vst.msk [vmem:[#allocation3 + $0xc] sm:$0xf] %vm507_vm3, %v2528_v33  ;;  %v445_v38 = vmul.f32 %v399_v34, %v354_v16  ;;  %v446_v39 = vmul.f32 %v404_v35, %v355_v17  ;;  %2595 = vmatmul.mubr.msk.bf16.vlgmr.msra.gmra.mrb[0].mxu0 %vm522_vm1, %v2806_v36  ;;  %2607 = vmatmul.mubr.msk.bf16.vlgmr.msra.gmra.mrb[0].mxu1 %vm522_vm1, %v2807_v40  ;;  %v2811_v46 = vld [vmem:[#allocation3] sm:$0xff]   ;;  %v2816_v15 = vld [vmem:[#allocation3 + $0x18] sm:$0xff]  }
  0x98   : > { %2637 = vmatpush3.bf16.msra.mxu0 %v977_v37  ;;  %2615 = vmatpush3.bf16.msra.mxu1 %v803_v41  ;;  %v746_v54 = vshll.u32 %v2811_v46, 16  ;;  %v744_v61 = vshrl.u32 %v2811_v46, 16  ;;  %v2814_v6 = vld [vmem:[#allocation3] sm:$0xfe]   ;;  %v767_v21 = vshll.u32 %v2816_v15, 16  ;;  %v2819_v30 = vld [vmem:[#allocation3 + $0x18] sm:$0xff]  }
  0x99   : > { %v2529_v18 = vpack.c.bf16 %v445_v38, %v445_v38  ;;  %v2530_v43 = vpack.c.bf16 %v446_v39, %v446_v39  ;;  %2598 = vmatprep.mubr.msk.bf16.mxu0 %vm2869_vm2, %v2868_v12  ;;  %2610 = vmatprep.mubr.msk.bf16.mxu1 %vm2869_vm2, %v2868_v12  ;;  %v950_v11 = vrot.slane %v2814_v6, 1  ;;  %v771_v32 = vshrl.u32 %v2816_v15, 16 }
  0x9a   : > { %v429_v44 = vpop.permute.xlu0 %428  ;;  %v434_v45 = vpop.permute.xlu1 %433  ;;  %2658 = vmatprep.subr.bf16.mxu1 %v2868_v12  ;;  %2680 = vmatprep.subr.bf16.mxu0 %v2868_v12  ;;  %v2809_v51 = vld [vmem:[#allocation3 + $0x20] sm:$0xff]   ;;  %v748_v59 = vrot.slane %v746_v54, 1  ;;  %v769_v26 = vrot.slane %v767_v21, 1  ;;  %v955_v34 = vrot.slane %v2819_v30, 1 }
  0x9b   : > { %512 = vst.msk [vmem:[#allocation3 + $0x10] sm:$0xf] %vm507_vm3, %v2529_v18  ;;  %513 = vst.msk [vmem:[#allocation3 + $0x14] sm:$0xf] %vm507_vm3, %v2530_v43  ;;  %v451_v47 = vmul.f32 %v429_v44, %v360_v22  ;;  %v452_v23 = vmul.f32 %v434_v45, %v361_v24  ;;  %v2818_v25 = vld [vmem:[#allocation3 + $0x20] sm:$0xff]  }
  0x9c   : > { %v749_v1 = vor.u32 %v748_v59, %v744_v61  ;;  %v775_v29 = vshll.u32 %v2818_v25, 16  ;;  %v773_v35 = vor.u32 %v771_v32, %v769_v26  ;;  %v2821_v37 = vld [vmem:[#allocation3 + $0x20] sm:$0xff]   ;;  %v779_v41 = vshrl.u32 %v2818_v25, 16 }
  0x9d   : > { %v2535_v49 = vpack.c.bf16 %v451_v47, %v451_v47  ;;  %v2536_v50 = vpack.c.bf16 %v452_v23, %v452_v23  ;;  %v957_v40 = vrot.slane %v2821_v37, 1  ;;  %v2828_v15 = vld [vmem:[#allocation3 + $0x1c] sm:$0xff]  }
  0x9e   : > { %v439_v52 = vpop.permute.xlu0 %438  ;;  %v2808_v53 = vld [vmem:[#allocation3 + $0x8] sm:$0xff]   ;;  %v777_v33 = vrot.slane %v775_v29, 1 }
  0x9f   : > { %518 = vst.msk [vmem:[#allocation3 + $0x28] sm:$0xf] %vm507_vm3, %v2535_v49  ;;  %519 = vst.msk [vmem:[#allocation3 + $0x2c] sm:$0xf] %vm507_vm3, %v2536_v50  ;;  %v453_v55 = vmul.f32 %v439_v52, %v362_v48  ;;  %v2812_v56 = vld [vmem:[#allocation3 + $0x8] sm:$0xff]   ;;  %2599 = vmatmul.mubr.msk.bf16.gmra.mrb[4].mxu0 %vm522_vm1, %v2808_v53  ;;  %2611 = vmatmul.mubr.msk.bf16.gmra.mrb[4].mxu1 %vm522_vm1, %v2809_v51  ;;  %v958_v44 = vsel %vm949_vm6, %v955_v34, %v957_v40 }
  0xa0   : > { %2602 = vmatprep.mubr.msk.bf16.mxu0 %vm2869_vm2, %v2868_v12  ;;  %v751_v58 = vshll.u32 %v2812_v56, 16  ;;  %2616 = vmatprep.mubr.msk.bf16.mxu1 %vm2869_vm2, %v2868_v12  ;;  %v2815_v3 = vld [vmem:[#allocation3 + $0x8] sm:$0xff]   ;;  %v755_v9 = vshrl.u32 %v2812_v56, 16  ;;  %v778_v38 = vsel %vm742_vm5, %v773_v35, %v777_v33  ;;  %v781_v18 = vor.u32 %v779_v41, %v777_v33  ;;  %v2474_v53 = vld [vmem:[%s3431_s1 + $0x14] sm:$0xf] }
  0xa1   : > { %v2537_v57 = vpack.c.bf16 %v453_v55, %v453_v55  ;;  %v951_v7 = vrot.slane %v2815_v3, 1  ;;  %v2823_v23 = vld [vmem:[#allocation3 + $0x4] sm:$0xfe]  }
  0xa2   : > { %v753_v62 = vrot.slane %v751_v58, 1  ;;  %v2813_v63 = vld [vmem:[#allocation3 + $0x10] sm:$0xff]   ;;  %v2826_v48 = vld [vmem:[#allocation3 + $0x4] sm:$0xfe]   ;;  %v1123_v56 = vrot.slane %v2823_v23, 1  ;;  %v1540_v58 = vsel %vm594_vm0, %v2474_v53, 0 }
  0xa3   : > { %521 = vst.msk [vmem:[#allocation3 + $0x30] sm:$0x7] %vm520_vm4, %v2537_v57  ;;  %v2810_v0 = vld [vmem:[#allocation3 + $0x10] sm:$0xff]   ;;  %v759_v5 = vshll.u32 %v2813_v63, 16  ;;  %v952_v16 = vsel %vm949_vm6, %v950_v11, %v951_v7  ;;  %v763_v20 = vshrl.u32 %v2813_v63, 16  ;;  %v1298_v54 = vshrl.u32 %v2826_v48, 16 }
  0xa4   : > { %v754_v4 = vsel %vm742_vm5, %v749_v1, %v753_v62  ;;  %v757_v13 = vor.u32 %v755_v9, %v753_v62  ;;  %v2817_v17 = vld [vmem:[#allocation3 + $0x10] sm:$0xff]   ;;  %v1301_v55 = vshll.u32 %v2826_v48, 16  ;;  %v2486_v3 = vld [vmem:[%s3431_s1 + $0x18] sm:$0xf]  ;;  %v2498_v48 = vld [vmem:[%s3431_s1 + $0x1c] sm:$0xf] }
  0xa5   : > { %v761_v10 = vrot.slane %v759_v5, 1  ;;  %v953_v22 = vrot.slane %v2817_v17, 1  ;;  %v2827_v45 = vld [vmem:[#allocation3 + $0xc] sm:$0xff]   ;;  %v2829_v61 = vld [vmem:[#allocation3 + $0x14] sm:$0xff]   ;;  %v1713_v8 = vsel %vm594_vm0, %v2486_v3, 0 }
  0xa6   : > { %v2820_v31 = vld [vmem:[#allocation3 + $0x28] ss:$0 sps:$4 sm:$0x11]   ;;  %v2824_v47 = vld [vmem:[#allocation3 + $0xc] sm:$0xff]   ;;  %v1306_v50 = vshrl.u32 %v2827_v45, 16  ;;  %v1309_v51 = vshll.u32 %v2827_v45, 16 }
  0xa7   : > { %2603 = vmatmul.mubr.msk.bf16.gmra.mrb[8].mxu0 %vm522_vm1, %v2810_v0  ;;  %2617 = vmatmul.mubr.msk.bf16.vlgmr.msra.gmra.mrb[8].mxu1 %vm522_vm1, %v754_v4  ;;  %v762_v19 = vsel %vm742_vm5, %v757_v13, %v761_v10  ;;  %v765_v24 = vor.u32 %v763_v20, %v761_v10  ;;  %v954_v27 = vsel %vm949_vm6, %v951_v7, %v953_v22  ;;  %v783_v39 = vshll.u32 %v2820_v31, 16  ;;  %v2822_v43 = vld [vmem:[#allocation3 + $0x28] ss:$0 sps:$4 sm:$0x11]   ;;  %v2825_v63 = vld [vmem:[#allocation3 + $0x14] sm:$0xff]   ;;  %v2836_v45 = vld [vmem:[#allocation3 + $0xc] sm:$0xff]  }
  0xa8   : > { %2638 = vmatprep.mubr.msk.bf16.mxu0 %vm2869_vm2, %v2868_v12  ;;  %2659 = vmatpush3.bf16.msra.mxu1 %v1150_v2  ;;  %v956_v36 = vsel %vm949_vm6, %v953_v22, %v955_v34  ;;  %v959_v49 = vrot.slane %v2822_v43, 1  ;;  %v1124_v52 = vrot.slane %v2824_v47, 1  ;;  %v1308_v59 = vrot.slane %v1306_v50, 1  ;;  %v2833_v22 = vld [vmem:[#allocation3 + $0x24] sm:$0xff]  }
  0xa9   : > { %2620 = vmatprep.mubr.msk.bf16.mxu1 %vm2869_vm2, %v2868_v12  ;;  %2702 = vmatprep.subr.bf16.mxu1 %v2868_v12  ;;  %v770_v28 = vsel %vm742_vm5, %v765_v24, %v769_v26  ;;  %v785_v42 = vrot.slane %v783_v39, 1  ;;  %v1311_v60 = vrot.slane %v1309_v51, 2  ;;  %v1300_v0 = vrot.slane %v1298_v54, 1  ;;  %v2830_v25 = vld [vmem:[#allocation3 + $0x24] sm:$0xff]   ;;  %v2837_v54 = vld [vmem:[#allocation3 + $0x14] sm:$0xff]  }
  0xaa   : > { %v960_v57 = vsel %vm949_vm6, %v957_v40, %v959_v49  ;;  %v1125_v62 = vsel %vm949_vm6, %v1123_v56, %v1124_v52  ;;  %v1303_v1 = vrot.slane %v1301_v55, 2  ;;  %v1315_v4 = vshrl.u32 %v2829_v61, 16  ;;  %v2834_v35 = vld [vmem:[#allocation3 + $0x2c] ss:$0 sps:$4 sm:$0x33]  }
  0xab   : > { %v786_v46 = vsel %vm742_vm5, %v781_v18, %v785_v42  ;;  %v1312_v2 = vor.u32 %v1311_v60, %v1308_v59  ;;  %v1318_v5 = vshll.u32 %v2829_v61, 16  ;;  %v1126_v6 = vrot.slane %v2825_v63, 1  ;;  %v2832_v37 = vld [vmem:[#allocation3 + $0x2c] ss:$0 sps:$4 sm:$0x11]   ;;  %v2841_v63 = vld [vmem:[#allocation3 + $0x18] sm:$0xff]  }
  0xac   : > { %v1304_v7 = vor.u32 %v1303_v1, %v1300_v0  ;;  %v1317_v10 = vrot.slane %v1315_v4, 1  ;;  %v1128_v20 = vrot.slane %v2828_v15, 1  ;;  %v1336_v29 = vshll.u32 %v2833_v22, 16  ;;  %v2838_v55 = vld [vmem:[#allocation3 + $0x8] sm:$0xfc]   ;;  %v2840_v0 = vld [vmem:[#allocation3 + $0x1c] sm:$0xff]  }
  0xad   : > { %v1320_v11 = vrot.slane %v1318_v5, 2  ;;  %v1127_v13 = vsel %vm949_vm6, %v1124_v52, %v1126_v6  ;;  %v1130_v30 = vrot.slane %v2830_v25, 1  ;;  %v1342_v39 = vshrl.u32 %v2834_v35, 16  ;;  %v2839_v52 = vld [vmem:[#allocation3 + $0x10] sm:$0xff]   ;;  %v2843_v4 = vld [vmem:[#allocation3 + $0x20] sm:$0xff]  }
  0xae   : > { %v1313_v9 = vsel %vm1296_vm7, %v1304_v7, %v1312_v2  ;;  %v1129_v24 = vsel %vm949_vm6, %v1126_v6, %v1128_v20  ;;  %v1338_v34 = vrot.slane %v1336_v29, 2  ;;  %v1345_v40 = vshll.u32 %v2834_v35, 16  ;;  %v2842_v6 = vld [vmem:[#allocation3 + $0x24] sm:$0xff]   ;;  %v2846_v25 = vld [vmem:[#allocation3 + $0x30] ss:$0 sps:$4 sm:$0x33]  }
  0xaf   : > { %2639 = vmatmul.mubr.msk.bf16.vlgmr.msra.gmra.mrb[12].mxu0 %vm522_vm1, %v952_v16  ;;  %2621 = vmatmul.mubr.msk.bf16.gmra.mrb[12].mxu1 %vm522_vm1, %v762_v19  ;;  %v1321_v16 = vor.u32 %v1320_v11, %v1317_v10  ;;  %v1132_v41 = vrot.slane %v2832_v37, 1  ;;  %v1344_v18 = vrot.slane %v1342_v39, 1  ;;  %v1514_v23 = vrot.slane %v2836_v45, 2  ;;  %v2845_v10 = vld [vmem:[#allocation3 + $0x28] sm:$0xff]  }
  0xb0   : > { %2681 = vmatpush3.bf16.msra.mxu0 %v1366_v14  ;;  %2624 = vmatprep.mubr.msk.bf16.mxu1 %vm2869_vm2, %v2868_v12  ;;  %v2831_v14 = vld [vmem:[#allocation3 + $0x1c] sm:$0xff]   ;;  %v1347_v43 = vrot.slane %v1345_v40, 2  ;;  %v1929_v51 = vsel %vm594_vm0, %v2498_v48, 0  ;;  %v1687_v56 = vrot.slane %v2839_v52, 2  ;;  %v1686_v59 = vrot.slane %v2838_v55, 2 }
  0xb1   : > { %2642 = vmatprep.mubr.msk.bf16.mxu0 %vm2869_vm2, %v2868_v12  ;;  %2724 = vmatprep.subr.bf16.mxu0 %v2868_v12  ;;  %v1324_v17 = vshrl.u32 %v2831_v14, 16  ;;  %v1327_v19 = vshll.u32 %v2831_v14, 16  ;;  %v1322_v21 = vsel %vm1296_vm7, %v1312_v2, %v1321_v16  ;;  %v1689_v1 = vrot.slane %v2841_v63, 2  ;;  %v2848_v14 = vld [vmem:[#allocation3 + $0x10] sm:$0xff]   ;;  %v2847_v15 = vld [vmem:[#allocation3 + $0x8] sm:$0xfc]  }
  0xb2   : > { %v1348_v47 = vor.u32 %v1347_v43, %v1344_v18  ;;  %v1688_v61 = vsel %vm1512_vm8, %v1686_v59, %v1687_v56  ;;  %v1518_v2 = vrot.slane %v2840_v0, 2  ;;  %v1691_v7 = vrot.slane %v2843_v4, 2  ;;  %v2852_v40 = vld [vmem:[#allocation3 + $0x20] sm:$0xff]   ;;  %v2853_v52 = vld [vmem:[#allocation3 + $0x18] sm:$0xff]   ;;  %v2857_v4 = vld [vmem:[#allocation3 + $0x28] sm:$0xff]  }
  0xb3   : > { %v1326_v26 = vrot.slane %v1324_v17, 1  ;;  %v1690_v3 = vsel %vm1512_vm8, %v1687_v56, %v1689_v1  ;;  %v1890_v45 = vshll.u32 %v2852_v40, 16  ;;  %v2079_v56 = vrot.slane %v2853_v52, 3 }
  0xb7   : > { %2643 = vmatmul.mubr.msk.bf16.gmra.mrb[16].mxu0 %vm522_vm1, %v954_v27  ;;  %2625 = vmatmul.mubr.msk.bf16.gmra.mrb[16].mxu1 %vm522_vm1, %v770_v28  ;;  %v1329_v27 = vrot.slane %v1327_v19, 2  ;;  %v1333_v28 = vshrl.u32 %v2833_v22, 16  ;;  %v1869_v19 = vshrl.u32 %v2848_v14, 16  ;;  %v1864_v22 = vshll.u32 %v2847_v15, 16 }
  0xb8   : > { %2646 = vmatprep.mubr.msk.bf16.mxu0 %vm2869_vm2, %v2868_v12  ;;  %2628 = vmatprep.mubr.msk.bf16.mxu1 %vm2869_vm2, %v2868_v12 }
  0xb9   : > { %v1330_v31 = vor.u32 %v1329_v27, %v1326_v26  ;;  %v1335_v33 = vrot.slane %v1333_v28, 1  ;;  %v1871_v27 = vrot.slane %v1869_v19, 2 }
  0xbb   : > { %v1331_v32 = vsel %vm1296_vm7, %v1321_v16, %v1330_v31  ;;  %v1693_v16 = vrot.slane %v2845_v10, 2 }
  0xbf   : > { %2647 = vmatmul.mubr.msk.bf16.gmra.mrb[20].mxu0 %vm522_vm1, %v956_v36  ;;  %2629 = vmatmul.mubr.msk.bf16.gmra.mrb[20].mxu1 %vm522_vm1, %v778_v38  ;;  %v1131_v36 = vsel %vm949_vm6, %v1128_v20, %v1130_v30  ;;  %v1339_v38 = vor.u32 %v1338_v34, %v1335_v33  ;;  %v1872_v20 = vshll.u32 %v2848_v14, 16 }
  0xc0   : > { %2650 = vmatprep.mubr.msk.bf16.mxu0 %vm2869_vm2, %v2868_v12  ;;  %2632 = vmatprep.mubr.msk.bf16.mxu1 %vm2869_vm2, %v2868_v12 }
  0xc1   : > { %v1340_v42 = vsel %vm1296_vm7, %v1330_v31, %v1339_v38  ;;  %v1349_v50 = vsel %vm1296_vm7, %v1339_v38, %v1348_v47  ;;  %v1874_v28 = vrot.slane %v1872_v20, 3  ;;  %v2849_v31 = vld [vmem:[#allocation3 + $0x18] sm:$0xff]   ;;  %v2851_v38 = vld [vmem:[#allocation3 + $0x10] sm:$0xff]  }
  0xc2   : > { %v1878_v35 = vshrl.u32 %v2849_v31, 16  ;;  %v2077_v43 = vrot.slane %v2851_v38, 3  ;;  %v544_v20 = vld [vmem:[#allocation2 + $0x8] sm:$0xff] }
  0xc3   : > { %v1875_v33 = vor.u32 %v1874_v28, %v1871_v27 }
  0xc7   : > { %2651 = vmatmul.mubr.msk.bf16.gmra.mrb[24].mxu0 %vm522_vm1, %v958_v44  ;;  %2633 = vmatmul.mubr.msk.bf16.gmra.mrb[24].mxu1 %vm522_vm1, %v786_v46  ;;  %v1133_v44 = vsel %vm949_vm6, %v1130_v30, %v1132_v41  ;;  %v2835_v46 = vld [vmem:[#allocation3 + $0x4] sm:$0xfc]   ;;  %v1866_v30 = vrot.slane %v1864_v22, 3 }
  0xc8   : > { %2654 = vmatprep.mubr.msk.bf16.mxu0 %vm2869_vm2, %v2868_v12  ;;  %2660 = vmatprep.mubr.msk.bf16.mxu1 %vm2869_vm2, %v2868_v12  ;;  %v1513_v49 = vrot.slane %v2835_v46, 2  ;;  %v2850_v41 = vld [vmem:[#allocation3 + $0x8] sm:$0xf8]  }
  0xc9   : > { %v2076_v46 = vrot.slane %v2850_v41, 3 }
  0xca   : > { %v1515_v53 = vsel %vm1512_vm8, %v1513_v49, %v1514_v23 }
  0xcf   : > { %2655 = vmatmul.mubr.msk.bf16.gmra.mrb[28].mxu0 %vm522_vm1, %v960_v57  ;;  %2661 = vmatmul.mubr.msk.bf16.vlgmr.msra.gmra.mrb[28].mxu1 %vm522_vm1, %v1125_v62  ;;  %v2510_v57 = vld [vmem:[%s3431_s1 + $0x20] sm:$0xf] }
  0xd0   : > { %2682 = vmatprep.mubr.msk.bf16.mxu0 %vm2869_vm2, %v2868_v12  ;;  %2703 = vmatpush3.bf16.msra.mxu1 %v1540_v58  ;;  %v1516_v58 = vrot.slane %v2837_v54, 2  ;;  %v2103_v60 = vsel %vm594_vm0, %v2510_v57, 0  ;;  %v2080_v57 = vsel %vm2075_vm10, %v2077_v43, %v2079_v56  ;;  %vm2256_vm0 = vcmask 57344  }
  0xd1   : > { %2664 = vmatprep.mubr.msk.bf16.mxu1 %vm2869_vm2, %v2868_v12  ;;  %2746 = vmatprep.subr.bf16.mxu1 %v2868_v12 }
  0xd2   : > { %v1517_v62 = vsel %vm1512_vm8, %v1514_v23, %v1516_v58  ;;  %v1519_v5 = vsel %vm1512_vm8, %v1516_v58, %v1518_v2  ;;  %v2078_v23 = vsel %vm2075_vm10, %v2076_v46, %v2077_v43  ;;  %v2855_v58 = vld [vmem:[#allocation3 + $0x20] sm:$0xff]  }
  0xd3   : > { %v2081_v63 = vrot.slane %v2855_v58, 3 }
  0xd7   : > { %2683 = vmatmul.mubr.msk.bf16.vlgmr.msra.gmra.mrb[32].mxu0 %vm522_vm1, %v1313_v9  ;;  %2665 = vmatmul.mubr.msk.bf16.gmra.mrb[32].mxu1 %vm522_vm1, %v1127_v13  ;;  %v1692_v9 = vsel %vm1512_vm8, %v1689_v1, %v1691_v7  ;;  %v2844_v13 = vld [vmem:[#allocation3 + $0x2c] ss:$0 sps:$4 sm:$0x33]  }
  0xd8   : > { %2725 = vmatpush3.bf16.msra.mxu0 %v1713_v8  ;;  %2668 = vmatprep.mubr.msk.bf16.mxu1 %vm2869_vm2, %v2868_v12  ;;  %v1520_v8 = vrot.slane %v2842_v6, 2  ;;  %v1522_v17 = vrot.slane %v2844_v13, 2 }
  0xd9   : > { %2686 = vmatprep.mubr.msk.bf16.mxu0 %vm2869_vm2, %v2868_v12  ;;  %2768 = vmatprep.subr.bf16.mxu0 %v2868_v12 }
  0xda   : > { %v1521_v11 = vsel %vm1512_vm8, %v1518_v2, %v1520_v8  ;;  %v1523_v26 = vsel %vm1512_vm8, %v1520_v8, %v1522_v17  ;;  %v2083_v8 = vrot.slane %v2857_v4, 3  ;;  %v549_v17 = vld [vmem:[#allocation2 + $0x30] sm:$0xff] }
  0xdc   : > { %v2084_v10 = vsel %vm2075_vm10, %v2081_v63, %v2083_v8 }
  0xdf   : > { %2687 = vmatmul.mubr.msk.bf16.gmra.mrb[36].mxu0 %vm522_vm1, %v1322_v21  ;;  %2669 = vmatmul.mubr.msk.bf16.gmra.mrb[36].mxu1 %vm522_vm1, %v1129_v24  ;;  %v1861_v21 = vshrl.u32 %v2847_v15, 16  ;;  %v1694_v24 = vsel %vm1512_vm8, %v1691_v7, %v1693_v16 }
  0xe0   : > { %2690 = vmatprep.mubr.msk.bf16.mxu0 %vm2869_vm2, %v2868_v12  ;;  %2672 = vmatprep.mubr.msk.bf16.mxu1 %vm2869_vm2, %v2868_v12 }
  0xe1   : > { %v1863_v29 = vrot.slane %v1861_v21, 2 }
  0xe3   : > { %v1867_v34 = vor.u32 %v1866_v30, %v1863_v29 }
  0xe5   : > { %v1876_v39 = vsel %vm1859_vm9, %v1867_v34, %v1875_v33  ;;  %v551_v34 = vld [vmem:[#allocation2 + $0x40] sm:$0xff] }
  0xe7   : > { %2691 = vmatmul.mubr.msk.bf16.gmra.mrb[40].mxu0 %vm522_vm1, %v1331_v32  ;;  %2673 = vmatmul.mubr.msk.bf16.gmra.mrb[40].mxu1 %vm522_vm1, %v1131_v36  ;;  %v1695_v32 = vrot.slane %v2846_v25, 2  ;;  %v1881_v36 = vshll.u32 %v2849_v31, 16  ;;  %v550_v25 = vld [vmem:[#allocation2 + $0x38] sm:$0xff] }
  0xe8   : > { %2694 = vmatprep.mubr.msk.bf16.mxu0 %vm2869_vm2, %v2868_v12  ;;  %2676 = vmatprep.mubr.msk.bf16.mxu1 %vm2869_vm2, %v2868_v12 }
  0xe9   : > { %v1696_v37 = vsel %vm1512_vm8, %v1693_v16, %v1695_v32  ;;  %v1883_v18 = vrot.slane %v1881_v36, 3  ;;  %v543_v16 = vld [vmem:[#allocation2] sm:$0xff]  ;;  %v546_v36 = vld [vmem:[#allocation2 + $0x18] sm:$0xff] }
  0xef   : > { %2695 = vmatmul.mubr.msk.bf16.gmra.mrb[44].mxu0 %vm522_vm1, %v1340_v42  ;;  %2677 = vmatmul.mubr.msk.bf16.gmra.mrb[44].mxu1 %vm522_vm1, %v1133_v44  ;;  %v1880_v42 = vrot.slane %v1878_v35, 2  ;;  %v1887_v44 = vshrl.u32 %v2852_v40, 16  ;;  %v552_v40 = vld [vmem:[#allocation2 + $0x48] sm:$0xff] }
  0xf0   : > { %2698 = vmatprep.mubr.msk.bf16.mxu0 %vm2869_vm2, %v2868_v12  ;;  %2704 = vmatprep.mubr.msk.bf16.mxu1 %vm2869_vm2, %v2868_v12 }
  0xf1   : > { %v1884_v47 = vor.u32 %v1883_v18, %v1880_v42  ;;  %v1889_v49 = vrot.slane %v1887_v44, 2 }
  0xf3   : > { %v1885_v48 = vsel %vm1859_vm9, %v1875_v33, %v1884_v47  ;;  %v545_v33 = vld [vmem:[#allocation2 + $0x10] sm:$0xff] }
  0xf7   : > { %2699 = vmatmul.mubr.msk.bf16.gmra.mrb[48].mxu0 %vm522_vm1, %v1349_v50  ;;  %2705 = vmatmul.mubr.msk.bf16.vlgmr.msra.gmra.mrb[48].mxu1 %vm522_vm1, %v1515_v53  ;;  %v1892_v50 = vrot.slane %v1890_v45, 3 }
  0xf8   : > { %2726 = vmatprep.mubr.msk.bf16.mxu0 %vm2869_vm2, %v2868_v12  ;;  %2747 = vmatpush3.bf16.msra.mxu1 %v1929_v51  ;;  %v2854_v51 = vld [vmem:[#allocation3 + $0x28] sm:$0xff]  }
  0xf9   : > { %2708 = vmatprep.mubr.msk.bf16.mxu1 %vm2869_vm2, %v2868_v12  ;;  %v1893_v53 = vor.u32 %v1892_v50, %v1889_v49  ;;  %v1896_v54 = vshrl.u32 %v2854_v51, 16  ;;  %v1899_v55 = vshll.u32 %v2854_v51, 16  ;;  %v548_v49 = vld [vmem:[#allocation2 + $0x28] sm:$0xff] }
  0xfb   : > { %v1894_v59 = vsel %vm1859_vm9, %v1884_v47, %v1893_v53 }
  0xff   : > { %2727 = vmatmul.mubr.msk.bf16.vlgmr.msra.gmra.mrb[52].mxu0 %vm522_vm1, %v1688_v61  ;;  %2709 = vmatmul.mubr.msk.bf16.gmra.mrb[52].mxu1 %vm522_vm1, %v1517_v62  ;;  %v1901_v61 = vrot.slane %v1899_v55, 3  ;;  %v2856_v62 = vld [vmem:[#allocation3 + $0x30] ss:$0 sps:$4 sm:$0x77]  }
 0x100   : > { %2769 = vmatpush3.bf16.msra.mxu0 %v2103_v60  ;;  %2712 = vmatprep.mubr.msk.bf16.mxu1 %vm2869_vm2, %v2868_v12  ;;  %v1898_v60 = vrot.slane %v1896_v54, 2  ;;  %v1905_v1 = vshrl.u32 %v2856_v62, 16  ;;  %v1908_v2 = vshll.u32 %v2856_v62, 16 }
 0x101   : > { %2730 = vmatprep.mubr.msk.bf16.mxu0 %vm2869_vm2, %v2868_v12 }
 0x102   : > { %v1902_v0 = vor.u32 %v1901_v61, %v1898_v60  ;;  %v1907_v6 = vrot.slane %v1905_v1, 2  ;;  %v1910_v7 = vrot.slane %v1908_v2, 3 }
 0x107   : > { %2731 = vmatmul.mubr.msk.bf16.gmra.mrb[56].mxu0 %vm522_vm1, %v1690_v3  ;;  %2713 = vmatmul.mubr.msk.bf16.gmra.mrb[56].mxu1 %vm522_vm1, %v1519_v5  ;;  %v2082_v3 = vsel %vm2075_vm10, %v2079_v56, %v2081_v63  ;;  %v1903_v5 = vsel %vm1859_vm9, %v1893_v53, %v1902_v0 }
 0x108   : > { %2734 = vmatprep.mubr.msk.bf16.mxu0 %vm2869_vm2, %v2868_v12  ;;  %2716 = vmatprep.mubr.msk.bf16.mxu1 %vm2869_vm2, %v2868_v12 }
 0x10f   : > { %2735 = vmatmul.mubr.msk.bf16.gmra.mrb[60].mxu0 %vm522_vm1, %v1692_v9  ;;  %2717 = vmatmul.mubr.msk.bf16.gmra.mrb[60].mxu1 %vm522_vm1, %v1521_v11  ;;  %v1911_v9 = vor.u32 %v1910_v7, %v1907_v6  ;;  %v2858_v11 = vld [vmem:[#allocation3 + $0x30] ss:$0 sps:$4 sm:$0x77]  }
 0x110   : > { %2738 = vmatprep.mubr.msk.bf16.mxu0 %vm2869_vm2, %v2868_v12  ;;  %2720 = vmatprep.mubr.msk.bf16.mxu1 %vm2869_vm2, %v2868_v12  ;;  %v2085_v14 = vrot.slane %v2858_v11, 3 }
 0x111   : > { %v1912_v13 = vsel %vm1859_vm9, %v1902_v0, %v1911_v9 }
 0x112   : > { %v2086_v15 = vsel %vm2075_vm10, %v2083_v8, %v2085_v14 }
 0x117   : > { %2739 = vmatmul.mubr.msk.bf16.gmra.mrb[64].mxu0 %vm522_vm1, %v1694_v24  ;;  %2721 = vmatmul.mubr.msk.bf16.gmra.mrb[64].mxu1 %vm522_vm1, %v1523_v26 }
 0x118   : > { %2742 = vmatprep.mubr.msk.bf16.mxu0 %vm2869_vm2, %v2868_v12  ;;  %2748 = vmatprep.mubr.msk.bf16.mxu1 %vm2869_vm2, %v2868_v12 }
 0x11f   : > { %2743 = vmatmul.mubr.msk.bf16.gmra.mrb[68].mxu0 %vm522_vm1, %v1696_v37  ;;  %2749 = vmatmul.mubr.msk.bf16.vlgmr.msra.gmra.mrb[68].mxu1 %vm522_vm1, %v1876_v39 }
 0x120   : > { %2770 = vmatprep.mubr.msk.bf16.mxu0 %vm2869_vm2, %v2868_v12  ;;  %2752 = vmatprep.mubr.msk.bf16.mxu1 %vm2869_vm2, %v2868_v12 }
 0x127   : > { %2771 = vmatmul.mubr.msk.bf16.vlgmr.msra.gmra.mrb[72].mxu0 %vm522_vm1, %v2078_v23  ;;  %2753 = vmatmul.mubr.msk.bf16.gmra.mrb[72].mxu1 %vm522_vm1, %v1885_v48  ;;  %v547_v23 = vld [vmem:[#allocation2 + $0x20] sm:$0xff] }
 0x128   : > { %2774 = vmatprep.mubr.msk.bf16.mxu0 %vm2869_vm2, %v2868_v12  ;;  %2756 = vmatprep.mubr.msk.bf16.mxu1 %vm2869_vm2, %v2868_v12 }
 0x12f   : > { %2775 = vmatmul.mubr.msk.bf16.gmra.mrb[76].mxu0 %vm522_vm1, %v2080_v57  ;;  %2757 = vmatmul.mubr.msk.bf16.gmra.mrb[76].mxu1 %vm522_vm1, %v1894_v59 }
 0x130   : > { %2778 = vmatprep.mubr.msk.bf16.mxu0 %vm2869_vm2, %v2868_v12  ;;  %2760 = vmatprep.mubr.msk.bf16.mxu1 %vm2869_vm2, %v2868_v12 }
 0x137   : > { %2779 = vmatmul.mubr.msk.bf16.gmra.mrb[80].mxu0 %vm522_vm1, %v2082_v3  ;;  %2761 = vmatmul.mubr.msk.bf16.gmra.mrb[80].mxu1 %vm522_vm1, %v1903_v5 }
 0x138   : > { %2782 = vmatprep.mubr.msk.bf16.mxu0 %vm2869_vm2, %v2868_v12  ;;  %2764 = vmatprep.mubr.msk.bf16.mxu1 %vm2869_vm2, %v2868_v12 }
 0x13f   : > { %2783 = vmatmul.mubr.msk.bf16.gmra.mrb[84].mxu0 %vm522_vm1, %v2084_v10  ;;  %2765 = vmatmul.mubr.msk.bf16.gmra.mrb[84].mxu1 %vm522_vm1, %v1912_v13 }
 0x140   : > { %2786 = vmatprep.mubr.msk.bf16.mxu0 %vm2869_vm2, %v2868_v12 }
 0x147   : > { %2787 = vmatmul.mubr.msk.bf16.gmra.mrb[88].mxu0 %vm522_vm1, %v2086_v15 }
 0x16a   : > { %v632_v19 = vpop.f32.mrb[0].mxu0  ;;  %v656_v22 = vpop.f32.mrb[0].mxu1 }
 0x16b   : > { %v671_v21 = vadd.f32 %v632_v19, %v543_v16  ;;  %v2596_v24 = vpop.f32.mrb[1].mxu0  ;;  %v677_v26 = vadd.f32 %v656_v22, %v549_v17  ;;  %v2608_v27 = vpop.f32.mrb[1].mxu1 }
 0x16c   : > { %v635_v28 = vpop.f32.mrb[2].mxu0  ;;  %v659_v12 = vpop.f32.mrb[2].mxu1 }
 0x16d   : > { %681 = vst.msk [vmem:[#allocation2] sm:$0xff] %vm522_vm1, %v671_v21  ;;  %v672_v29 = vadd.f32 %v635_v28, %v544_v20  ;;  %v2597_v30 = vpop.f32.mrb[3].mxu0  ;;  %687 = vst.msk [vmem:[#allocation2 + $0x30] sm:$0xff] %vm522_vm1, %v677_v26  ;;  %v678_v31 = vadd.f32 %v659_v12, %v550_v25  ;;  %v2609_v32 = vpop.f32.mrb[3].mxu1 }
 0x16f   : > { %682 = vst.msk [vmem:[#allocation2 + $0x8] sm:$0xff] %vm522_vm1, %v672_v29  ;;  %688 = vst.msk [vmem:[#allocation2 + $0x38] sm:$0xff] %vm522_vm1, %v678_v31 }
 0x172   : > { %v640_v35 = vpop.f32.mrb[4].mxu0  ;;  %v664_v38 = vpop.f32.mrb[4].mxu1 }
 0x173   : > { %v673_v37 = vadd.f32 %v640_v35, %v545_v33  ;;  %v2600_v39 = vpop.f32.mrb[5].mxu0  ;;  %v679_v41 = vadd.f32 %v664_v38, %v551_v34  ;;  %v2612_v42 = vpop.f32.mrb[5].mxu1 }
 0x174   : > { %v643_v18 = vpop.f32.mrb[6].mxu0  ;;  %v667_v44 = vpop.f32.mrb[6].mxu1  ;;  %v702_v51 = vld [vmem:[#allocation2] sm:$0xff]  ;;  %v708_v34 = vld [vmem:[#allocation2 + $0x30] sm:$0xff] }
 0x175   : > { %683 = vst.msk [vmem:[#allocation2 + $0x10] sm:$0xff] %vm522_vm1, %v673_v37  ;;  %v674_v43 = vadd.f32 %v643_v18, %v546_v36  ;;  %v2601_v45 = vpop.f32.mrb[7].mxu0  ;;  %689 = vst.msk [vmem:[#allocation2 + $0x40] sm:$0xff] %vm522_vm1, %v679_v41  ;;  %v680_v46 = vadd.f32 %v667_v44, %v552_v40  ;;  %v2613_v47 = vpop.f32.mrb[7].mxu1 }
 0x176   : > { %v703_v58 = vld [vmem:[#allocation2 + $0x8] sm:$0xff]  ;;  %v709_v41 = vld [vmem:[#allocation2 + $0x38] sm:$0xff] }
 0x177   : > { %684 = vst.msk [vmem:[#allocation2 + $0x18] sm:$0xff] %vm522_vm1, %v674_v43  ;;  %690 = vst.msk [vmem:[#allocation2 + $0x48] sm:$0xff] %vm522_vm1, %v680_v46 }
 0x17a   : > { %v648_v48 = vpop.f32.mrb[8].mxu0  ;;  %v839_v52 = vpop.f32.mrb[8].mxu1 }
 0x17b   : > { %v675_v50 = vadd.f32 %v648_v48, %v547_v23  ;;  %v2604_v53 = vpop.f32.mrb[9].mxu0  ;;  %v878_v54 = vadd.f32 %v839_v52, %v702_v51  ;;  %v2618_v55 = vpop.f32.mrb[9].mxu1 }
 0x17c   : > { %v651_v56 = vpop.f32.mrb[10].mxu0  ;;  %v842_v59 = vpop.f32.mrb[10].mxu1  ;;  %v704_v0 = vld [vmem:[#allocation2 + $0x10] sm:$0xff]  ;;  %v710_v48 = vld [vmem:[#allocation2 + $0x40] sm:$0xff] }
 0x17d   : > { %685 = vst.msk [vmem:[#allocation2 + $0x20] sm:$0xff] %vm522_vm1, %v675_v50  ;;  %v676_v57 = vadd.f32 %v651_v56, %v548_v49  ;;  %v2605_v60 = vpop.f32.mrb[11].mxu0  ;;  %888 = vst.msk [vmem:[#allocation2] sm:$0xff] %vm522_vm1, %v878_v54  ;;  %v879_v61 = vadd.f32 %v842_v59, %v703_v58  ;;  %v2619_v62 = vpop.f32.mrb[11].mxu1 }
 0x17e   : > { %v705_v7 = vld [vmem:[#allocation2 + $0x18] sm:$0xff]  ;;  %v711_v55 = vld [vmem:[#allocation2 + $0x48] sm:$0xff] }
 0x17f   : > { %686 = vst.msk [vmem:[#allocation2 + $0x28] sm:$0xff] %vm522_vm1, %v676_v57  ;;  %889 = vst.msk [vmem:[#allocation2 + $0x8] sm:$0xff] %vm522_vm1, %v879_v61 }
 0x182   : > { %v1013_v63 = vpop.f32.mrb[12].mxu0  ;;  %v847_v1 = vpop.f32.mrb[12].mxu1 }
 0x183   : > { %v2640_v2 = vpop.f32.mrb[13].mxu0  ;;  %v880_v3 = vadd.f32 %v847_v1, %v704_v0  ;;  %v2622_v4 = vpop.f32.mrb[13].mxu1 }
 0x184   : > { %v1016_v5 = vpop.f32.mrb[14].mxu0  ;;  %v909_v6 = vld [vmem:[#allocation2] sm:$0xff]  ;;  %v850_v8 = vpop.f32.mrb[14].mxu1 }
 0x185   : > { %v2641_v9 = vpop.f32.mrb[15].mxu0  ;;  %890 = vst.msk [vmem:[#allocation2 + $0x10] sm:$0xff] %vm522_vm1, %v880_v3  ;;  %v1052_v10 = vadd.f32 %v1013_v63, %v909_v6  ;;  %v881_v11 = vadd.f32 %v850_v8, %v705_v7  ;;  %v2623_v13 = vpop.f32.mrb[15].mxu1  ;;  %v706_v17 = vld [vmem:[#allocation2 + $0x20] sm:$0xff] }
 0x186   : > { %v910_v14 = vld [vmem:[#allocation2 + $0x8] sm:$0xff] }
 0x187   : > { %1062 = vst.msk [vmem:[#allocation2] sm:$0xff] %vm522_vm1, %v1052_v10  ;;  %891 = vst.msk [vmem:[#allocation2 + $0x18] sm:$0xff] %vm522_vm1, %v881_v11  ;;  %v1053_v15 = vadd.f32 %v1016_v5, %v910_v14  ;;  %v707_v26 = vld [vmem:[#allocation2 + $0x28] sm:$0xff] }
 0x189   : > { %1063 = vst.msk [vmem:[#allocation2 + $0x8] sm:$0xff] %vm522_vm1, %v1053_v15 }
 0x18a   : > { %v1021_v16 = vpop.f32.mrb[16].mxu0  ;;  %v855_v19 = vpop.f32.mrb[16].mxu1 }
 0x18b   : > { %v2644_v20 = vpop.f32.mrb[17].mxu0  ;;  %v882_v21 = vadd.f32 %v855_v19, %v706_v17  ;;  %v2626_v22 = vpop.f32.mrb[17].mxu1 }
 0x18c   : > { %v1024_v24 = vpop.f32.mrb[18].mxu0  ;;  %v911_v25 = vld [vmem:[#allocation2 + $0x10] sm:$0xff]  ;;  %v858_v27 = vpop.f32.mrb[18].mxu1 }
 0x18d   : > { %v2645_v28 = vpop.f32.mrb[19].mxu0  ;;  %892 = vst.msk [vmem:[#allocation2 + $0x20] sm:$0xff] %vm522_vm1, %v882_v21  ;;  %v1054_v29 = vadd.f32 %v1021_v16, %v911_v25  ;;  %v883_v12 = vadd.f32 %v858_v27, %v707_v26  ;;  %v2627_v30 = vpop.f32.mrb[19].mxu1 }
 0x18e   : > { %v912_v31 = vld [vmem:[#allocation2 + $0x18] sm:$0xff]  ;;  %v1083_v0 = vld [vmem:[#allocation2] sm:$0xff] }
 0x18f   : > { %1064 = vst.msk [vmem:[#allocation2 + $0x10] sm:$0xff] %vm522_vm1, %v1054_v29  ;;  %893 = vst.msk [vmem:[#allocation2 + $0x28] sm:$0xff] %vm522_vm1, %v883_v12  ;;  %v1055_v32 = vadd.f32 %v1024_v24, %v912_v31 }
 0x190   : > { %v1084_v7 = vld [vmem:[#allocation2 + $0x8] sm:$0xff] }
 0x191   : > { %1065 = vst.msk [vmem:[#allocation2 + $0x18] sm:$0xff] %vm522_vm1, %v1055_v32 }
 0x192   : > { %v1029_v33 = vpop.f32.mrb[20].mxu0  ;;  %v863_v35 = vpop.f32.mrb[20].mxu1 }
 0x193   : > { %v2648_v36 = vpop.f32.mrb[21].mxu0  ;;  %v884_v37 = vadd.f32 %v863_v35, %v708_v34  ;;  %v2630_v38 = vpop.f32.mrb[21].mxu1 }
 0x194   : > { %v1032_v39 = vpop.f32.mrb[22].mxu0  ;;  %v913_v40 = vld [vmem:[#allocation2 + $0x20] sm:$0xff]  ;;  %v866_v42 = vpop.f32.mrb[22].mxu1 }
 0x195   : > { %v2649_v18 = vpop.f32.mrb[23].mxu0  ;;  %894 = vst.msk [vmem:[#allocation2 + $0x30] sm:$0xff] %vm522_vm1, %v884_v37  ;;  %v1056_v43 = vadd.f32 %v1029_v33, %v913_v40  ;;  %v885_v44 = vadd.f32 %v866_v42, %v709_v41  ;;  %v2631_v45 = vpop.f32.mrb[23].mxu1 }
 0x196   : > { %v914_v46 = vld [vmem:[#allocation2 + $0x28] sm:$0xff]  ;;  %v1085_v17 = vld [vmem:[#allocation2 + $0x10] sm:$0xff] }
 0x197   : > { %1066 = vst.msk [vmem:[#allocation2 + $0x20] sm:$0xff] %vm522_vm1, %v1056_v43  ;;  %895 = vst.msk [vmem:[#allocation2 + $0x38] sm:$0xff] %vm522_vm1, %v885_v44  ;;  %v1057_v47 = vadd.f32 %v1032_v39, %v914_v46 }
 0x198   : > { %v1086_v26 = vld [vmem:[#allocation2 + $0x18] sm:$0xff] }
 0x199   : > { %1067 = vst.msk [vmem:[#allocation2 + $0x28] sm:$0xff] %vm522_vm1, %v1057_v47 }
 0x19a   : > { %v1037_v23 = vpop.f32.mrb[24].mxu0  ;;  %v871_v49 = vpop.f32.mrb[24].mxu1 }
 0x19b   : > { %v2652_v50 = vpop.f32.mrb[25].mxu0  ;;  %v886_v51 = vadd.f32 %v871_v49, %v710_v48  ;;  %v2634_v52 = vpop.f32.mrb[25].mxu1 }
 0x19c   : > { %v1040_v53 = vpop.f32.mrb[26].mxu0  ;;  %v915_v54 = vld [vmem:[#allocation2 + $0x30] sm:$0xff]  ;;  %v874_v56 = vpop.f32.mrb[26].mxu1 }
 0x19d   : > { %v2653_v57 = vpop.f32.mrb[27].mxu0  ;;  %896 = vst.msk [vmem:[#allocation2 + $0x40] sm:$0xff] %vm522_vm1, %v886_v51  ;;  %v1058_v58 = vadd.f32 %v1037_v23, %v915_v54  ;;  %v887_v59 = vadd.f32 %v874_v56, %v711_v55  ;;  %v2635_v60 = vpop.f32.mrb[27].mxu1 }
 0x19e   : > { %v916_v61 = vld [vmem:[#allocation2 + $0x38] sm:$0xff]  ;;  %v1087_v34 = vld [vmem:[#allocation2 + $0x20] sm:$0xff] }
 0x19f   : > { %1068 = vst.msk [vmem:[#allocation2 + $0x30] sm:$0xff] %vm522_vm1, %v1058_v58  ;;  %897 = vst.msk [vmem:[#allocation2 + $0x48] sm:$0xff] %vm522_vm1, %v887_v59  ;;  %v1059_v62 = vadd.f32 %v1040_v53, %v916_v61 }
 0x1a0   : > { %v1088_v41 = vld [vmem:[#allocation2 + $0x28] sm:$0xff] }
 0x1a1   : > { %1069 = vst.msk [vmem:[#allocation2 + $0x38] sm:$0xff] %vm522_vm1, %v1059_v62 }
 0x1a2   : > { %v1045_v63 = vpop.f32.mrb[28].mxu0  ;;  %v1186_v1 = vpop.f32.mrb[28].mxu1 }
 0x1a3   : > { %v2656_v2 = vpop.f32.mrb[29].mxu0  ;;  %v1225_v3 = vadd.f32 %v1186_v1, %v1083_v0  ;;  %v2662_v4 = vpop.f32.mrb[29].mxu1 }
 0x1a4   : > { %v1048_v5 = vpop.f32.mrb[30].mxu0  ;;  %v917_v6 = vld [vmem:[#allocation2 + $0x40] sm:$0xff]  ;;  %v1189_v8 = vpop.f32.mrb[30].mxu1 }
 0x1a5   : > { %v2657_v9 = vpop.f32.mrb[31].mxu0  ;;  %v1060_v10 = vadd.f32 %v1045_v63, %v917_v6  ;;  %1235 = vst.msk [vmem:[#allocation2] sm:$0xff] %vm522_vm1, %v1225_v3  ;;  %v1226_v11 = vadd.f32 %v1189_v8, %v1084_v7  ;;  %v2663_v13 = vpop.f32.mrb[31].mxu1 }
 0x1a6   : > { %v918_v14 = vld [vmem:[#allocation2 + $0x48] sm:$0xff]  ;;  %v1089_v48 = vld [vmem:[#allocation2 + $0x30] sm:$0xff] }
 0x1a7   : > { %1070 = vst.msk [vmem:[#allocation2 + $0x40] sm:$0xff] %vm522_vm1, %v1060_v10  ;;  %v1061_v15 = vadd.f32 %v1048_v5, %v918_v14  ;;  %1236 = vst.msk [vmem:[#allocation2 + $0x8] sm:$0xff] %vm522_vm1, %v1226_v11 }
 0x1a8   : > { %v1090_v55 = vld [vmem:[#allocation2 + $0x38] sm:$0xff] }
 0x1a9   : > { %1071 = vst.msk [vmem:[#allocation2 + $0x48] sm:$0xff] %vm522_vm1, %v1061_v15 }
 0x1aa   : > { %v1402_v16 = vpop.f32.mrb[32].mxu0  ;;  %v1194_v19 = vpop.f32.mrb[32].mxu1 }
 0x1ab   : > { %v2684_v20 = vpop.f32.mrb[33].mxu0  ;;  %v1227_v21 = vadd.f32 %v1194_v19, %v1085_v17  ;;  %v2666_v22 = vpop.f32.mrb[33].mxu1 }
 0x1ac   : > { %v1405_v24 = vpop.f32.mrb[34].mxu0  ;;  %v1256_v25 = vld [vmem:[#allocation2] sm:$0xff]  ;;  %v1197_v27 = vpop.f32.mrb[34].mxu1 }
 0x1ad   : > { %v2685_v28 = vpop.f32.mrb[35].mxu0  ;;  %1237 = vst.msk [vmem:[#allocation2 + $0x10] sm:$0xff] %vm522_vm1, %v1227_v21  ;;  %v1441_v29 = vadd.f32 %v1402_v16, %v1256_v25  ;;  %v1228_v12 = vadd.f32 %v1197_v27, %v1086_v26  ;;  %v2667_v30 = vpop.f32.mrb[35].mxu1 }
 0x1ae   : > { %v1257_v31 = vld [vmem:[#allocation2 + $0x8] sm:$0xff]  ;;  %v1091_v0 = vld [vmem:[#allocation2 + $0x40] sm:$0xff] }
 0x1af   : > { %1451 = vst.msk [vmem:[#allocation2] sm:$0xff] %vm522_vm1, %v1441_v29  ;;  %1238 = vst.msk [vmem:[#allocation2 + $0x18] sm:$0xff] %vm522_vm1, %v1228_v12  ;;  %v1442_v32 = vadd.f32 %v1405_v24, %v1257_v31 }
 0x1b0   : > { %v1092_v7 = vld [vmem:[#allocation2 + $0x48] sm:$0xff] }
 0x1b1   : > { %1452 = vst.msk [vmem:[#allocation2 + $0x8] sm:$0xff] %vm522_vm1, %v1442_v32 }
 0x1b2   : > { %v1410_v33 = vpop.f32.mrb[36].mxu0  ;;  %v1202_v35 = vpop.f32.mrb[36].mxu1 }
 0x1b3   : > { %v2688_v36 = vpop.f32.mrb[37].mxu0  ;;  %v1229_v37 = vadd.f32 %v1202_v35, %v1087_v34  ;;  %v2670_v38 = vpop.f32.mrb[37].mxu1 }
 0x1b4   : > { %v1413_v39 = vpop.f32.mrb[38].mxu0  ;;  %v1258_v40 = vld [vmem:[#allocation2 + $0x10] sm:$0xff]  ;;  %v1205_v42 = vpop.f32.mrb[38].mxu1 }
 0x1b5   : > { %v2689_v18 = vpop.f32.mrb[39].mxu0  ;;  %1239 = vst.msk [vmem:[#allocation2 + $0x20] sm:$0xff] %vm522_vm1, %v1229_v37  ;;  %v1443_v43 = vadd.f32 %v1410_v33, %v1258_v40  ;;  %v1230_v44 = vadd.f32 %v1205_v42, %v1088_v41  ;;  %v2671_v45 = vpop.f32.mrb[39].mxu1 }
 0x1b6   : > { %v1259_v46 = vld [vmem:[#allocation2 + $0x18] sm:$0xff]  ;;  %v1472_v17 = vld [vmem:[#allocation2] sm:$0xff] }
 0x1b7   : > { %1453 = vst.msk [vmem:[#allocation2 + $0x10] sm:$0xff] %vm522_vm1, %v1443_v43  ;;  %1240 = vst.msk [vmem:[#allocation2 + $0x28] sm:$0xff] %vm522_vm1, %v1230_v44  ;;  %v1444_v47 = vadd.f32 %v1413_v39, %v1259_v46 }
 0x1b8   : > { %v1473_v26 = vld [vmem:[#allocation2 + $0x8] sm:$0xff] }
 0x1b9   : > { %1454 = vst.msk [vmem:[#allocation2 + $0x18] sm:$0xff] %vm522_vm1, %v1444_v47 }
 0x1ba   : > { %v1418_v23 = vpop.f32.mrb[40].mxu0  ;;  %v1210_v49 = vpop.f32.mrb[40].mxu1 }
 0x1bb   : > { %v2692_v50 = vpop.f32.mrb[41].mxu0  ;;  %v1231_v51 = vadd.f32 %v1210_v49, %v1089_v48  ;;  %v2674_v52 = vpop.f32.mrb[41].mxu1 }
 0x1bc   : > { %v1421_v53 = vpop.f32.mrb[42].mxu0  ;;  %v1260_v54 = vld [vmem:[#allocation2 + $0x20] sm:$0xff]  ;;  %v1213_v56 = vpop.f32.mrb[42].mxu1 }
 0x1bd   : > { %v2693_v57 = vpop.f32.mrb[43].mxu0  ;;  %1241 = vst.msk [vmem:[#allocation2 + $0x30] sm:$0xff] %vm522_vm1, %v1231_v51  ;;  %v1445_v58 = vadd.f32 %v1418_v23, %v1260_v54  ;;  %v1232_v59 = vadd.f32 %v1213_v56, %v1090_v55  ;;  %v2675_v60 = vpop.f32.mrb[43].mxu1 }
 0x1be   : > { %v1261_v61 = vld [vmem:[#allocation2 + $0x28] sm:$0xff]  ;;  %v1474_v34 = vld [vmem:[#allocation2 + $0x10] sm:$0xff] }
 0x1bf   : > { %1455 = vst.msk [vmem:[#allocation2 + $0x20] sm:$0xff] %vm522_vm1, %v1445_v58  ;;  %1242 = vst.msk [vmem:[#allocation2 + $0x38] sm:$0xff] %vm522_vm1, %v1232_v59  ;;  %v1446_v62 = vadd.f32 %v1421_v53, %v1261_v61 }
 0x1c0   : > { %v1475_v41 = vld [vmem:[#allocation2 + $0x18] sm:$0xff] }
 0x1c1   : > { %1456 = vst.msk [vmem:[#allocation2 + $0x28] sm:$0xff] %vm522_vm1, %v1446_v62 }
 0x1c2   : > { %v1426_v63 = vpop.f32.mrb[44].mxu0  ;;  %v1218_v1 = vpop.f32.mrb[44].mxu1 }
 0x1c3   : > { %v2696_v2 = vpop.f32.mrb[45].mxu0  ;;  %v1233_v3 = vadd.f32 %v1218_v1, %v1091_v0  ;;  %v2678_v4 = vpop.f32.mrb[45].mxu1 }
 0x1c4   : > { %v1429_v5 = vpop.f32.mrb[46].mxu0  ;;  %v1262_v6 = vld [vmem:[#allocation2 + $0x30] sm:$0xff]  ;;  %v1221_v8 = vpop.f32.mrb[46].mxu1 }
 0x1c5   : > { %v2697_v9 = vpop.f32.mrb[47].mxu0  ;;  %1243 = vst.msk [vmem:[#allocation2 + $0x40] sm:$0xff] %vm522_vm1, %v1233_v3  ;;  %v1447_v10 = vadd.f32 %v1426_v63, %v1262_v6  ;;  %v1234_v11 = vadd.f32 %v1221_v8, %v1092_v7  ;;  %v2679_v13 = vpop.f32.mrb[47].mxu1 }
 0x1c6   : > { %v1263_v14 = vld [vmem:[#allocation2 + $0x38] sm:$0xff]  ;;  %v1476_v48 = vld [vmem:[#allocation2 + $0x20] sm:$0xff] }
 0x1c7   : > { %1457 = vst.msk [vmem:[#allocation2 + $0x30] sm:$0xff] %vm522_vm1, %v1447_v10  ;;  %1244 = vst.msk [vmem:[#allocation2 + $0x48] sm:$0xff] %vm522_vm1, %v1234_v11  ;;  %v1448_v15 = vadd.f32 %v1429_v5, %v1263_v14 }
 0x1c8   : > { %v1477_v55 = vld [vmem:[#allocation2 + $0x28] sm:$0xff] }
 0x1c9   : > { %1458 = vst.msk [vmem:[#allocation2 + $0x38] sm:$0xff] %vm522_vm1, %v1448_v15 }
 0x1ca   : > { %v1434_v16 = vpop.f32.mrb[48].mxu0  ;;  %v1576_v19 = vpop.f32.mrb[48].mxu1 }
 0x1cb   : > { %v2700_v20 = vpop.f32.mrb[49].mxu0  ;;  %v1615_v21 = vadd.f32 %v1576_v19, %v1472_v17  ;;  %v2706_v22 = vpop.f32.mrb[49].mxu1 }
 0x1cc   : > { %v1437_v24 = vpop.f32.mrb[50].mxu0  ;;  %v1264_v25 = vld [vmem:[#allocation2 + $0x40] sm:$0xff]  ;;  %v1579_v27 = vpop.f32.mrb[50].mxu1 }
 0x1cd   : > { %v2701_v28 = vpop.f32.mrb[51].mxu0  ;;  %v1449_v29 = vadd.f32 %v1434_v16, %v1264_v25  ;;  %1625 = vst.msk [vmem:[#allocation2] sm:$0xff] %vm522_vm1, %v1615_v21  ;;  %v1616_v12 = vadd.f32 %v1579_v27, %v1473_v26  ;;  %v2707_v30 = vpop.f32.mrb[51].mxu1 }
 0x1ce   : > { %v1265_v31 = vld [vmem:[#allocation2 + $0x48] sm:$0xff]  ;;  %v1478_v0 = vld [vmem:[#allocation2 + $0x30] sm:$0xff] }
 0x1cf   : > { %1459 = vst.msk [vmem:[#allocation2 + $0x40] sm:$0xff] %vm522_vm1, %v1449_v29  ;;  %v1450_v32 = vadd.f32 %v1437_v24, %v1265_v31  ;;  %1626 = vst.msk [vmem:[#allocation2 + $0x8] sm:$0xff] %vm522_vm1, %v1616_v12 }
 0x1d0   : > { %v1479_v7 = vld [vmem:[#allocation2 + $0x38] sm:$0xff] }
 0x1d1   : > { %1460 = vst.msk [vmem:[#allocation2 + $0x48] sm:$0xff] %vm522_vm1, %v1450_v32 }
 0x1d2   : > { %v1749_v33 = vpop.f32.mrb[52].mxu0  ;;  %v1584_v35 = vpop.f32.mrb[52].mxu1 }
 0x1d3   : > { %v2728_v36 = vpop.f32.mrb[53].mxu0  ;;  %v1617_v37 = vadd.f32 %v1584_v35, %v1474_v34  ;;  %v2710_v38 = vpop.f32.mrb[53].mxu1 }
 0x1d4   : > { %v1752_v39 = vpop.f32.mrb[54].mxu0  ;;  %v1646_v40 = vld [vmem:[#allocation2] sm:$0xff]  ;;  %v1587_v42 = vpop.f32.mrb[54].mxu1 }
 0x1d5   : > { %v2729_v18 = vpop.f32.mrb[55].mxu0  ;;  %1627 = vst.msk [vmem:[#allocation2 + $0x10] sm:$0xff] %vm522_vm1, %v1617_v37  ;;  %v1788_v43 = vadd.f32 %v1749_v33, %v1646_v40  ;;  %v1618_v44 = vadd.f32 %v1587_v42, %v1475_v41  ;;  %v2711_v45 = vpop.f32.mrb[55].mxu1 }
 0x1d6   : > { %v1647_v46 = vld [vmem:[#allocation2 + $0x8] sm:$0xff]  ;;  %v1480_v17 = vld [vmem:[#allocation2 + $0x40] sm:$0xff] }
 0x1d7   : > { %1798 = vst.msk [vmem:[#allocation2] sm:$0xff] %vm522_vm1, %v1788_v43  ;;  %1628 = vst.msk [vmem:[#allocation2 + $0x18] sm:$0xff] %vm522_vm1, %v1618_v44  ;;  %v1789_v47 = vadd.f32 %v1752_v39, %v1647_v46 }
 0x1d8   : > { %v1481_v26 = vld [vmem:[#allocation2 + $0x48] sm:$0xff] }
 0x1d9   : > { %1799 = vst.msk [vmem:[#allocation2 + $0x8] sm:$0xff] %vm522_vm1, %v1789_v47 }
 0x1da   : > { %v1757_v23 = vpop.f32.mrb[56].mxu0  ;;  %v1592_v49 = vpop.f32.mrb[56].mxu1 }
 0x1db   : > { %v2732_v50 = vpop.f32.mrb[57].mxu0  ;;  %v1619_v51 = vadd.f32 %v1592_v49, %v1476_v48  ;;  %v2714_v52 = vpop.f32.mrb[57].mxu1 }
 0x1dc   : > { %v1760_v53 = vpop.f32.mrb[58].mxu0  ;;  %v1648_v54 = vld [vmem:[#allocation2 + $0x10] sm:$0xff]  ;;  %v1595_v56 = vpop.f32.mrb[58].mxu1 }
 0x1dd   : > { %v2733_v57 = vpop.f32.mrb[59].mxu0  ;;  %1629 = vst.msk [vmem:[#allocation2 + $0x20] sm:$0xff] %vm522_vm1, %v1619_v51  ;;  %v1790_v58 = vadd.f32 %v1757_v23, %v1648_v54  ;;  %v1620_v59 = vadd.f32 %v1595_v56, %v1477_v55  ;;  %v2715_v60 = vpop.f32.mrb[59].mxu1 }
 0x1de   : > { %v1649_v61 = vld [vmem:[#allocation2 + $0x18] sm:$0xff]  ;;  %v1819_v34 = vld [vmem:[#allocation2] sm:$0xff] }
 0x1df   : > { %1800 = vst.msk [vmem:[#allocation2 + $0x10] sm:$0xff] %vm522_vm1, %v1790_v58  ;;  %1630 = vst.msk [vmem:[#allocation2 + $0x28] sm:$0xff] %vm522_vm1, %v1620_v59  ;;  %v1791_v62 = vadd.f32 %v1760_v53, %v1649_v61 }
 0x1e0   : > { %v1820_v41 = vld [vmem:[#allocation2 + $0x8] sm:$0xff] }
 0x1e1   : > { %1801 = vst.msk [vmem:[#allocation2 + $0x18] sm:$0xff] %vm522_vm1, %v1791_v62 }
 0x1e2   : > { %v1765_v63 = vpop.f32.mrb[60].mxu0  ;;  %v1600_v1 = vpop.f32.mrb[60].mxu1 }
 0x1e3   : > { %v2736_v2 = vpop.f32.mrb[61].mxu0  ;;  %v1621_v3 = vadd.f32 %v1600_v1, %v1478_v0  ;;  %v2718_v4 = vpop.f32.mrb[61].mxu1 }
 0x1e4   : > { %v1768_v5 = vpop.f32.mrb[62].mxu0  ;;  %v1650_v6 = vld [vmem:[#allocation2 + $0x20] sm:$0xff]  ;;  %v1603_v8 = vpop.f32.mrb[62].mxu1 }
 0x1e5   : > { %v2737_v9 = vpop.f32.mrb[63].mxu0  ;;  %1631 = vst.msk [vmem:[#allocation2 + $0x30] sm:$0xff] %vm522_vm1, %v1621_v3  ;;  %v1792_v10 = vadd.f32 %v1765_v63, %v1650_v6  ;;  %v1622_v11 = vadd.f32 %v1603_v8, %v1479_v7  ;;  %v2719_v13 = vpop.f32.mrb[63].mxu1 }
 0x1e6   : > { %v1651_v14 = vld [vmem:[#allocation2 + $0x28] sm:$0xff]  ;;  %v1821_v48 = vld [vmem:[#allocation2 + $0x10] sm:$0xff] }
 0x1e7   : > { %1802 = vst.msk [vmem:[#allocation2 + $0x20] sm:$0xff] %vm522_vm1, %v1792_v10  ;;  %1632 = vst.msk [vmem:[#allocation2 + $0x38] sm:$0xff] %vm522_vm1, %v1622_v11  ;;  %v1793_v15 = vadd.f32 %v1768_v5, %v1651_v14 }
 0x1e8   : > { %v1822_v55 = vld [vmem:[#allocation2 + $0x18] sm:$0xff] }
 0x1e9   : > { %1803 = vst.msk [vmem:[#allocation2 + $0x28] sm:$0xff] %vm522_vm1, %v1793_v15 }
 0x1ea   : > { %v1773_v16 = vpop.f32.mrb[64].mxu0  ;;  %v1608_v19 = vpop.f32.mrb[64].mxu1 }
 0x1eb   : > { %v2740_v20 = vpop.f32.mrb[65].mxu0  ;;  %v1623_v21 = vadd.f32 %v1608_v19, %v1480_v17  ;;  %v2722_v22 = vpop.f32.mrb[65].mxu1 }
 0x1ec   : > { %v1776_v24 = vpop.f32.mrb[66].mxu0  ;;  %v1652_v25 = vld [vmem:[#allocation2 + $0x30] sm:$0xff]  ;;  %v1611_v27 = vpop.f32.mrb[66].mxu1 }
 0x1ed   : > { %v2741_v28 = vpop.f32.mrb[67].mxu0  ;;  %1633 = vst.msk [vmem:[#allocation2 + $0x40] sm:$0xff] %vm522_vm1, %v1623_v21  ;;  %v1794_v29 = vadd.f32 %v1773_v16, %v1652_v25  ;;  %v1624_v12 = vadd.f32 %v1611_v27, %v1481_v26  ;;  %v2723_v30 = vpop.f32.mrb[67].mxu1 }
 0x1ee   : > { %v1653_v31 = vld [vmem:[#allocation2 + $0x38] sm:$0xff]  ;;  %v1823_v0 = vld [vmem:[#allocation2 + $0x20] sm:$0xff] }
 0x1ef   : > { %1804 = vst.msk [vmem:[#allocation2 + $0x30] sm:$0xff] %vm522_vm1, %v1794_v29  ;;  %1634 = vst.msk [vmem:[#allocation2 + $0x48] sm:$0xff] %vm522_vm1, %v1624_v12  ;;  %v1795_v32 = vadd.f32 %v1776_v24, %v1653_v31 }
 0x1f0   : > { %v1824_v7 = vld [vmem:[#allocation2 + $0x28] sm:$0xff] }
 0x1f1   : > { %1805 = vst.msk [vmem:[#allocation2 + $0x38] sm:$0xff] %vm522_vm1, %v1795_v32 }
 0x1f2   : > { %v1781_v33 = vpop.f32.mrb[68].mxu0  ;;  %v1965_v35 = vpop.f32.mrb[68].mxu1 }
 0x1f3   : > { %v2744_v36 = vpop.f32.mrb[69].mxu0  ;;  %v2004_v37 = vadd.f32 %v1965_v35, %v1819_v34  ;;  %v2750_v38 = vpop.f32.mrb[69].mxu1 }
 0x1f4   : > { %v1784_v39 = vpop.f32.mrb[70].mxu0  ;;  %v1654_v40 = vld [vmem:[#allocation2 + $0x40] sm:$0xff]  ;;  %v1968_v42 = vpop.f32.mrb[70].mxu1 }
 0x1f5   : > { %v2745_v18 = vpop.f32.mrb[71].mxu0  ;;  %v1796_v43 = vadd.f32 %v1781_v33, %v1654_v40  ;;  %2014 = vst.msk [vmem:[#allocation2] sm:$0xff] %vm522_vm1, %v2004_v37  ;;  %v2005_v44 = vadd.f32 %v1968_v42, %v1820_v41  ;;  %v2751_v45 = vpop.f32.mrb[71].mxu1 }
 0x1f6   : > { %v1655_v46 = vld [vmem:[#allocation2 + $0x48] sm:$0xff]  ;;  %v1825_v20 = vld [vmem:[#allocation2 + $0x30] sm:$0xff] }
 0x1f7   : > { %1806 = vst.msk [vmem:[#allocation2 + $0x40] sm:$0xff] %vm522_vm1, %v1796_v43  ;;  %v1797_v47 = vadd.f32 %v1784_v39, %v1655_v46  ;;  %2015 = vst.msk [vmem:[#allocation2 + $0x8] sm:$0xff] %vm522_vm1, %v2005_v44 }
 0x1f8   : > { %v1826_v28 = vld [vmem:[#allocation2 + $0x38] sm:$0xff] }
 0x1f9   : > { %1807 = vst.msk [vmem:[#allocation2 + $0x48] sm:$0xff] %vm522_vm1, %v1797_v47 }
 0x1fa   : > { %v2139_v23 = vpop.f32.mrb[72].mxu0  ;;  %v1973_v49 = vpop.f32.mrb[72].mxu1 }
 0x1fb   : > { %v2772_v50 = vpop.f32.mrb[73].mxu0  ;;  %v2006_v51 = vadd.f32 %v1973_v49, %v1821_v48  ;;  %v2754_v52 = vpop.f32.mrb[73].mxu1 }
 0x1fc   : > { %v2142_v53 = vpop.f32.mrb[74].mxu0  ;;  %v2035_v54 = vld [vmem:[#allocation2] sm:$0xff]  ;;  %v1976_v56 = vpop.f32.mrb[74].mxu1 }
 0x1fd   : > { %v2773_v57 = vpop.f32.mrb[75].mxu0  ;;  %2016 = vst.msk [vmem:[#allocation2 + $0x10] sm:$0xff] %vm522_vm1, %v2006_v51  ;;  %v2178_v58 = vadd.f32 %v2139_v23, %v2035_v54  ;;  %v2007_v59 = vadd.f32 %v1976_v56, %v1822_v55  ;;  %v2755_v60 = vpop.f32.mrb[75].mxu1 }
 0x1fe   : > { %v2036_v61 = vld [vmem:[#allocation2 + $0x8] sm:$0xff]  ;;  %v1827_v38 = vld [vmem:[#allocation2 + $0x40] sm:$0xff] }
 0x1ff   : > { %2188 = vst.msk [vmem:[#allocation2] sm:$0xff] %vm522_vm1, %v2178_v58  ;;  %2017 = vst.msk [vmem:[#allocation2 + $0x18] sm:$0xff] %vm522_vm1, %v2007_v59  ;;  %v2179_v62 = vadd.f32 %v2142_v53, %v2036_v61 }
 0x200   : > { %v1828_v44 = vld [vmem:[#allocation2 + $0x48] sm:$0xff] }
 0x201   : > { %2189 = vst.msk [vmem:[#allocation2 + $0x8] sm:$0xff] %vm522_vm1, %v2179_v62 }
 0x202   : > { %v2147_v63 = vpop.f32.mrb[76].mxu0  ;;  %v1981_v1 = vpop.f32.mrb[76].mxu1 }
 0x203   : > { %v2776_v2 = vpop.f32.mrb[77].mxu0  ;;  %v2008_v3 = vadd.f32 %v1981_v1, %v1823_v0  ;;  %v2758_v4 = vpop.f32.mrb[77].mxu1 }
 0x204   : > { %v2150_v5 = vpop.f32.mrb[78].mxu0  ;;  %v2037_v6 = vld [vmem:[#allocation2 + $0x10] sm:$0xff]  ;;  %v1984_v8 = vpop.f32.mrb[78].mxu1 }
 0x205   : > { %v2777_v9 = vpop.f32.mrb[79].mxu0  ;;  %2018 = vst.msk [vmem:[#allocation2 + $0x20] sm:$0xff] %vm522_vm1, %v2008_v3  ;;  %v2180_v10 = vadd.f32 %v2147_v63, %v2037_v6  ;;  %v2009_v11 = vadd.f32 %v1984_v8, %v1824_v7  ;;  %v2759_v13 = vpop.f32.mrb[79].mxu1 }
 0x206   : > { %v2198_v14 = vld [vmem:[#allocation2] sm:$0xff]  ;;  %v2038_v15 = vld [vmem:[#allocation2 + $0x18] sm:$0xff] }
 0x207   : > { %2208 = vst.msk [vmem:[%s3351_s16] sm:$0xff] %vm522_vm1, %v2198_v14  ;;  %2190 = vst.msk [vmem:[#allocation2 + $0x10] sm:$0xff] %vm522_vm1, %v2180_v10  ;;  %v2181_v16 = vadd.f32 %v2150_v5, %v2038_v15 }
 0x208   : > { %2019 = vst.msk [vmem:[#allocation2 + $0x28] sm:$0xff] %vm522_vm1, %v2009_v11  ;;  %v2199_v17 = vld [vmem:[#allocation2 + $0x8] sm:$0xff] }
 0x209   : > { %2210 = vst.msk [vmem:[%s3351_s16 + $0x6] sm:$0xfc] %vm2209_vm11, %v2199_v17 }
 0x20a   : > { %2191 = vst.msk [vmem:[#allocation2 + $0x18] sm:$0xff] %vm522_vm1, %v2181_v16  ;;  %v2155_v19 = vpop.f32.mrb[80].mxu0  ;;  %v1989_v21 = vpop.f32.mrb[80].mxu1 }
 0x20b   : > { %v2780_v22 = vpop.f32.mrb[81].mxu0  ;;  %v2010_v24 = vadd.f32 %v1989_v21, %v1825_v20  ;;  %v2762_v25 = vpop.f32.mrb[81].mxu1 }
 0x20c   : > { %v2158_v26 = vpop.f32.mrb[82].mxu0  ;;  %v2039_v27 = vld [vmem:[#allocation2 + $0x20] sm:$0xff]  ;;  %v1992_v29 = vpop.f32.mrb[82].mxu1 }
 0x20d   : > { %v2781_v12 = vpop.f32.mrb[83].mxu0  ;;  %2020 = vst.msk [vmem:[#allocation2 + $0x30] sm:$0xff] %vm522_vm1, %v2010_v24  ;;  %v2182_v30 = vadd.f32 %v2155_v19, %v2039_v27  ;;  %v2011_v31 = vadd.f32 %v1992_v29, %v1826_v28  ;;  %v2763_v32 = vpop.f32.mrb[83].mxu1 }
 0x20e   : > { %v2200_v33 = vld [vmem:[#allocation2 + $0x10] sm:$0xff]  ;;  %v2227_v57 = vld [vmem:[%s3351_s16] sm:$0xff] }
 0x20f   : > { %v2040_v34 = vld [vmem:[#allocation2 + $0x28] sm:$0xff]  ;;  %2212 = vst.msk [vmem:[%s3351_s16 + $0xe] sm:$0x3] %vm2211_vm12, %v2200_v33  ;;  %v2258_v1 = vmul.f32 %v2227_v57, %v2227_v57  ;;  %v2235_v6 = vsel %vm522_vm1, %v2227_v57, 0.0 }
 0x210   : > { %2214 = vst.msk [vmem:[%s3351_s16 + $0xc] sm:$0xf0] %vm2213_vm13, %v2200_v33  ;;  %v2183_v35 = vadd.f32 %v2158_v26, %v2040_v34 }
 0x211   : > { %2192 = vst.msk [vmem:[#allocation2 + $0x20] sm:$0xff] %vm522_vm1, %v2182_v30  ;;  %2021 = vst.msk [vmem:[#allocation2 + $0x38] sm:$0xff] %vm522_vm1, %v2011_v31  ;;  %v2201_v36 = vld [vmem:[#allocation2 + $0x18] sm:$0xff]  ;;  %v2266_v10 = vsel %vm522_vm1, %v2258_v1, 0.0 }
 0x212   : > { %2215 = vst.msk [vmem:[%s3351_s16 + $0x14] sm:$0xf] %vm507_vm3, %v2201_v36  ;;  %v2163_v37 = vpop.f32.mrb[84].mxu0  ;;  %v1997_v39 = vpop.f32.mrb[84].mxu1 }
 0x213   : > { %2217 = vst.msk [vmem:[%s3351_s16 + $0x12] sm:$0xc0] %vm2216_vm14, %v2201_v36  ;;  %v2784_v40 = vpop.f32.mrb[85].mxu0  ;;  %v2012_v41 = vadd.f32 %v1997_v39, %v1827_v38  ;;  %v2766_v42 = vpop.f32.mrb[85].mxu1 }
 0x214   : > { %2193 = vst.msk [vmem:[#allocation2 + $0x28] sm:$0xff] %vm522_vm1, %v2183_v35  ;;  %v2166_v18 = vpop.f32.mrb[86].mxu0  ;;  %v2041_v43 = vld [vmem:[#allocation2 + $0x30] sm:$0xff]  ;;  %v2000_v45 = vpop.f32.mrb[86].mxu1 }
 0x215   : > { %v2785_v46 = vpop.f32.mrb[87].mxu0  ;;  %2022 = vst.msk [vmem:[#allocation2 + $0x40] sm:$0xff] %vm522_vm1, %v2012_v41  ;;  %v2184_v47 = vadd.f32 %v2163_v37, %v2041_v43  ;;  %v2013_v23 = vadd.f32 %v2000_v45, %v1828_v44  ;;  %v2767_v48 = vpop.f32.mrb[87].mxu1 }
 0x216   : > { %v2228_v54 = vld [vmem:[%s3351_s16 + $0x8] sm:$0xff] }
 0x217   : > { %2194 = vst.msk [vmem:[#allocation2 + $0x30] sm:$0xff] %vm522_vm1, %v2184_v47  ;;  %2023 = vst.msk [vmem:[#allocation2 + $0x48] sm:$0xff] %vm522_vm1, %v2013_v23  ;;  %v2259_v60 = vmul.f32 %v2228_v54, %v2228_v54  ;;  %v2236_v2 = vsel %vm522_vm1, %v2228_v54, 0.0 }
 0x218   : > { %v2202_v49 = vld [vmem:[#allocation2 + $0x20] sm:$0xff]  ;;  %v2042_v50 = vld [vmem:[#allocation2 + $0x38] sm:$0xff]  ;;  %v2237_v9 = vadd.f32 %v2236_v2, %v2235_v6 }
 0x219   : > { %2219 = vst.msk [vmem:[%s3351_s16 + $0x1a] sm:$0x3f] %vm2218_vm15, %v2202_v49  ;;  %v2185_v51 = vadd.f32 %v2166_v18, %v2042_v50  ;;  %v2229_v62 = vld [vmem:[%s3351_s16 + $0x10] sm:$0xff]  ;;  %v2267_v7 = vsel %vm522_vm1, %v2259_v60, 0.0 }
 0x21a   : > { %v2171_v53 = vpop.f32.mrb[88].mxu0  ;;  %v2260_v8 = vmul.f32 %v2229_v62, %v2229_v62  ;;  %v2238_v11 = vsel %vm522_vm1, %v2229_v62, 0.0  ;;  %v2268_v14 = vadd.f32 %v2267_v7, %v2266_v10 }
 0x21b   : > { %v2203_v52 = vld [vmem:[#allocation2 + $0x28] sm:$0xff]  ;;  %2195 = vst.msk [vmem:[#allocation2 + $0x38] sm:$0xff] %vm522_vm1, %v2185_v51  ;;  %v2788_v55 = vpop.f32.mrb[89].mxu0  ;;  %v2239_v19 = vadd.f32 %v2238_v11, %v2237_v9 }
 0x21c   : > { %2220 = vst.msk [vmem:[%s3351_s16 + $0x20] sm:$0xff] %vm522_vm1, %v2203_v52  ;;  %v2174_v56 = vpop.f32.mrb[90].mxu0  ;;  %v2043_v58 = vld [vmem:[#allocation2 + $0x40] sm:$0xff]  ;;  %v2269_v16 = vsel %vm522_vm1, %v2260_v8, 0.0 }
 0x21d   : > { %v2789_v59 = vpop.f32.mrb[91].mxu0  ;;  %v2186_v61 = vadd.f32 %v2171_v53, %v2043_v58  ;;  %v2270_v24 = vadd.f32 %v2269_v16, %v2268_v14 }
 0x21e   : > { %v2204_v63 = vld [vmem:[#allocation2 + $0x30] sm:$0xff]  ;;  %v2044_v0 = vld [vmem:[#allocation2 + $0x48] sm:$0xff] }
 0x21f   : > { %2221 = vst.msk [vmem:[%s3351_s16 + $0x26] sm:$0xfc] %vm2209_vm11, %v2204_v63  ;;  %v2187_v3 = vadd.f32 %v2174_v56, %v2044_v0 }
 0x220   : > { %2196 = vst.msk [vmem:[#allocation2 + $0x40] sm:$0xff] %vm522_vm1, %v2186_v61  ;;  %v2230_v4 = vld [vmem:[%s3351_s16 + $0x18] sm:$0xff] }
 0x221   : > { %2197 = vst.msk [vmem:[#allocation2 + $0x48] sm:$0xff] %vm522_vm1, %v2187_v3  ;;  %v2261_v13 = vmul.f32 %v2230_v4, %v2230_v4  ;;  %v2240_v17 = vsel %vm522_vm1, %v2230_v4, 0.0 }
 0x222   : > { %v2205_v5 = vld [vmem:[#allocation2 + $0x38] sm:$0xff]  ;;  %v2241_v25 = vadd.f32 %v2240_v17, %v2239_v19 }
 0x223   : > { %2222 = vst.msk [vmem:[%s3351_s16 + $0x2e] sm:$0x3] %vm2211_vm12, %v2205_v5  ;;  %v2231_v15 = vld [vmem:[%s3351_s16 + $0x20] sm:$0xff]  ;;  %v2271_v21 = vsel %vm522_vm1, %v2261_v13, 0.0 }
 0x224   : > { %2223 = vst.msk [vmem:[%s3351_s16 + $0x2c] sm:$0xf0] %vm2213_vm13, %v2205_v5  ;;  %v2262_v22 = vmul.f32 %v2231_v15, %v2231_v15  ;;  %v2242_v28 = vsel %vm522_vm1, %v2231_v15, 0.0  ;;  %v2272_v12 = vadd.f32 %v2271_v21, %v2270_v24 }
 0x225   : > { %v2243_v32 = vadd.f32 %v2242_v28, %v2241_v25 }
 0x226   : > { %v2273_v30 = vsel %vm522_vm1, %v2262_v22, 0.0 }
 0x227   : > { %v2206_v20 = vld [vmem:[#allocation2 + $0x40] sm:$0xff]  ;;  %v2274_v34 = vadd.f32 %v2273_v30, %v2272_v12 }
 0x228   : > { %2224 = vst.msk [vmem:[%s3351_s16 + $0x34] sm:$0xf] %vm507_vm3, %v2206_v20  ;;  %v2207_v27 = vld [vmem:[#allocation2 + $0x48] sm:$0xff] }
 0x229   : > { %2225 = vst.msk [vmem:[%s3351_s16 + $0x32] sm:$0xc0] %vm2216_vm14, %v2206_v20 }
 0x22a   : > { %v2232_v26 = vld [vmem:[%s3351_s16 + $0x28] sm:$0xff]  ;;  %2226 = vst.msk [vmem:[%s3351_s16 + $0x3a] sm:$0x3f] %vm2218_vm15, %v2207_v27 }
 0x22b   : > { %v2263_v29 = vmul.f32 %v2232_v26, %v2232_v26  ;;  %v2244_v31 = vsel %vm522_vm1, %v2232_v26, 0.0 }
 0x22c   : > { %v2245_v35 = vadd.f32 %v2244_v31, %v2243_v32 }
 0x22d   : > { %v2275_v33 = vsel %vm522_vm1, %v2263_v29, 0.0 }
 0x22e   : > { %v2276_v39 = vadd.f32 %v2275_v33, %v2274_v34 }
 0x22f   : > { %v2233_v36 = vld [vmem:[%s3351_s16 + $0x30] sm:$0xff] }
 0x230   : > { %v2246_v37 = vsel %vm522_vm1, %v2233_v36, 0.0  ;;  %v2264_v38 = vmul.f32 %v2233_v36, %v2233_v36 }
 0x231   : > { %v2247_v40 = vadd.f32 %v2246_v37, %v2245_v35  ;;  %v2234_v41 = vld [vmem:[%s3351_s16 + $0x38] sm:$0xff] }
 0x232   : > { %v2277_v42 = vsel %vm522_vm1, %v2264_v38, 0.0  ;;  %v2248_v18 = vsel %vm522_vm1, %v2234_v41, 0.0  ;;  %v2265_v43 = vmul.f32 %v2234_v41, %v2234_v41 }
 0x233   : > { %v2278_v44 = vadd.f32 %v2277_v42, %v2276_v39  ;;  %v2249_v45 = vadd.f32 %v2248_v18, %v2247_v40 }
 0x234   : > { %v2279_v46 = vsel %vm522_vm1, %v2265_v43, 0.0 }
 0x235   : > { %v2250_v47 = vrot.slane %v2249_v45, 4  ;;  %v2280_v23 = vadd.f32 %v2279_v46, %v2278_v44 }
 0x237   : > { %v2251_v48 = vadd.f32 %v2250_v47, %v2249_v45  ;;  %v2281_v49 = vrot.slane %v2280_v23, 4 }
 0x239   : > { %v2252_v50 = vrot.slane %v2251_v48, 2  ;;  %v2282_v51 = vadd.f32 %v2281_v49, %v2280_v23 }
 0x23b   : > { %v2253_v52 = vadd.f32 %v2252_v50, %v2251_v48  ;;  %v2283_v53 = vrot.slane %v2282_v51, 2 }
 0x23d   : > { %v2254_v54 = vrot.slane %v2253_v52, 1  ;;  %v2284_v55 = vadd.f32 %v2283_v53, %v2282_v51 }
 0x23f   : > { %v2255_v56 = vadd.f32 %v2254_v54, %v2253_v52  ;;  %v2285_v57 = vrot.slane %v2284_v55, 1 }
 0x241   : > { %2257 = vst.msk [vmem:[%s292_s19] sm:$0x1] %vm2256_vm0, %v2255_v56  ;;  %v2286_v58 = vadd.f32 %v2285_v57, %v2284_v55 }
 0x243   : > { %2287 = vst.msk [vmem:[%s295_s22] sm:$0x1] %vm2256_vm0, %v2286_v58 }
 0x244 PF: > { %s18_s24 = sadd.s32 1, %s2865_s24  }
 0x245   : > { %p15_p4 = scmp.ge.s32.totalorder %s18_s24, 4  }
 0x247   :  { %17 = sbr.rel (!%p15_p4) target bundleno = 1 (0x1), region = 102 }

</bundles_post_ra>
